<compile_context>
chip_gen: v7x
topology: tpu7x:2x2x1
jax: 0.10.0
libtpu: 0.0.40
codegen_flags: <defaults>
</compile_context>

<pallas_src>
import jax
import jax.numpy as jnp
from jax.experimental import pallas as pl
from jax.experimental.pallas import tpu as pltpu


INPUT_SIZE = 784
OUT_PAD = 128          # lane-dense padded output width; real output is column 0
DEFAULT_TB = 256       # batch tile: fills v6e/v7x 256-wide MXU rows; fine on v5e


def _round_up(x, m):
    return ((x + m - 1) // m) * m


def _leaky_relu(x, slope=0.2):
    return jnp.where(x > 0, x, slope * x)


def discriminator_kernel(x_ref,
                         w1_ref, b1_ref,
                         w2_ref, b2_ref,
                         w3_ref, b3_ref,
                         w4_ref, b4_ref,
                         o_ref):
    # Layer 1: Linear(784 -> 1024) + LeakyReLU(0.2). Dropout(0.3) == identity (eval mode).
    # TODO(synk): add training-mode dropout via pltpu.prng_seed/stateful_bernoulli if needed.
    h = jnp.dot(x_ref[...], w1_ref[...],
                preferred_element_type=jnp.float32) + b1_ref[...]
    h = _leaky_relu(h)

    # Layer 2: Linear(1024 -> 512) + LeakyReLU(0.2)
    h = jnp.dot(h.astype(jnp.bfloat16), w2_ref[...],
                preferred_element_type=jnp.float32) + b2_ref[...]
    h = _leaky_relu(h)

    # Layer 3: Linear(512 -> 256) + LeakyReLU(0.2)
    h = jnp.dot(h.astype(jnp.bfloat16), w3_ref[...],
                preferred_element_type=jnp.float32) + b3_ref[...]
    h = _leaky_relu(h)

    # Output layer: Linear(256 -> 1) (zero-padded to 128 lanes) + Sigmoid.
    logits = jnp.dot(h.astype(jnp.bfloat16), w4_ref[...],
                     preferred_element_type=jnp.float32) + b4_ref[...]
    # bf16 store halves output HBM writeback; OUT_PAD=128 keeps the store unmasked.
    o_ref[...] = jax.nn.sigmoid(logits).astype(o_ref.dtype)


def prepare_params(params):
    """One-time parameter prep (hoisted out of the per-call hot path).

    Casts matmul weights to bf16 and lane-pads only the 1-wide output layer.
    Cache the returned tuple across forward calls.
    """
    w1 = params["w1"].astype(jnp.bfloat16)    # (784, 1024): no feature padding needed;
    b1 = params["b1"].astype(jnp.float32)     # Mosaic lane-pads the 784 contraction in VMEM.
    w2 = params["w2"].astype(jnp.bfloat16)
    b2 = params["b2"].astype(jnp.float32)
    w3 = params["w3"].astype(jnp.bfloat16)
    b3 = params["b3"].astype(jnp.float32)
    w4 = jnp.zeros((256, OUT_PAD), jnp.bfloat16).at[:, :1].set(
        params["w4"].astype(jnp.bfloat16))
    b4 = jnp.zeros((1, OUT_PAD), jnp.float32).at[:, :1].set(
        params["b4"].astype(jnp.float32))
    return (w1, b1, w2, b2, w3, b3, w4, b4)


def _resident_spec(shape):
    """Weights/biases: constant block index -> DMA'd once, VMEM-resident across batch
    tiles; single-buffered (double buffering a never-changing operand wastes VMEM)."""
    index_map = lambda i: (0,) * len(shape)
    try:
        return pl.BlockSpec(shape, index_map, pipeline_mode=pl.Buffered(1))
    except (TypeError, AttributeError):
        # Older Pallas without pipeline_mode / Buffered: fall back to default buffering.
        return pl.BlockSpec(shape, index_map)


def discriminator_forward(x, prepped, *, tb=DEFAULT_TB):
    """x: [B, 784] float. prepped: output of prepare_params(). Returns [B, 1] float32."""
    w1, b1, w2, b2, w3, b3, w4, b4 = prepped
    B, F = x.shape
    assert F == INPUT_SIZE, (B, F)

    # Fill the 256-wide MXU on v6e/v7x, but don't inflate tiny GAN batches.
    tb = min(tb, max(8, _round_up(B, 8)))
    B_pad = _round_up(B, tb)

    x_bf16 = x.astype(jnp.bfloat16)
    if B_pad != B:
        x_bf16 = jnp.pad(x_bf16, ((0, B_pad - B), (0, 0)))

    grid = (B_pad // tb,)

    in_specs = [
        pl.BlockSpec((tb, INPUT_SIZE), lambda i: (i, 0)),   # x: batch-tiled, pipelined
        _resident_spec(w1.shape), _resident_spec(b1.shape),
        _resident_spec(w2.shape), _resident_spec(b2.shape),
        _resident_spec(w3.shape), _resident_spec(b3.shape),
        _resident_spec(w4.shape), _resident_spec(b4.shape),
    ]

    out_padded = pl.pallas_call(
        discriminator_kernel,
        out_shape=jax.ShapeDtypeStruct((B_pad, OUT_PAD), jnp.bfloat16),
        grid=grid,
        in_specs=in_specs,
        out_specs=pl.BlockSpec((tb, OUT_PAD), lambda i: (i, 0)),
        compiler_params=pltpu.CompilerParams(
            dimension_semantics=("parallel",),   # megacore batch split on v7x
        ),
    )(x_bf16, w1, b1, w2, b2, w3, b3, w4, b4)

    # TODO(synk): for latency-bound small-batch serving, prefetch the bf16 weights
    # across pallas_calls (P10) so the ~3 MiB weight DMA hides behind the generator step.
    return out_padded[:B, :1].astype(jnp.float32)


def init_params(key, input_size=784, output_size=1):
    """Deterministic init matching nn.Linear shapes (weights stored pre-transposed [in, out])."""
    sizes = [(input_size, 1024), (1024, 512), (512, 256), (256, output_size)]
    params = {}
    for i, (fan_in, fan_out) in enumerate(sizes, start=1):
        key, kw, kb = jax.random.split(key, 3)
        bound = 1.0 / jnp.sqrt(fan_in)
        # PyTorch nn.Linear weight is (out, in); we store its transpose (in, out).
        params[f"w{i}"] = jax.random.uniform(kw, (fan_in, fan_out), jnp.float32, -bound, bound)
        params[f"b{i}"] = jax.random.uniform(kb, (1, fan_out), jnp.float32, -bound, bound)
    return params


def reference_forward(x, params):
    """Pure-JAX reference with the same bf16-matmul / f32-epilogue / bf16-output numerics."""
    def lin(h, w, b):
        return jnp.dot(h.astype(jnp.bfloat16), w.astype(jnp.bfloat16),
                       preferred_element_type=jnp.float32) + b
    h = _leaky_relu(lin(x, params["w1"], params["b1"]))
    h = _leaky_relu(lin(h, params["w2"], params["b2"]))
    h = _leaky_relu(lin(h, params["w3"], params["b3"]))
    out = jax.nn.sigmoid(lin(h, params["w4"], params["b4"]))
    return out.astype(jnp.bfloat16).astype(jnp.float32)


if __name__ == "__main__":
    key = jax.random.PRNGKey(0)
    key, kx = jax.random.split(key)

    B = 2  # module fixes input_size=784 via Linear(784, 1024)
    x = jax.random.normal(kx, (B, INPUT_SIZE), jnp.float32)
    params = init_params(key, input_size=INPUT_SIZE, output_size=1)

    prepped = prepare_params(params)          # one-time weight prep, reused across calls
    out = jax.block_until_ready(discriminator_forward(x, prepped))

    ref = reference_forward(x, params)
    assert out.shape == (B, 1), out.shape
    assert jnp.allclose(out, ref, atol=5e-3, rtol=5e-3), (out, ref)
    print("KERNEL_OK")
</pallas_src>

<mosaic_0001>
module attributes {stable_mosaic.version = 11 : i64} {
  func.func @discriminator_kernel(%arg0: i32, %arg1: memref<8x784xbf16, #tpu.memory_space<vmem>>, %arg2: memref<784x1024xbf16, #tpu.memory_space<vmem>>, %arg3: memref<1x1024xf32, #tpu.memory_space<vmem>>, %arg4: memref<1024x512xbf16, #tpu.memory_space<vmem>>, %arg5: memref<1x512xf32, #tpu.memory_space<vmem>>, %arg6: memref<512x256xbf16, #tpu.memory_space<vmem>>, %arg7: memref<1x256xf32, #tpu.memory_space<vmem>>, %arg8: memref<256x128xbf16, #tpu.memory_space<vmem>>, %arg9: memref<1x128xf32, #tpu.memory_space<vmem>>, %arg10: memref<8x128xbf16, #tpu.memory_space<vmem>>) attributes {dimension_semantics = [#tpu.dimension_semantics<parallel>], iteration_bounds = array<i64: 1>, scalar_prefetch = 0 : i64, scratch_operands = 0 : i64, tpu.core_type = #tpu.core_type<tc>, window_params = [{transform_indices = @transform_0, window_bounds = array<i64: 8, 784>}, {pipeline_mode = #tpu.pipeline_mode<synchronous>, transform_indices = @transform_1, window_bounds = array<i64: 784, 1024>}, {pipeline_mode = #tpu.pipeline_mode<synchronous>, transform_indices = @transform_2, window_bounds = array<i64: 1, 1024>}, {pipeline_mode = #tpu.pipeline_mode<synchronous>, transform_indices = @transform_3, window_bounds = array<i64: 1024, 512>}, {pipeline_mode = #tpu.pipeline_mode<synchronous>, transform_indices = @transform_4, window_bounds = array<i64: 1, 512>}, {pipeline_mode = #tpu.pipeline_mode<synchronous>, transform_indices = @transform_5, window_bounds = array<i64: 512, 256>}, {pipeline_mode = #tpu.pipeline_mode<synchronous>, transform_indices = @transform_6, window_bounds = array<i64: 1, 256>}, {pipeline_mode = #tpu.pipeline_mode<synchronous>, transform_indices = @transform_7, window_bounds = array<i64: 256, 128>}, {pipeline_mode = #tpu.pipeline_mode<synchronous>, transform_indices = @transform_8, window_bounds = array<i64: 1, 128>}, {transform_indices = @transform_9, window_bounds = array<i64: 8, 128>}]} {
    %c0 = arith.constant 0 : index
    %c0_0 = arith.constant 0 : index
    %0 = vector.load %arg1[%c0, %c0_0] : memref<8x784xbf16, #tpu.memory_space<vmem>>, vector<8x784xbf16>
    %c0_1 = arith.constant 0 : index
    %c0_2 = arith.constant 0 : index
    %1 = vector.load %arg2[%c0_1, %c0_2] : memref<784x1024xbf16, #tpu.memory_space<vmem>>, vector<784x1024xbf16>
    %cst = arith.constant dense<0.000000e+00> : vector<8x1024xf32>
    %2 = tpu.matmul %0, %1, %cst {dimension_numbers = #tpu.dot_dimension_numbers<[1], [0], [0], [1], [0, 0, 1, 1], [], []>} : vector<8x784xbf16>, vector<784x1024xbf16>, vector<8x1024xf32> -> vector<8x1024xf32>
    %c0_3 = arith.constant 0 : index
    %c0_4 = arith.constant 0 : index
    %3 = vector.load %arg3[%c0_3, %c0_4] : memref<1x1024xf32, #tpu.memory_space<vmem>>, vector<1x1024xf32>
    %4 = vector.broadcast %3 : vector<1x1024xf32> to vector<8x1024xf32>
    %5 = arith.addf %2, %4 : vector<8x1024xf32>
    %cst_5 = arith.constant 0.000000e+00 : f32
    %6 = vector.broadcast %cst_5 : f32 to vector<8x1024xf32>
    %7 = arith.cmpf ogt, %5, %6 : vector<8x1024xf32>
    %cst_6 = arith.constant 2.000000e-01 : f32
    %8 = vector.broadcast %cst_6 : f32 to vector<8x1024xf32>
    %9 = arith.mulf %8, %5 : vector<8x1024xf32>
    %10 = arith.select %7, %5, %9 : vector<8x1024xi1>, vector<8x1024xf32>
    %11 = arith.truncf %10 : vector<8x1024xf32> to vector<8x1024xbf16>
    %c0_7 = arith.constant 0 : index
    %c0_8 = arith.constant 0 : index
    %12 = vector.load %arg4[%c0_7, %c0_8] : memref<1024x512xbf16, #tpu.memory_space<vmem>>, vector<1024x512xbf16>
    %cst_9 = arith.constant dense<0.000000e+00> : vector<8x512xf32>
    %13 = tpu.matmul %11, %12, %cst_9 {dimension_numbers = #tpu.dot_dimension_numbers<[1], [0], [0], [1], [0, 0, 1, 1], [], []>} : vector<8x1024xbf16>, vector<1024x512xbf16>, vector<8x512xf32> -> vector<8x512xf32>
    %c0_10 = arith.constant 0 : index
    %c0_11 = arith.constant 0 : index
    %14 = vector.load %arg5[%c0_10, %c0_11] : memref<1x512xf32, #tpu.memory_space<vmem>>, vector<1x512xf32>
    %15 = vector.broadcast %14 : vector<1x512xf32> to vector<8x512xf32>
    %16 = arith.addf %13, %15 : vector<8x512xf32>
    %cst_12 = arith.constant 0.000000e+00 : f32
    %17 = vector.broadcast %cst_12 : f32 to vector<8x512xf32>
    %18 = arith.cmpf ogt, %16, %17 : vector<8x512xf32>
    %cst_13 = arith.constant 2.000000e-01 : f32
    %19 = vector.broadcast %cst_13 : f32 to vector<8x512xf32>
    %20 = arith.mulf %19, %16 : vector<8x512xf32>
    %21 = arith.select %18, %16, %20 : vector<8x512xi1>, vector<8x512xf32>
    %22 = arith.truncf %21 : vector<8x512xf32> to vector<8x512xbf16>
    %c0_14 = arith.constant 0 : index
    %c0_15 = arith.constant 0 : index
    %23 = vector.load %arg6[%c0_14, %c0_15] : memref<512x256xbf16, #tpu.memory_space<vmem>>, vector<512x256xbf16>
    %cst_16 = arith.constant dense<0.000000e+00> : vector<8x256xf32>
    %24 = tpu.matmul %22, %23, %cst_16 {dimension_numbers = #tpu.dot_dimension_numbers<[1], [0], [0], [1], [0, 0, 1, 1], [], []>} : vector<8x512xbf16>, vector<512x256xbf16>, vector<8x256xf32> -> vector<8x256xf32>
    %c0_17 = arith.constant 0 : index
    %c0_18 = arith.constant 0 : index
    %25 = vector.load %arg7[%c0_17, %c0_18] : memref<1x256xf32, #tpu.memory_space<vmem>>, vector<1x256xf32>
    %26 = vector.broadcast %25 : vector<1x256xf32> to vector<8x256xf32>
    %27 = arith.addf %24, %26 : vector<8x256xf32>
    %cst_19 = arith.constant 0.000000e+00 : f32
    %28 = vector.broadcast %cst_19 : f32 to vector<8x256xf32>
    %29 = arith.cmpf ogt, %27, %28 : vector<8x256xf32>
    %cst_20 = arith.constant 2.000000e-01 : f32
    %30 = vector.broadcast %cst_20 : f32 to vector<8x256xf32>
    %31 = arith.mulf %30, %27 : vector<8x256xf32>
    %32 = arith.select %29, %27, %31 : vector<8x256xi1>, vector<8x256xf32>
    %33 = arith.truncf %32 : vector<8x256xf32> to vector<8x256xbf16>
    %c0_21 = arith.constant 0 : index
    %c0_22 = arith.constant 0 : index
    %34 = vector.load %arg8[%c0_21, %c0_22] : memref<256x128xbf16, #tpu.memory_space<vmem>>, vector<256x128xbf16>
    %cst_23 = arith.constant dense<0.000000e+00> : vector<8x128xf32>
    %35 = tpu.matmul %33, %34, %cst_23 {dimension_numbers = #tpu.dot_dimension_numbers<[1], [0], [0], [1], [0, 0, 1, 1], [], []>} : vector<8x256xbf16>, vector<256x128xbf16>, vector<8x128xf32> -> vector<8x128xf32>
    %c0_24 = arith.constant 0 : index
    %c0_25 = arith.constant 0 : index
    %36 = vector.load %arg9[%c0_24, %c0_25] : memref<1x128xf32, #tpu.memory_space<vmem>>, vector<1x128xf32>
    %37 = vector.broadcast %36 : vector<1x128xf32> to vector<8x128xf32>
    %38 = arith.addf %35, %37 : vector<8x128xf32>
    %39 = arith.negf %38 : vector<8x128xf32>
    %40 = math.exp %39 : vector<8x128xf32>
    %cst_26 = arith.constant 1.000000e+00 : f32
    %41 = vector.broadcast %cst_26 : f32 to vector<8x128xf32>
    %42 = arith.addf %41, %40 : vector<8x128xf32>
    %43 = arith.divf %41, %42 : vector<8x128xf32>
    %44 = arith.truncf %43 : vector<8x128xf32> to vector<8x128xbf16>
    %c0_27 = arith.constant 0 : index
    %c0_28 = arith.constant 0 : index
    %45 = vector.load %arg10[%c0_27, %c0_28] : memref<8x128xbf16, #tpu.memory_space<vmem>>, vector<8x128xbf16>
    tpu.vector_store %arg10[%c0_27, %c0_28], %44 {strides = array<i32>} : memref<8x128xbf16, #tpu.memory_space<vmem>>, vector<8x128xbf16>,
    return
  }
  func.func @transform_0(%arg0: i32) -> (i32, i32) {
    %c0_i32 = arith.constant 0 : i32
    %c0_i32_0 = arith.constant 0 : i32
    return %arg0, %c0_i32 : i32, i32
  }
  func.func @transform_1(%arg0: i32) -> (i32, i32) {
    %c0_i32 = arith.constant 0 : i32
    %c0_i32_0 = arith.constant 0 : i32
    %c0_i32_1 = arith.constant 0 : i32
    return %c0_i32, %c0_i32_0 : i32, i32
  }
  func.func @transform_2(%arg0: i32) -> (i32, i32) {
    %c0_i32 = arith.constant 0 : i32
    %c0_i32_0 = arith.constant 0 : i32
    %c0_i32_1 = arith.constant 0 : i32
    return %c0_i32, %c0_i32_0 : i32, i32
  }
  func.func @transform_3(%arg0: i32) -> (i32, i32) {
    %c0_i32 = arith.constant 0 : i32
    %c0_i32_0 = arith.constant 0 : i32
    %c0_i32_1 = arith.constant 0 : i32
    return %c0_i32, %c0_i32_0 : i32, i32
  }
  func.func @transform_4(%arg0: i32) -> (i32, i32) {
    %c0_i32 = arith.constant 0 : i32
    %c0_i32_0 = arith.constant 0 : i32
    %c0_i32_1 = arith.constant 0 : i32
    return %c0_i32, %c0_i32_0 : i32, i32
  }
  func.func @transform_5(%arg0: i32) -> (i32, i32) {
    %c0_i32 = arith.constant 0 : i32
    %c0_i32_0 = arith.constant 0 : i32
    %c0_i32_1 = arith.constant 0 : i32
    return %c0_i32, %c0_i32_0 : i32, i32
  }
  func.func @transform_6(%arg0: i32) -> (i32, i32) {
    %c0_i32 = arith.constant 0 : i32
    %c0_i32_0 = arith.constant 0 : i32
    %c0_i32_1 = arith.constant 0 : i32
    return %c0_i32, %c0_i32_0 : i32, i32
  }
  func.func @transform_7(%arg0: i32) -> (i32, i32) {
    %c0_i32 = arith.constant 0 : i32
    %c0_i32_0 = arith.constant 0 : i32
    %c0_i32_1 = arith.constant 0 : i32
    return %c0_i32, %c0_i32_0 : i32, i32
  }
  func.func @transform_8(%arg0: i32) -> (i32, i32) {
    %c0_i32 = arith.constant 0 : i32
    %c0_i32_0 = arith.constant 0 : i32
    %c0_i32_1 = arith.constant 0 : i32
    return %c0_i32, %c0_i32_0 : i32, i32
  }
  func.func @transform_9(%arg0: i32) -> (i32, i32) {
    %c0_i32 = arith.constant 0 : i32
    %c0_i32_0 = arith.constant 0 : i32
    return %arg0, %c0_i32 : i32, i32
  }
}

</mosaic_0001>

<bundles_post_ra>
// kernel: tpu_custom_call.1
= control target key start
LH: loop header
LB: loop body
LE: loop exit
PB: predicated region body
PF: predicated region fallthrough
CT: control target
= control target key end

     0   :  { %14 = vsyncpa [#allocation3], 0  ;;  %s7801_s0 = inlined_call_operand.hbm [shape: bf16[8,784], index: 0, kind: input, shape index: {}]   ;;  %s7802_s1 = inlined_call_operand.hbm [shape: bf16[784,1024], index: 1, kind: input, shape index: {}]   ;;  %s7803_s2 = inlined_call_operand.hbm [shape: f32[1,1024], index: 2, kind: input, shape index: {}]   ;;  %s7804_s3 = inlined_call_operand.hbm [shape: bf16[1024,512], index: 3, kind: input, shape index: {}]   ;;  %s7805_s4 = inlined_call_operand.hbm [shape: f32[1,512], index: 4, kind: input, shape index: {}]   ;;  %s7806_s5 = inlined_call_operand.hbm [shape: bf16[512,256], index: 5, kind: input, shape index: {}]   ;;  %s7807_s6 = inlined_call_operand.hbm [shape: f32[1,256], index: 6, kind: input, shape index: {}]   ;;  %s7808_s7 = inlined_call_operand.hbm [shape: bf16[256,128], index: 7, kind: input, shape index: {}]   ;;  %s7809_s8 = inlined_call_operand.hbm [shape: f32[1,128], index: 8, kind: input, shape index: {}]   ;;  %s7810_s9 = inlined_call_operand.hbm [shape: bf16[8,128], index: 9, kind: output, shape index: {}]  }
   0x1   :  { %15 = vsyncpa [#allocation6], 0 }
   0x2   :  { %16 = vsyncpa [#allocation9], 0 }
   0x3   :  { %17 = vsyncpa [#allocation12], 0 }
   0x4   :  { %18 = vsyncpa [#allocation15], 0 }
   0x5   :  { %19 = vsyncpa [#allocation4], 0  ;;  %s7457_s30 = smov [#allocation5]   ;;  %s7225_s13 = scalar_lea.hbm %s7802_s1, 50176 }
   0x6   :  { %s35_s10 = sshll.u32 %s7457_s30, 4  ;;  %p7226_p0 = scmp.ne.s32.totalorder %s7802_s1, %s7225_s13  ;;  %s36_s10 = int_to_ptr.vmem [resolvable:$true] %s35_s10 }
   0x7   :  { %p7229_p1 = scmp.lt.u32.totalorder %s7225_s13, %s7802_s1 }
   0x9   :  { %p7231_p2 = pnand %p7229_p1, %p7226_p0 }
   0xb   :  { %7234 = shalt.err (!%p7231_p2)
}
   0xc   :  { %s7235_s18 = scalar_lea.vmem %s36_s10, 50176  ;;  %p7240_p4 = scmp.lt.s32.totalorder %s36_s10, %s36_s10 }
   0xd   :  { %p7236_p3 = scmp.ne.s32.totalorder %s36_s10, %s7235_s18  ;;  %p7241_p5 = scmp.lt.s32.totalorder %s7235_s18, %s7235_s18 }
   0xf   :  { %p7242_p6 = por %p7241_p5, %p7240_p4 }
  0x11   :  { %p7243_p7 = pnand %p7242_p6, %p7236_p3 }
  0x13   :  { %7246 = shalt.err (!%p7243_p7)
}
  0x14   :  { %s7458_s19 = smov 512   ;;  %s7459_s20 = smov 32  }
  0x15   :  { %41 = dma.hbm_to_vmem [thread:$0]  %s7802_s1, 50176, %s36_s10, [#allocation6], %s7458_s19, %s7458_s19, %s7459_s20  }
  0x16   :  { %s7460_s23 = smov [#allocation8]   ;;  %s7247_s27 = scalar_lea.hbm %s7804_s3, 32768 }
  0x17   :  { %s57_s24 = sshll.u32 %s7460_s23, 4  ;;  %p7248_p8 = scmp.ne.s32.totalorder %s7804_s3, %s7247_s27  ;;  %s58_s24 = int_to_ptr.vmem [resolvable:$true] %s57_s24 }
  0x18   :  { %p7251_p9 = scmp.lt.u32.totalorder %s7247_s27, %s7804_s3 }
  0x1a   :  { %p7253_p10 = pnand %p7251_p9, %p7248_p8 }
  0x1c   :  { %7256 = shalt.err (!%p7253_p10)
}
  0x1d   :  { %s7257_s12 = scalar_lea.vmem %s58_s24, 32768  ;;  %p7262_p12 = scmp.lt.s32.totalorder %s58_s24, %s58_s24 }
  0x1e   :  { %p7258_p11 = scmp.ne.s32.totalorder %s58_s24, %s7257_s12  ;;  %p7263_p13 = scmp.lt.s32.totalorder %s7257_s12, %s7257_s12 }
  0x20   :  { %p7264_p0 = por %p7263_p13, %p7262_p12 }
  0x22   :  { %p7265_p1 = pnand %p7264_p0, %p7258_p11 }
  0x24   :  { %7268 = shalt.err (!%p7265_p1)
}
  0x25   :  { %s7461_s1 = smov 256   ;;  %s7462_s10 = smov 16  }
  0x26   :  { %63 = dma.hbm_to_vmem [thread:$0]  %s7804_s3, 32768, %s58_s24, [#allocation9], %s7461_s1, %s7461_s1, %s7462_s10  }
  0x27   :  { %s7463_s15 = smov [#allocation11]   ;;  %s7269_s19 = scalar_lea.hbm %s7806_s5, 8192 }
  0x28   :  { %s79_s16 = sshll.u32 %s7463_s15, 4  ;;  %p7270_p2 = scmp.ne.s32.totalorder %s7806_s5, %s7269_s19  ;;  %s80_s16 = int_to_ptr.vmem [resolvable:$true] %s79_s16 }
  0x29   :  { %p7273_p3 = scmp.lt.u32.totalorder %s7269_s19, %s7806_s5 }
  0x2b   :  { %p7275_p4 = pnand %p7273_p3, %p7270_p2 }
  0x2d   :  { %7278 = shalt.err (!%p7275_p4)
}
  0x2e   :  { %s7279_s25 = scalar_lea.vmem %s80_s16, 8192  ;;  %p7284_p6 = scmp.lt.s32.totalorder %s80_s16, %s80_s16 }
  0x2f   :  { %p7280_p5 = scmp.ne.s32.totalorder %s80_s16, %s7279_s25  ;;  %p7285_p7 = scmp.lt.s32.totalorder %s7279_s25, %s7279_s25 }
  0x31   :  { %p7286_p8 = por %p7285_p7, %p7284_p6 }
  0x33   :  { %p7287_p9 = pnand %p7286_p8, %p7280_p5 }
  0x35   :  { %7290 = shalt.err (!%p7287_p9)
}
  0x36   :  { %s7464_s3 = smov 128   ;;  %s7465_s24 = smov 8  }
  0x37   :  { %85 = dma.hbm_to_vmem [thread:$0]  %s7806_s5, 8192, %s80_s16, [#allocation12], %s7464_s3, %s7464_s3, %s7465_s24  }
  0x38   :  { %s7466_s28 = smov [#allocation14]   ;;  %s7291_s12 = scalar_lea.hbm %s7808_s7, 2048 }
  0x39   :  { %s101_s29 = sshll.u32 %s7466_s28, 4  ;;  %p7292_p10 = scmp.ne.s32.totalorder %s7808_s7, %s7291_s12  ;;  %s102_s29 = int_to_ptr.vmem [resolvable:$true] %s101_s29 }
  0x3a   :  { %p7295_p11 = scmp.lt.u32.totalorder %s7291_s12, %s7808_s7 }
  0x3c   :  { %p7297_p12 = pnand %p7295_p11, %p7292_p10 }
  0x3e   :  { %7300 = shalt.err (!%p7297_p12)
}
  0x3f   :  { %s7301_s15 = scalar_lea.vmem %s102_s29, 2048  ;;  %p7306_p0 = scmp.lt.s32.totalorder %s102_s29, %s102_s29 }
  0x40   :  { %p7302_p13 = scmp.ne.s32.totalorder %s102_s29, %s7301_s15  ;;  %p7307_p1 = scmp.lt.s32.totalorder %s7301_s15, %s7301_s15 }
  0x42   :  { %p7308_p2 = por %p7307_p1, %p7306_p0 }
  0x44   :  { %p7309_p3 = pnand %p7308_p2, %p7302_p13 }
  0x46   :  { %7312 = shalt.err (!%p7309_p3)
}
  0x47   :  { %s7467_s5 = smov 64   ;;  %s7468_s16 = smov 4  }
  0x48   :  { %107 = dma.hbm_to_vmem [thread:$0]  %s7808_s7, 2048, %s102_s29, [#allocation15], %s7467_s5, %s7467_s5, %s7468_s16  }
  0x49   :  { %s7469_s19 = smov [#allocation2]   ;;  %s7470_s21 = smov [#allocation7]  }
  0x4a   :  { %s26_s20 = sshll.u32 %s7469_s19, 4  ;;  %s48_s22 = sshll.u32 %s7470_s21, 4  ;;  %s27_s20 = int_to_ptr.vmem [resolvable:$true] %s26_s20  ;;  %s49_s22 = int_to_ptr.vmem [resolvable:$true] %s48_s22 }
  0x4b   :  { %s7313_s3 = scalar_lea.hbm %s7801_s0, 448 }
  0x4c   :  { %p7314_p4 = scmp.ne.s32.totalorder %s7801_s0, %s7313_s3  ;;  %p7317_p5 = scmp.lt.u32.totalorder %s7313_s3, %s7801_s0 }
  0x4e   :  { %p7319_p6 = pnand %p7317_p5, %p7314_p4 }
  0x50   :  { %7322 = shalt.err (!%p7319_p6)
}
  0x51   :  { %s7323_s7 = scalar_lea.vmem %s27_s20, 448  ;;  %p7328_p8 = scmp.lt.s32.totalorder %s27_s20, %s27_s20 }
  0x52   :  { %p7324_p7 = scmp.ne.s32.totalorder %s27_s20, %s7323_s7  ;;  %p7329_p9 = scmp.lt.s32.totalorder %s7323_s7, %s7323_s7 }
  0x54   :  { %p7330_p10 = por %p7329_p9, %p7328_p8 }
  0x56   :  { %p7331_p11 = pnand %p7330_p10, %p7324_p7 }
  0x58   :  { %7334 = shalt.err (!%p7331_p11)
}
  0x59   :  { %29 = dma.hbm_to_vmem [thread:$0]  %s7801_s0, 448, %s27_s20, [#allocation3]  }
  0x5a   :  { %s7335_s1 = scalar_lea.hbm %s7803_s2, 128 }
  0x5b   :  { %p7336_p12 = scmp.ne.s32.totalorder %s7803_s2, %s7335_s1  ;;  %p7339_p13 = scmp.lt.u32.totalorder %s7335_s1, %s7803_s2 }
  0x5d   :  { %p7341_p0 = pnand %p7339_p13, %p7336_p12 }
  0x5f   :  { %7344 = shalt.err (!%p7341_p0)
}
  0x60   :  { %s7345_s5 = scalar_lea.vmem %s49_s22, 128  ;;  %p7350_p2 = scmp.lt.s32.totalorder %s49_s22, %s49_s22 }
  0x61   :  { %p7346_p1 = scmp.ne.s32.totalorder %s49_s22, %s7345_s5  ;;  %p7351_p3 = scmp.lt.s32.totalorder %s7345_s5, %s7345_s5 }
  0x63   :  { %p7352_p4 = por %p7351_p3, %p7350_p2 }
  0x65   :  { %p7353_p5 = pnand %p7352_p4, %p7346_p1 }
  0x67   :  { %7356 = shalt.err (!%p7353_p5)
}
  0x68   :  { %51 = dma.hbm_to_vmem [thread:$0]  %s7803_s2, 128, %s49_s22, [#allocation6]  }
  0x69   :  { %s7471_s17 = smov [#allocation10]   ;;  %s7472_s19 = smov [#allocation13]  }
  0x6a   :  { %s70_s18 = sshll.u32 %s7471_s17, 4  ;;  %s92_s20 = sshll.u32 %s7472_s19, 4  ;;  %s71_s18 = int_to_ptr.vmem [resolvable:$true] %s70_s18  ;;  %s93_s20 = int_to_ptr.vmem [resolvable:$true] %s92_s20 }
  0x6b   :  { %s7357_s25 = scalar_lea.hbm %s7805_s4, 64 }
  0x6c   :  { %p7358_p6 = scmp.ne.s32.totalorder %s7805_s4, %s7357_s25  ;;  %p7361_p7 = scmp.lt.u32.totalorder %s7357_s25, %s7805_s4 }
  0x6e   :  { %p7363_p8 = pnand %p7361_p7, %p7358_p6 }
  0x70   :  { %7366 = shalt.err (!%p7363_p8)
}
  0x71   :  { %s7367_s2 = scalar_lea.vmem %s71_s18, 64  ;;  %p7372_p10 = scmp.lt.s32.totalorder %s71_s18, %s71_s18 }
  0x72   :  { %p7368_p9 = scmp.ne.s32.totalorder %s71_s18, %s7367_s2  ;;  %p7373_p11 = scmp.lt.s32.totalorder %s7367_s2, %s7367_s2 }
  0x74   :  { %p7374_p12 = por %p7373_p11, %p7372_p10 }
  0x76   :  { %p7375_p13 = pnand %p7374_p12, %p7368_p9 }
  0x78   :  { %7378 = shalt.err (!%p7375_p13)
}
  0x79   :  { %73 = dma.hbm_to_vmem [thread:$0]  %s7805_s4, 64, %s71_s18, [#allocation9]  }
  0x7a   :  { %s7379_s30 = scalar_lea.hbm %s7807_s6, 32 }
  0x7b   :  { %p7380_p0 = scmp.ne.s32.totalorder %s7807_s6, %s7379_s30  ;;  %p7383_p1 = scmp.lt.u32.totalorder %s7379_s30, %s7807_s6 }
  0x7d   :  { %p7385_p2 = pnand %p7383_p1, %p7380_p0 }
  0x7f   :  { %7388 = shalt.err (!%p7385_p2)
}
  0x80   :  { %s7389_s13 = scalar_lea.vmem %s93_s20, 32  ;;  %p7394_p4 = scmp.lt.s32.totalorder %s93_s20, %s93_s20 }
  0x81   :  { %p7390_p3 = scmp.ne.s32.totalorder %s93_s20, %s7389_s13  ;;  %p7395_p5 = scmp.lt.s32.totalorder %s7389_s13, %s7389_s13 }
  0x83   :  { %p7396_p6 = por %p7395_p5, %p7394_p4 }
  0x85   :  { %p7397_p7 = pnand %p7396_p6, %p7390_p3 }
  0x87   :  { %7400 = shalt.err (!%p7397_p7)
}
  0x88   :  { %95 = dma.hbm_to_vmem [thread:$0]  %s7807_s6, 32, %s93_s20, [#allocation12]  }
  0x89   :  { %s7473_s15 = smov [#allocation16]   ;;  %s7401_s17 = scalar_lea.hbm %s7809_s8, 16 }
  0x8a   :  { %s114_s5 = sshll.u32 %s7473_s15, 4  ;;  %p7402_p8 = scmp.ne.s32.totalorder %s7809_s8, %s7401_s17  ;;  %s115_s5 = int_to_ptr.vmem [resolvable:$true] %s114_s5 }
  0x8b   :  { %p7405_p9 = scmp.lt.u32.totalorder %s7401_s17, %s7809_s8 }
  0x8d   :  { %p7407_p10 = pnand %p7405_p9, %p7402_p8 }
  0x8f   :  { %7410 = shalt.err (!%p7407_p10)
}
  0x90   :  { %s7411_s25 = scalar_lea.vmem %s115_s5, 16  ;;  %s7415_s6 = scalar_lea.vmem %s115_s5, 32 }
  0x91   :  { %p7412_p11 = scmp.ne.s32.totalorder %s115_s5, %s7411_s25  ;;  %p7416_p12 = scmp.lt.s32.totalorder %s115_s5, %s115_s5 }
  0x92   :  { %p7417_p13 = scmp.lt.s32.totalorder %s7415_s6, %s7411_s25 }
  0x94   :  { %p7418_p0 = por %p7417_p13, %p7416_p12 }
  0x96   :  { %p7419_p1 = pnand %p7418_p0, %p7412_p11 }
  0x98   :  { %7422 = shalt.err (!%p7419_p1)
}
  0x99   :  { %117 = dma.hbm_to_vmem [thread:$0]  %s7809_s8, 16, %s115_s5, [#allocation15]  }
  0x9a   :  { %7445 = dma.done.wait [#allocation3], 448  }
  0x9b   :  { %7446 = vsyncadd [#allocation3], 4294966848 }
  0x9c   :  { %7447 = dma.done.wait [#allocation6], 50304  }
  0x9d   :  { %7448 = vsyncadd [#allocation6], 4294916992 }
  0x9e   :  { %7449 = dma.done.wait [#allocation9], 32832  }
  0x9f   :  { %7450 = vsyncadd [#allocation9], 4294934464 }
  0xa0   :  { %7451 = dma.done.wait [#allocation12], 8224  }
  0xa1   :  { %7452 = vsyncadd [#allocation12], 4294959072 }
  0xa2   :  { %7453 = dma.done.wait [#allocation15], 2064  }
  0xa3   :  { %7454 = vsyncadd [#allocation15], 4294965232  ;;  %v150_v0 = vld [vmem:[#allocation5] sm:$0xff]  ;;  %v7636_v54 = vld [vmem:[#allocation2 + $0x8] sm:$0xff]  ;;  %vm2568_vm0 = vcmask 130048   ;;  %s7475_s8 = smov [#allocation17]  }
  0xa4   :  { %v154_v1 = vld [vmem:[#allocation5 + $0x20] sm:$0xff]  ;;  %v7644_v61 = vcombine.high %v7636_v54, %v7636_v54  ;;  %s5837_s24 = sshll.u32 %s7475_s8, 4  ;;  %s5838_s24 = int_to_ptr.vmem [resolvable:$true] %s5837_s24 }
  0xa5   :  { %v278_v2 = vld [vmem:[#allocation5 + $0x400] sm:$0xff]  ;;  %v5858_v3 = vcombine.high %v150_v0, %v154_v1  ;;  %v5857_v5 = vcombine.low %v150_v0, %v154_v1  ;;  %s7423_s26 = scalar_lea.vmem %s5838_s24, 64  ;;  %p7428_p3 = scmp.lt.s32.totalorder %s5838_s24, %s5838_s24 }
  0xa6   :  { %v282_v4 = vld [vmem:[#allocation5 + $0x420] sm:$0xff]  ;;  %2645 = vmatprep.mubr.bf16.mxu0 %v7644_v61  ;;  %p7424_p2 = scmp.ne.s32.totalorder %s5838_s24, %s7423_s26  ;;  %p7429_p4 = scmp.lt.s32.totalorder %s7423_s26, %s7423_s26 }
  0xa7   :  { %v158_v6 = vld [vmem:[#allocation5 + $0x40] sm:$0xff]  ;;  %v5986_v8 = vcombine.high %v278_v2, %v282_v4  ;;  %v5985_v9 = vcombine.low %v278_v2, %v282_v4  ;;  %2572 = vmatprep.subr.bf16.mxu1 %v5858_v3 }
  0xa8   :  { %v162_v7 = vld [vmem:[#allocation5 + $0x60] sm:$0xff]  ;;  %2573 = vmatpush1.bf16.msra.mxu1 %v5857_v5  ;;  %p7430_p5 = por %p7429_p4, %p7428_p3 }
  0xa9   :  { %v5866_v10 = vcombine.high %v158_v6, %v162_v7  ;;  %v286_v11 = vld [vmem:[#allocation5 + $0x440] sm:$0xff]  ;;  %2613 = vmatprep.subr.bf16.mxu0 %v5986_v8  ;;  %v5865_v18 = vcombine.low %v158_v6, %v162_v7 }
  0xaa   :  { %v290_v12 = vld [vmem:[#allocation5 + $0x460] sm:$0xff]  ;;  %2614 = vmatpush1.bf16.msra.mxu0 %v5985_v9  ;;  %p7431_p6 = pnand %p7430_p5, %p7424_p2 }
  0xab   :  { %v166_v13 = vld [vmem:[#allocation5 + $0x80] sm:$0xff]  ;;  %v5994_v14 = vcombine.high %v286_v11, %v290_v12  ;;  %2574 = vmatprep.subr.bf16.mxu1 %v5866_v10  ;;  %v5993_v19 = vcombine.low %v286_v11, %v290_v12 }
  0xac   :  { %v170_v15 = vld [vmem:[#allocation5 + $0xa0] sm:$0xff]  ;;  %2575 = vmatpush1.bf16.msra.mxu1 %v5865_v18 }
  0xad   :  { %v294_v16 = vld [vmem:[#allocation5 + $0x480] sm:$0xff]  ;;  %v5874_v20 = vcombine.high %v166_v13, %v170_v15  ;;  %2615 = vmatprep.subr.bf16.mxu0 %v5994_v14  ;;  %v5873_v26 = vcombine.low %v166_v13, %v170_v15 }
  0xae   :  { %v298_v17 = vld [vmem:[#allocation5 + $0x4a0] sm:$0xff]  ;;  %2616 = vmatpush1.bf16.msra.mxu0 %v5993_v19 }
  0xaf   :  { %v6002_v21 = vcombine.high %v294_v16, %v298_v17  ;;  %v174_v22 = vld [vmem:[#allocation5 + $0xc0] sm:$0xff]  ;;  %2576 = vmatprep.subr.bf16.mxu1 %v5874_v20  ;;  %v6001_v27 = vcombine.low %v294_v16, %v298_v17 }
  0xb0   :  { %v178_v23 = vld [vmem:[#allocation5 + $0xe0] sm:$0xff]  ;;  %2577 = vmatpush1.bf16.msra.mxu1 %v5873_v26 }
  0xb1   :  { %v302_v24 = vld [vmem:[#allocation5 + $0x4c0] sm:$0xff]  ;;  %v5882_v28 = vcombine.high %v174_v22, %v178_v23  ;;  %2617 = vmatprep.subr.bf16.mxu0 %v6002_v21  ;;  %v5881_v34 = vcombine.low %v174_v22, %v178_v23 }
  0xb2   :  { %v306_v25 = vld [vmem:[#allocation5 + $0x4e0] sm:$0xff]  ;;  %2618 = vmatpush1.bf16.msra.mxu0 %v6001_v27 }
  0xb3   :  { %v6010_v29 = vcombine.high %v302_v24, %v306_v25  ;;  %v182_v30 = vld [vmem:[#allocation5 + $0x100] sm:$0xff]  ;;  %2578 = vmatprep.subr.bf16.mxu1 %v5882_v28  ;;  %v6009_v35 = vcombine.low %v302_v24, %v306_v25 }
  0xb4   :  { %v186_v31 = vld [vmem:[#allocation5 + $0x120] sm:$0xff]  ;;  %2579 = vmatpush1.bf16.msra.mxu1 %v5881_v34 }
  0xb5   :  { %v310_v32 = vld [vmem:[#allocation5 + $0x500] sm:$0xff]  ;;  %v5890_v36 = vcombine.high %v182_v30, %v186_v31  ;;  %2619 = vmatprep.subr.bf16.mxu0 %v6010_v29  ;;  %v5889_v42 = vcombine.low %v182_v30, %v186_v31 }
  0xb6   :  { %v314_v33 = vld [vmem:[#allocation5 + $0x520] sm:$0xff]  ;;  %2620 = vmatpush1.bf16.msra.mxu0 %v6009_v35 }
  0xb7   :  { %v6018_v37 = vcombine.high %v310_v32, %v314_v33  ;;  %v190_v38 = vld [vmem:[#allocation5 + $0x140] sm:$0xff]  ;;  %2580 = vmatprep.subr.bf16.mxu1 %v5890_v36  ;;  %v6017_v43 = vcombine.low %v310_v32, %v314_v33 }
  0xb8   :  { %v194_v39 = vld [vmem:[#allocation5 + $0x160] sm:$0xff]  ;;  %2581 = vmatpush1.bf16.msra.mxu1 %v5889_v42 }
  0xb9   :  { %v318_v40 = vld [vmem:[#allocation5 + $0x540] sm:$0xff]  ;;  %v5898_v44 = vcombine.high %v190_v38, %v194_v39  ;;  %2621 = vmatprep.subr.bf16.mxu0 %v6018_v37  ;;  %v5897_v50 = vcombine.low %v190_v38, %v194_v39 }
  0xba   :  { %v322_v41 = vld [vmem:[#allocation5 + $0x560] sm:$0xff]  ;;  %2622 = vmatpush1.bf16.msra.mxu0 %v6017_v43 }
  0xbb   :  { %v6026_v45 = vcombine.high %v318_v40, %v322_v41  ;;  %v198_v46 = vld [vmem:[#allocation5 + $0x180] sm:$0xff]  ;;  %2582 = vmatprep.subr.bf16.mxu1 %v5898_v44  ;;  %v6025_v51 = vcombine.low %v318_v40, %v322_v41 }
  0xbc   :  { %v202_v47 = vld [vmem:[#allocation5 + $0x1a0] sm:$0xff]  ;;  %2583 = vmatpush1.bf16.msra.mxu1 %v5897_v50 }
  0xbd   :  { %v326_v48 = vld [vmem:[#allocation5 + $0x580] sm:$0xff]  ;;  %v5906_v52 = vcombine.high %v198_v46, %v202_v47  ;;  %2623 = vmatprep.subr.bf16.mxu0 %v6026_v45  ;;  %v5905_v62 = vcombine.low %v198_v46, %v202_v47 }
  0xbe   :  { %v330_v49 = vld [vmem:[#allocation5 + $0x5a0] sm:$0xff]  ;;  %2624 = vmatpush1.bf16.msra.mxu0 %v6025_v51 }
  0xbf   :  { %v7634_v53 = vld [vmem:[#allocation2] sm:$0xff]  ;;  %v6034_v55 = vcombine.high %v326_v48, %v330_v49  ;;  %2584 = vmatprep.subr.bf16.mxu1 %v5906_v52  ;;  %v6033_v63 = vcombine.low %v326_v48, %v330_v49 }
  0xc0   :  { %v206_v56 = vld [vmem:[#allocation5 + $0x1c0] sm:$0xff]  ;;  %v7640_v58 = vcombine.high %v7634_v53, %v7634_v53  ;;  %2585 = vmatpush1.bf16.msra.mxu1 %v5905_v62 }
  0xc1   :  { %v210_v57 = vld [vmem:[#allocation5 + $0x1e0] sm:$0xff]  ;;  %2625 = vmatprep.subr.bf16.mxu0 %v6034_v55 }
  0xc2   :  { %v334_v59 = vld [vmem:[#allocation5 + $0x5c0] sm:$0xff]  ;;  %2604 = vmatprep.mubr.bf16.mxu1 %v7640_v58  ;;  %v5914_v0 = vcombine.high %v206_v56, %v210_v57  ;;  %v5913_v6 = vcombine.low %v206_v56, %v210_v57  ;;  %2626 = vmatpush1.bf16.msra.mxu0 %v6033_v63 }
  0xc3   :  { %v338_v60 = vld [vmem:[#allocation5 + $0x5e0] sm:$0xff] }
  0xc4   :  { %v6042_v1 = vcombine.high %v334_v59, %v338_v60  ;;  %v214_v2 = vld [vmem:[#allocation5 + $0x200] sm:$0xff]  ;;  %2586 = vmatprep.subr.bf16.mxu1 %v5914_v0  ;;  %v6041_v7 = vcombine.low %v334_v59, %v338_v60 }
  0xc5   :  { %v218_v3 = vld [vmem:[#allocation5 + $0x220] sm:$0xff]  ;;  %2587 = vmatpush1.bf16.msra.mxu1 %v5913_v6  ;;  %v151_v6 = vld [vmem:[#allocation5 + $0x8] sm:$0xff] }
  0xc6   :  { %v342_v4 = vld [vmem:[#allocation5 + $0x600] sm:$0xff]  ;;  %v5922_v8 = vcombine.high %v214_v2, %v218_v3  ;;  %2627 = vmatprep.subr.bf16.mxu0 %v6042_v1  ;;  %v5921_v14 = vcombine.low %v214_v2, %v218_v3 }
  0xc7   :  { %v346_v5 = vld [vmem:[#allocation5 + $0x620] sm:$0xff]  ;;  %2628 = vmatpush1.bf16.msra.mxu0 %v6041_v7  ;;  %v155_v7 = vld [vmem:[#allocation5 + $0x28] sm:$0xff] }
  0xc8   :  { %v6050_v9 = vcombine.high %v342_v4, %v346_v5  ;;  %v222_v10 = vld [vmem:[#allocation5 + $0x240] sm:$0xff]  ;;  %2588 = vmatprep.subr.bf16.mxu1 %v5922_v8  ;;  %v6049_v15 = vcombine.low %v342_v4, %v346_v5 }
  0xc9   :  { %v226_v11 = vld [vmem:[#allocation5 + $0x260] sm:$0xff]  ;;  %2589 = vmatpush1.bf16.msra.mxu1 %v5921_v14 }
  0xca   :  { %v350_v12 = vld [vmem:[#allocation5 + $0x640] sm:$0xff]  ;;  %v5930_v16 = vcombine.high %v222_v10, %v226_v11  ;;  %2629 = vmatprep.subr.bf16.mxu0 %v6050_v9  ;;  %v5929_v22 = vcombine.low %v222_v10, %v226_v11 }
  0xcb   :  { %v354_v13 = vld [vmem:[#allocation5 + $0x660] sm:$0xff]  ;;  %2630 = vmatpush1.bf16.msra.mxu0 %v6049_v15  ;;  %v159_v15 = vld [vmem:[#allocation5 + $0x48] sm:$0xff] }
  0xcc   :  { %v6058_v17 = vcombine.high %v350_v12, %v354_v13  ;;  %v230_v18 = vld [vmem:[#allocation5 + $0x280] sm:$0xff]  ;;  %2590 = vmatprep.subr.bf16.mxu1 %v5930_v16  ;;  %v6057_v23 = vcombine.low %v350_v12, %v354_v13  ;;  %v5860_v12 = vcombine.high %v151_v6, %v155_v7  ;;  %v163_v16 = vld [vmem:[#allocation5 + $0x68] sm:$0xff] }
  0xcd   :  { %v234_v19 = vld [vmem:[#allocation5 + $0x2a0] sm:$0xff]  ;;  %2591 = vmatpush1.bf16.msra.mxu1 %v5929_v22 }
  0xce   :  { %v358_v20 = vld [vmem:[#allocation5 + $0x680] sm:$0xff]  ;;  %v5938_v24 = vcombine.high %v230_v18, %v234_v19  ;;  %2631 = vmatprep.subr.bf16.mxu0 %v6058_v17  ;;  %v5937_v30 = vcombine.low %v230_v18, %v234_v19  ;;  %v7650_v17 = vcombine.low %v7634_v53, %v7634_v53  ;;  %v7652_v19 = vld [vmem:[#allocation2 + $0x10] sm:$0xff]  ;;  %v171_v53 = vld [vmem:[#allocation5 + $0xa8] sm:$0xff] }
  0xcf   :  { %v362_v21 = vld [vmem:[#allocation5 + $0x6a0] sm:$0xff]  ;;  %2632 = vmatpush1.bf16.msra.mxu0 %v6057_v23  ;;  %v5868_v23 = vcombine.high %v159_v15, %v163_v16 }
  0xd0   :  { %v6066_v25 = vcombine.high %v358_v20, %v362_v21  ;;  %v238_v26 = vld [vmem:[#allocation5 + $0x2c0] sm:$0xff]  ;;  %2592 = vmatprep.subr.bf16.mxu1 %v5938_v24  ;;  %v6065_v31 = vcombine.low %v358_v20, %v362_v21  ;;  %v5859_v20 = vcombine.low %v151_v6, %v155_v7  ;;  %v7656_v21 = vcombine.low %v7636_v54, %v7636_v54  ;;  %v207_v6 = vld [vmem:[#allocation5 + $0x1c8] sm:$0xff] }
  0xd1   :  { %v242_v27 = vld [vmem:[#allocation5 + $0x2e0] sm:$0xff]  ;;  %2593 = vmatpush1.bf16.msra.mxu1 %v5937_v30  ;;  %v5867_v54 = vcombine.low %v159_v15, %v163_v16  ;;  %v211_v7 = vld [vmem:[#allocation5 + $0x1e8] sm:$0xff] }
  0xd2   :  { %v366_v28 = vld [vmem:[#allocation5 + $0x6c0] sm:$0xff]  ;;  %v5946_v32 = vcombine.high %v238_v26, %v242_v27  ;;  %2633 = vmatprep.subr.bf16.mxu0 %v6066_v25  ;;  %v5945_v38 = vcombine.low %v238_v26, %v242_v27  ;;  %v167_v27 = vld [vmem:[#allocation5 + $0x88] sm:$0xff]  ;;  %v5915_v16 = vcombine.low %v207_v6, %v211_v7 }
  0xd3   :  { %v370_v29 = vld [vmem:[#allocation5 + $0x6e0] sm:$0xff]  ;;  %2634 = vmatpush1.bf16.msra.mxu0 %v6065_v31  ;;  %v5876_v30 = vcombine.high %v167_v27, %v171_v53  ;;  %v219_v15 = vld [vmem:[#allocation5 + $0x228] sm:$0xff] }
  0xd4   :  { %v6074_v33 = vcombine.high %v366_v28, %v370_v29  ;;  %v246_v34 = vld [vmem:[#allocation5 + $0x300] sm:$0xff]  ;;  %2594 = vmatprep.subr.bf16.mxu1 %v5946_v32  ;;  %v6073_v39 = vcombine.low %v366_v28, %v370_v29  ;;  %v7660_v28 = vcombine.high %v7652_v19, %v7652_v19 }
  0xd5   :  { %v250_v35 = vld [vmem:[#allocation5 + $0x320] sm:$0xff]  ;;  %2595 = vmatpush1.bf16.msra.mxu1 %v5945_v38 }
  0xd6   :  { %v374_v36 = vld [vmem:[#allocation5 + $0x700] sm:$0xff]  ;;  %v5954_v40 = vcombine.high %v246_v34, %v250_v35  ;;  %2635 = vmatprep.subr.bf16.mxu0 %v6074_v33  ;;  %v5953_v46 = vcombine.low %v246_v34, %v250_v35  ;;  %v175_v34 = vld [vmem:[#allocation5 + $0xc8] sm:$0xff] }
  0xd7   :  { %v378_v37 = vld [vmem:[#allocation5 + $0x720] sm:$0xff]  ;;  %2636 = vmatpush1.bf16.msra.mxu0 %v6073_v39  ;;  %v179_v35 = vld [vmem:[#allocation5 + $0xe8] sm:$0xff] }
  0xd8   :  { %v6082_v41 = vcombine.high %v374_v36, %v378_v37  ;;  %v254_v42 = vld [vmem:[#allocation5 + $0x340] sm:$0xff]  ;;  %2596 = vmatprep.subr.bf16.mxu1 %v5954_v40  ;;  %v6081_v47 = vcombine.low %v374_v36, %v378_v37  ;;  %v5875_v36 = vcombine.low %v167_v27, %v171_v53  ;;  %v5884_v38 = vcombine.high %v175_v34, %v179_v35 }
  0xd9   :  { %v258_v43 = vld [vmem:[#allocation5 + $0x360] sm:$0xff]  ;;  %2597 = vmatpush1.bf16.msra.mxu1 %v5953_v46 }
  0xda   :  { %v382_v44 = vld [vmem:[#allocation5 + $0x740] sm:$0xff]  ;;  %v5962_v48 = vcombine.high %v254_v42, %v258_v43  ;;  %2637 = vmatprep.subr.bf16.mxu0 %v6082_v41  ;;  %v5961_v56 = vcombine.low %v254_v42, %v258_v43  ;;  %v183_v42 = vld [vmem:[#allocation5 + $0x108] sm:$0xff] }
  0xdb   :  { %v386_v45 = vld [vmem:[#allocation5 + $0x760] sm:$0xff]  ;;  %2638 = vmatpush1.bf16.msra.mxu0 %v6081_v47  ;;  %v187_v43 = vld [vmem:[#allocation5 + $0x128] sm:$0xff] }
  0xdc   :  { %v6090_v49 = vcombine.high %v382_v44, %v386_v45  ;;  %v262_v50 = vld [vmem:[#allocation5 + $0x380] sm:$0xff]  ;;  %2598 = vmatprep.subr.bf16.mxu1 %v5962_v48  ;;  %v6089_v57 = vcombine.low %v382_v44, %v386_v45  ;;  %v5883_v44 = vcombine.low %v175_v34, %v179_v35  ;;  %v5892_v46 = vcombine.high %v183_v42, %v187_v43 }
  0xdd   :  { %v266_v51 = vld [vmem:[#allocation5 + $0x3a0] sm:$0xff]  ;;  %2599 = vmatpush1.bf16.msra.mxu1 %v5961_v56 }
  0xde   :  { %v390_v52 = vld [vmem:[#allocation5 + $0x780] sm:$0xff]  ;;  %v5970_v59 = vcombine.high %v262_v50, %v266_v51  ;;  %2639 = vmatprep.subr.bf16.mxu0 %v6090_v49  ;;  %v5969_v2 = vcombine.low %v262_v50, %v266_v51  ;;  %v191_v50 = vld [vmem:[#allocation5 + $0x148] sm:$0xff] }
  0xdf   :  { %v394_v55 = vld [vmem:[#allocation5 + $0x7a0] sm:$0xff]  ;;  %2640 = vmatpush1.bf16.msra.mxu0 %v6089_v57  ;;  %v195_v51 = vld [vmem:[#allocation5 + $0x168] sm:$0xff] }
  0xe0   :  { %v6098_v60 = vcombine.high %v390_v52, %v394_v55  ;;  %v270_v62 = vld [vmem:[#allocation5 + $0x3c0] sm:$0xff]  ;;  %2600 = vmatprep.subr.bf16.mxu1 %v5970_v59  ;;  %v6097_v3 = vcombine.low %v390_v52, %v394_v55  ;;  %v5891_v52 = vcombine.low %v183_v42, %v187_v43  ;;  %v5900_v56 = vcombine.high %v191_v50, %v195_v51 }
  0xe1   :  { %v274_v63 = vld [vmem:[#allocation5 + $0x3e0] sm:$0xff]  ;;  %2601 = vmatpush1.bf16.msra.mxu1 %v5969_v2 }
  0xe2   :  { %v398_v0 = vld [vmem:[#allocation5 + $0x7c0] sm:$0xff]  ;;  %v5978_v4 = vcombine.high %v270_v62, %v274_v63  ;;  %2641 = vmatprep.subr.bf16.mxu0 %v6098_v60  ;;  %v5977_v10 = vcombine.low %v270_v62, %v274_v63  ;;  %v199_v62 = vld [vmem:[#allocation5 + $0x188] sm:$0xff] }
  0xe3   :  { %v402_v1 = vld [vmem:[#allocation5 + $0x7e0] sm:$0xff]  ;;  %2642 = vmatpush1.bf16.msra.mxu0 %v6097_v3  ;;  %v203_v63 = vld [vmem:[#allocation5 + $0x1a8] sm:$0xff] }
  0xe4   :  { %v6106_v5 = vcombine.high %v398_v0, %v402_v1  ;;  %v406_v8 = vld [vmem:[#allocation5 + $0x800] sm:$0xff]  ;;  %2602 = vmatprep.subr.bf16.mxu1 %v5978_v4  ;;  %v6105_v11 = vcombine.low %v398_v0, %v402_v1  ;;  %v5899_v0 = vcombine.low %v191_v50, %v195_v51  ;;  %v5908_v2 = vcombine.high %v199_v62, %v203_v63 }
  0xe5   :  { %v410_v9 = vld [vmem:[#allocation5 + $0x820] sm:$0xff]  ;;  %2603 = vmatpush1.bf16.msra.mxu1 %v5977_v10  ;;  %v5916_v10 = vcombine.high %v207_v6, %v211_v7 }
  0xe6   :  { %2643 = vmatprep.subr.bf16.mxu0 %v6106_v5  ;;  %v6114_v13 = vcombine.high %v406_v8, %v410_v9  ;;  %v414_v14 = vld [vmem:[#allocation5 + $0x840] sm:$0xff]  ;;  %v6113_v22 = vcombine.low %v406_v8, %v410_v9  ;;  %2736 = vmatprep.subr.bf16.mxu1 %v5860_v12  ;;  %v5907_v8 = vcombine.low %v199_v62, %v203_v63 }
  0xe7   :  { %v418_v18 = vld [vmem:[#allocation5 + $0x860] sm:$0xff]  ;;  %2644 = vmatpush1.bf16.msra.mxu0 %v6105_v11 }
  0xe8   :  { %v422_v24 = vld [vmem:[#allocation5 + $0x880] sm:$0xff]  ;;  %2654 = vmatprep.subr.bf16.mxu0 %v6114_v13  ;;  %v6122_v26 = vcombine.high %v414_v14, %v418_v18  ;;  %2605 = vmatmul.mubr.bf16.vlgmr.msra.gmra.mrb[0].mxu1 %v7650_v17  ;;  %v6121_v29 = vcombine.low %v414_v14, %v418_v18  ;;  %v215_v14 = vld [vmem:[#allocation5 + $0x208] sm:$0xff] }
  0xe9   :  { %v426_v25 = vld [vmem:[#allocation5 + $0x8a0] sm:$0xff]  ;;  %2737 = vmatpush1.bf16.msra.mxu1 %v5859_v20  ;;  %2768 = vmatprep.mubr.bf16.mxu1 %v7640_v58  ;;  %v5924_v20 = vcombine.high %v215_v14, %v219_v15  ;;  %v5923_v27 = vcombine.low %v215_v14, %v219_v15 }
  0xea   :  { %2646 = vmatmul.mubr.bf16.vlgmr.msra.gmra.mrb[0].mxu0 %v7656_v21  ;;  %2738 = vmatprep.subr.bf16.mxu1 %v5868_v23  ;;  %v430_v31 = vld [vmem:[#allocation5 + $0x8c0] sm:$0xff]  ;;  %v6130_v33 = vcombine.high %v422_v24, %v426_v25  ;;  %v6129_v37 = vcombine.low %v422_v24, %v426_v25  ;;  %v223_v25 = vld [vmem:[#allocation5 + $0x248] sm:$0xff] }
  0xeb   :  { %2655 = vmatpush1.bf16.msra.mxu0 %v6113_v22  ;;  %v434_v32 = vld [vmem:[#allocation5 + $0x8e0] sm:$0xff]  ;;  %2686 = vmatprep.mubr.bf16.mxu0 %v7660_v28 }
  0xec   :  { %2656 = vmatprep.subr.bf16.mxu0 %v6122_v26  ;;  %v438_v39 = vld [vmem:[#allocation5 + $0x900] sm:$0xff]  ;;  %v6138_v41 = vcombine.high %v430_v31, %v434_v32  ;;  %v6137_v45 = vcombine.low %v430_v31, %v434_v32  ;;  %v227_v26 = vld [vmem:[#allocation5 + $0x268] sm:$0xff] }
  0xed   :  { %2739 = vmatpush1.bf16.msra.mxu1 %v5867_v54  ;;  %v442_v40 = vld [vmem:[#allocation5 + $0x920] sm:$0xff]  ;;  %v5932_v54 = vcombine.high %v223_v25, %v227_v26  ;;  %v231_v32 = vld [vmem:[#allocation5 + $0x288] sm:$0xff]  ;;  %v5931_v34 = vcombine.low %v223_v25, %v227_v26 }
  0xee   :  { %2740 = vmatprep.subr.bf16.mxu1 %v5876_v30  ;;  %v446_v47 = vld [vmem:[#allocation5 + $0x940] sm:$0xff]  ;;  %v6146_v49 = vcombine.high %v438_v39, %v442_v40  ;;  %v6145_v55 = vcombine.low %v438_v39, %v442_v40  ;;  %v239_v40 = vld [vmem:[#allocation5 + $0x2c8] sm:$0xff] }
  0xef   :  { %2657 = vmatpush1.bf16.msra.mxu0 %v6121_v29  ;;  %v450_v48 = vld [vmem:[#allocation5 + $0x960] sm:$0xff] }
  0xf0   :  { %2658 = vmatprep.subr.bf16.mxu0 %v6130_v33  ;;  %v454_v57 = vld [vmem:[#allocation5 + $0x980] sm:$0xff]  ;;  %v6154_v60 = vcombine.high %v446_v47, %v450_v48  ;;  %v6153_v1 = vcombine.low %v446_v47, %v450_v48  ;;  %v235_v33 = vld [vmem:[#allocation5 + $0x2a8] sm:$0xff] }
  0xf1   :  { %2741 = vmatpush1.bf16.msra.mxu1 %v5875_v36  ;;  %v458_v59 = vld [vmem:[#allocation5 + $0x9a0] sm:$0xff]  ;;  %v5940_v36 = vcombine.high %v231_v32, %v235_v33  ;;  %v5939_v42 = vcombine.low %v231_v32, %v235_v33  ;;  %v247_v48 = vld [vmem:[#allocation5 + $0x308] sm:$0xff]  ;;  %v7668_v32 = vcombine.low %v7652_v19, %v7652_v19  ;;  %v7474_v19 = vmov 0  }
  0xf2   :  { %2742 = vmatprep.subr.bf16.mxu1 %v5884_v38  ;;  %v462_v3 = vld [vmem:[#allocation5 + $0x9c0] sm:$0xff]  ;;  %v6162_v5 = vcombine.high %v454_v57, %v458_v59  ;;  %v6161_v9 = vcombine.low %v454_v57, %v458_v59  ;;  %v255_v59 = vld [vmem:[#allocation5 + $0x348] sm:$0xff] }
  0xf3   :  { %2659 = vmatpush1.bf16.msra.mxu0 %v6129_v37  ;;  %v466_v4 = vld [vmem:[#allocation5 + $0x9e0] sm:$0xff] }
  0xf4   :  { %2660 = vmatprep.subr.bf16.mxu0 %v6138_v41  ;;  %v470_v11 = vld [vmem:[#allocation5 + $0xa00] sm:$0xff]  ;;  %v6170_v13 = vcombine.high %v462_v3, %v466_v4  ;;  %v6169_v18 = vcombine.low %v462_v3, %v466_v4  ;;  %v243_v41 = vld [vmem:[#allocation5 + $0x2e8] sm:$0xff] }
  0xf5   :  { %2743 = vmatpush1.bf16.msra.mxu1 %v5883_v44  ;;  %v474_v12 = vld [vmem:[#allocation5 + $0xa20] sm:$0xff]  ;;  %v5948_v44 = vcombine.high %v239_v40, %v243_v41  ;;  %v5947_v50 = vcombine.low %v239_v40, %v243_v41  ;;  %v263_v4 = vld [vmem:[#allocation5 + $0x388] sm:$0xff] }
  0xf6   :  { %2744 = vmatprep.subr.bf16.mxu1 %v5892_v46  ;;  %v478_v22 = vld [vmem:[#allocation5 + $0xa40] sm:$0xff]  ;;  %v6178_v24 = vcombine.high %v470_v11, %v474_v12  ;;  %v6177_v53 = vcombine.low %v470_v11, %v474_v12  ;;  %v271_v12 = vld [vmem:[#allocation5 + $0x3c8] sm:$0xff] }
  0xf7   :  { %2661 = vmatpush1.bf16.msra.mxu0 %v6137_v45  ;;  %v482_v23 = vld [vmem:[#allocation5 + $0xa60] sm:$0xff]  ;;  %v303_v41 = vld [vmem:[#allocation5 + $0x4c8] sm:$0xff] }
  0xf8   :  { %2662 = vmatprep.subr.bf16.mxu0 %v6146_v49  ;;  %v486_v29 = vld [vmem:[#allocation5 + $0xa80] sm:$0xff]  ;;  %v6186_v31 = vcombine.high %v478_v22, %v482_v23  ;;  %v6185_v35 = vcombine.low %v478_v22, %v482_v23  ;;  %v251_v49 = vld [vmem:[#allocation5 + $0x328] sm:$0xff] }
  0xf9   :  { %2745 = vmatpush1.bf16.msra.mxu1 %v5891_v52  ;;  %v490_v30 = vld [vmem:[#allocation5 + $0xaa0] sm:$0xff]  ;;  %v5956_v52 = vcombine.high %v247_v48, %v251_v49  ;;  %v5955_v62 = vcombine.low %v247_v48, %v251_v49  ;;  %v152_v48 = vld [vmem:[#allocation5 + $0x10] sm:$0xff] }
  0xfa   :  { %2746 = vmatprep.subr.bf16.mxu1 %v5900_v56  ;;  %v494_v37 = vld [vmem:[#allocation5 + $0xac0] sm:$0xff]  ;;  %v6194_v39 = vcombine.high %v486_v29, %v490_v30  ;;  %v6193_v43 = vcombine.low %v486_v29, %v490_v30  ;;  %v535_v30 = vld [vmem:[#allocation5 + $0xc08] sm:$0xff]  ;;  %v156_v49 = vld [vmem:[#allocation5 + $0x30] sm:$0xff] }
  0xfb   :  { %2663 = vmatpush1.bf16.msra.mxu0 %v6145_v55  ;;  %v498_v38 = vld [vmem:[#allocation5 + $0xae0] sm:$0xff] }
  0xfc   :  { %2664 = vmatprep.subr.bf16.mxu0 %v6154_v60  ;;  %v502_v45 = vld [vmem:[#allocation5 + $0xb00] sm:$0xff]  ;;  %v6202_v47 = vcombine.high %v494_v37, %v498_v38  ;;  %v6201_v51 = vcombine.low %v494_v37, %v498_v38  ;;  %v259_v60 = vld [vmem:[#allocation5 + $0x368] sm:$0xff] }
  0xfd   :  { %2747 = vmatpush1.bf16.msra.mxu1 %v5899_v0  ;;  %v506_v46 = vld [vmem:[#allocation5 + $0xb20] sm:$0xff]  ;;  %v5964_v0 = vcombine.high %v255_v59, %v259_v60  ;;  %v5963_v6 = vcombine.low %v255_v59, %v259_v60  ;;  %v299_v37 = vld [vmem:[#allocation5 + $0x4a8] sm:$0xff] }
  0xfe   :  { %2748 = vmatprep.subr.bf16.mxu1 %v5908_v2  ;;  %v510_v55 = vld [vmem:[#allocation5 + $0xb40] sm:$0xff]  ;;  %v6210_v57 = vcombine.high %v502_v45, %v506_v46  ;;  %v6209_v63 = vcombine.low %v502_v45, %v506_v46  ;;  %v311_v45 = vld [vmem:[#allocation5 + $0x508] sm:$0xff] }
  0xff   :  { %2665 = vmatpush1.bf16.msra.mxu0 %v6153_v1  ;;  %v514_v56 = vld [vmem:[#allocation5 + $0xb60] sm:$0xff]  ;;  %v315_v46 = vld [vmem:[#allocation5 + $0x528] sm:$0xff] }
 0x100   :  { %2666 = vmatprep.subr.bf16.mxu0 %v6162_v5  ;;  %v518_v1 = vld [vmem:[#allocation5 + $0xb80] sm:$0xff]  ;;  %v6218_v3 = vcombine.high %v510_v55, %v514_v56  ;;  %v267_v5 = vld [vmem:[#allocation5 + $0x3a8] sm:$0xff]  ;;  %v6217_v7 = vcombine.low %v510_v55, %v514_v56  ;;  %v5862_v55 = vcombine.high %v152_v48, %v156_v49  ;;  %v6019_v59 = vcombine.low %v311_v45, %v315_v46 }
 0x101   :  { %2749 = vmatpush1.bf16.msra.mxu1 %v5907_v8  ;;  %v522_v2 = vld [vmem:[#allocation5 + $0xba0] sm:$0xff]  ;;  %v5972_v8 = vcombine.high %v263_v4, %v267_v5  ;;  %v5971_v14 = vcombine.low %v263_v4, %v267_v5  ;;  %v319_v56 = vld [vmem:[#allocation5 + $0x548] sm:$0xff]  ;;  %v168_v5 = vld [vmem:[#allocation5 + $0x90] sm:$0xff] }
 0x102   :  { %2750 = vmatprep.subr.bf16.mxu1 %v5916_v10  ;;  %v530_v10 = vld [vmem:[#allocation5 + $0xbe0] sm:$0xff]  ;;  %v6226_v11 = vcombine.high %v518_v1, %v522_v2  ;;  %v6225_v15 = vcombine.low %v518_v1, %v522_v2  ;;  %v331_v1 = vld [vmem:[#allocation5 + $0x5a8] sm:$0xff] }
 0x103   :  { %2667 = vmatpush1.bf16.msra.mxu0 %v6161_v9  ;;  %v526_v9 = vld [vmem:[#allocation5 + $0xbc0] sm:$0xff] }
 0x104   :  { %2668 = vmatprep.subr.bf16.mxu0 %v6170_v13  ;;  %v275_v13 = vld [vmem:[#allocation5 + $0x3e8] sm:$0xff]  ;;  %v6234_v22 = vcombine.high %v526_v9, %v530_v10  ;;  %v534_v23 = vld [vmem:[#allocation5 + $0xc00] sm:$0xff]  ;;  %v6233_v26 = vcombine.low %v526_v9, %v530_v10 }
 0x105   :  { %2751 = vmatpush1.bf16.msra.mxu1 %v5915_v16  ;;  %v5980_v16 = vcombine.high %v271_v12, %v275_v13  ;;  %v5979_v25 = vcombine.low %v271_v12, %v275_v13  ;;  %v339_v9 = vld [vmem:[#allocation5 + $0x5e8] sm:$0xff]  ;;  %v176_v13 = vld [vmem:[#allocation5 + $0xd0] sm:$0xff] }
 0x106   :  { %2752 = vmatprep.subr.bf16.mxu1 %v5924_v20  ;;  %v283_v20 = vld [vmem:[#allocation5 + $0x428] sm:$0xff] }
 0x107   :  { %2669 = vmatpush1.bf16.msra.mxu0 %v6169_v18  ;;  %v279_v18 = vld [vmem:[#allocation5 + $0x408] sm:$0xff] }
 0x108   :  { %2670 = vmatprep.subr.bf16.mxu0 %v6178_v24  ;;  %v538_v24 = vld [vmem:[#allocation5 + $0xc20] sm:$0xff]  ;;  %v5987_v33 = vcombine.low %v279_v18, %v283_v20 }
 0x109   :  { %2753 = vmatpush1.bf16.msra.mxu1 %v5923_v27  ;;  %v5988_v27 = vcombine.high %v279_v18, %v283_v20  ;;  %v6242_v29 = vcombine.high %v534_v23, %v538_v24  ;;  %v347_v18 = vld [vmem:[#allocation5 + $0x628] sm:$0xff] }
 0x10a   :  { %2754 = vmatprep.subr.bf16.mxu1 %v5932_v54  ;;  %v291_v54 = vld [vmem:[#allocation5 + $0x468] sm:$0xff] }
 0x10b   :  { %2671 = vmatpush1.bf16.msra.mxu0 %v6177_v53  ;;  %v287_v53 = vld [vmem:[#allocation5 + $0x448] sm:$0xff] }
 0x10c   :  { %2672 = vmatprep.subr.bf16.mxu0 %v6186_v31  ;;  %v539_v31 = vld [vmem:[#allocation5 + $0xc28] sm:$0xff] }
 0x10d   :  { %2755 = vmatpush1.bf16.msra.mxu1 %v5931_v34  ;;  %v5996_v34 = vcombine.high %v287_v53, %v291_v54  ;;  %v6244_v38 = vcombine.high %v535_v30, %v539_v31 }
 0x10e   :  { %2756 = vmatprep.subr.bf16.mxu1 %v5940_v36  ;;  %v295_v36 = vld [vmem:[#allocation5 + $0x488] sm:$0xff] }
 0x10f   :  { %2673 = vmatpush1.bf16.msra.mxu0 %v6185_v35  ;;  %v6241_v35 = vcombine.low %v534_v23, %v538_v24  ;;  %v6004_v40 = vcombine.high %v295_v36, %v299_v37  ;;  %v184_v24 = vld [vmem:[#allocation5 + $0x110] sm:$0xff] }
 0x110   :  { %2674 = vmatprep.subr.bf16.mxu0 %v6194_v39  ;;  %v5995_v39 = vcombine.low %v287_v53, %v291_v54  ;;  %v355_v53 = vld [vmem:[#allocation5 + $0x668] sm:$0xff] }
 0x111   :  { %2757 = vmatpush1.bf16.msra.mxu1 %v5939_v42  ;;  %v307_v42 = vld [vmem:[#allocation5 + $0x4e8] sm:$0xff] }
 0x112   :  { %2758 = vmatprep.subr.bf16.mxu1 %v5948_v44  ;;  %v6012_v44 = vcombine.high %v303_v41, %v307_v42 }
 0x113   :  { %2675 = vmatpush1.bf16.msra.mxu0 %v6193_v43  ;;  %v6003_v43 = vcombine.low %v295_v36, %v299_v37  ;;  %v363_v36 = vld [vmem:[#allocation5 + $0x6a8] sm:$0xff] }
 0x114   :  { %2676 = vmatprep.subr.bf16.mxu0 %v6202_v47  ;;  %v6722_v47 = vld [vmem:[#allocation2 + $0x18] ss:$0 sps:$4 sm:$0xff]  }
 0x115   :  { %2759 = vmatpush1.bf16.msra.mxu1 %v5947_v50  ;;  %v6011_v50 = vcombine.low %v303_v41, %v307_v42  ;;  %v204_v41 = vld [vmem:[#allocation5 + $0x1b0] sm:$0xff] }
 0x116   :  { %2760 = vmatprep.subr.bf16.mxu1 %v5956_v52  ;;  %v6020_v52 = vcombine.high %v311_v45, %v315_v46 }
 0x117   :  { %2677 = vmatpush1.bf16.msra.mxu0 %v6201_v51  ;;  %v6243_v51 = vcombine.low %v535_v30, %v539_v31  ;;  %v192_v31 = vld [vmem:[#allocation5 + $0x150] sm:$0xff] }
 0x118   :  { %2678 = vmatprep.subr.bf16.mxu0 %v6210_v57  ;;  %v323_v57 = vld [vmem:[#allocation5 + $0x568] sm:$0xff] }
 0x119   :  { %2761 = vmatpush1.bf16.msra.mxu1 %v5955_v62  ;;  %v6028_v60 = vcombine.high %v319_v56, %v323_v57  ;;  %v160_v62 = vld [vmem:[#allocation5 + $0x50] sm:$0xff]  ;;  %v6027_v2 = vcombine.low %v319_v56, %v323_v57 }
 0x11a   :  { %2762 = vmatprep.subr.bf16.mxu1 %v5964_v0  ;;  %v327_v0 = vld [vmem:[#allocation5 + $0x588] sm:$0xff] }
 0x11b   :  { %2679 = vmatpush1.bf16.msra.mxu0 %v6209_v63  ;;  %v164_v63 = vld [vmem:[#allocation5 + $0x70] sm:$0xff]  ;;  %v6036_v4 = vcombine.high %v327_v0, %v331_v1  ;;  %v6035_v10 = vcombine.low %v327_v0, %v331_v1  ;;  %v387_v0 = vld [vmem:[#allocation5 + $0x768] sm:$0xff] }
 0x11c   :  { %2680 = vmatprep.subr.bf16.mxu0 %v6218_v3  ;;  %v5861_v3 = vcombine.low %v152_v48, %v156_v49  ;;  %v208_v48 = vld [vmem:[#allocation5 + $0x1d0] sm:$0xff] }
 0x11d   :  { %2763 = vmatpush1.bf16.msra.mxu1 %v5963_v6  ;;  %v172_v6 = vld [vmem:[#allocation5 + $0xb0] sm:$0xff] }
 0x11e   :  { %2764 = vmatprep.subr.bf16.mxu1 %v5972_v8  ;;  %v335_v8 = vld [vmem:[#allocation5 + $0x5c8] sm:$0xff]  ;;  %v212_v49 = vld [vmem:[#allocation5 + $0x1f0] sm:$0xff] }
 0x11f   :  { %2681 = vmatpush1.bf16.msra.mxu0 %v6217_v7  ;;  %v5870_v7 = vcombine.high %v160_v62, %v164_v63  ;;  %v6044_v12 = vcombine.high %v335_v8, %v339_v9  ;;  %v6043_v20 = vcombine.low %v335_v8, %v339_v9  ;;  %v395_v8 = vld [vmem:[#allocation5 + $0x7a8] sm:$0xff] }
 0x120   :  { %2682 = vmatprep.subr.bf16.mxu0 %v6226_v11  ;;  %v5869_v11 = vcombine.low %v160_v62, %v164_v63  ;;  %v5918_v62 = vcombine.high %v208_v48, %v212_v49  ;;  %v383_v63 = vld [vmem:[#allocation5 + $0x748] sm:$0xff] }
 0x121   :  { %2765 = vmatpush1.bf16.msra.mxu1 %v5971_v14  ;;  %v180_v14 = vld [vmem:[#allocation5 + $0xf0] sm:$0xff]  ;;  %v6091_v9 = vcombine.low %v383_v63, %v387_v0 }
 0x122   :  { %2766 = vmatprep.subr.bf16.mxu1 %v5980_v16  ;;  %v343_v16 = vld [vmem:[#allocation5 + $0x608] sm:$0xff] }
 0x123   :  { %2683 = vmatpush1.bf16.msra.mxu0 %v6225_v15  ;;  %v5878_v15 = vcombine.high %v168_v5, %v172_v6  ;;  %v6052_v23 = vcombine.high %v343_v16, %v347_v18  ;;  %v6051_v54 = vcombine.low %v343_v16, %v347_v18  ;;  %v403_v16 = vld [vmem:[#allocation5 + $0x7e8] sm:$0xff] }
 0x124   :  { %2684 = vmatprep.subr.bf16.mxu0 %v6234_v22  ;;  %v5877_v22 = vcombine.low %v168_v5, %v172_v6  ;;  %v228_v5 = vld [vmem:[#allocation5 + $0x270] sm:$0xff] }
 0x125   :  { %2767 = vmatpush1.bf16.msra.mxu1 %v5979_v25  ;;  %v188_v25 = vld [vmem:[#allocation5 + $0x130] sm:$0xff] }
 0x126   :  { %2777 = vmatprep.subr.bf16.mxu1 %v5988_v27  ;;  %v351_v27 = vld [vmem:[#allocation5 + $0x648] sm:$0xff] }
 0x127   :  { %2685 = vmatpush1.bf16.msra.mxu0 %v6233_v26  ;;  %v5886_v26 = vcombine.high %v176_v13, %v180_v14  ;;  %v6060_v30 = vcombine.high %v351_v27, %v355_v53  ;;  %v6059_v37 = vcombine.low %v351_v27, %v355_v53  ;;  %v411_v27 = vld [vmem:[#allocation5 + $0x828] sm:$0xff] }
 0x128   :  { %2695 = vmatprep.subr.bf16.mxu0 %v6242_v29  ;;  %2769 = vmatmul.mubr.bf16.vlgmr.msra.gmra.mrb[4].mxu1 %v7650_v17  ;;  %v5885_v29 = vcombine.low %v176_v13, %v180_v14  ;;  %v236_v13 = vld [vmem:[#allocation5 + $0x2b0] sm:$0xff] }
 0x129   :  { %2778 = vmatpush1.bf16.msra.mxu1 %v5987_v33  ;;  %2809 = vmatprep.mubr.bf16.mxu1 %v7644_v61  ;;  %v196_v33 = vld [vmem:[#allocation5 + $0x170] sm:$0xff] }
 0x12a   :  { %2687 = vmatmul.mubr.bf16.vlgmr.msra.gmra.mrb[0].mxu0 %v7668_v32  ;;  %2779 = vmatprep.subr.bf16.mxu1 %v5996_v34  ;;  %v5894_v34 = vcombine.high %v184_v24, %v188_v25  ;;  %v5902_v42 = vcombine.high %v192_v31, %v196_v33  ;;  %v5901_v46 = vcombine.low %v192_v31, %v196_v33  ;;  %v252_v31 = vld [vmem:[#allocation5 + $0x330] sm:$0xff] }
 0x12b   :  { %2696 = vmatpush1.bf16.msra.mxu0 %v6241_v35  ;;  %2727 = vmatprep.mubr.bf16.mxu0 %v7474_v19  ;;  %v359_v35 = vld [vmem:[#allocation5 + $0x688] sm:$0xff] }
 0x12c   :  { %2859 = vmatprep.subr.bf16.mxu0 %v6244_v38  ;;  %v5893_v38 = vcombine.low %v184_v24, %v188_v25  ;;  %v6067_v45 = vcombine.low %v359_v35, %v363_v36  ;;  %v244_v24 = vld [vmem:[#allocation5 + $0x2f0] sm:$0xff] }
 0x12d   :  { %2780 = vmatpush1.bf16.msra.mxu1 %v5995_v39  ;;  %v6068_v39 = vcombine.high %v359_v35, %v363_v36  ;;  %v419_v35 = vld [vmem:[#allocation5 + $0x868] sm:$0xff] }
 0x12e   :  { %2781 = vmatprep.subr.bf16.mxu1 %v6004_v40  ;;  %v200_v40 = vld [vmem:[#allocation5 + $0x190] sm:$0xff] }
 0x12f   :  { %v5909_v56 = vcombine.low %v200_v40, %v204_v41 }
 0x131   :  { %2782 = vmatpush1.bf16.msra.mxu1 %v6003_v43  ;;  %v367_v43 = vld [vmem:[#allocation5 + $0x6c8] sm:$0xff] }
 0x132   :  { %2783 = vmatprep.subr.bf16.mxu1 %v6012_v44  ;;  %v371_v44 = vld [vmem:[#allocation5 + $0x6e8] sm:$0xff] }
 0x135   :  { %2784 = vmatpush1.bf16.msra.mxu1 %v6011_v50  ;;  %v5910_v50 = vcombine.high %v200_v40, %v204_v41  ;;  %v260_v40 = vld [vmem:[#allocation5 + $0x370] sm:$0xff] }
 0x136   :  { %6249 = vmatmul.mubr.msk.bf16.vlgmr.msra.gmra.mrb[0].mxu0 %vm2568_vm0, %v6722_v47  ;;  %2785 = vmatprep.subr.bf16.mxu1 %v6020_v52  ;;  %v379_v52 = vld [vmem:[#allocation5 + $0x728] sm:$0xff] }
 0x137   :  { %2860 = vmatpush1.bf16.msra.mxu0 %v6243_v51  ;;  %2891 = vmatprep.mubr.bf16.mxu0 %v7474_v19  ;;  %v375_v51 = vld [vmem:[#allocation5 + $0x708] sm:$0xff] }
 0x138   :  { %2900 = vmatprep.subr.bf16.mxu0 %v5862_v55  ;;  %v6075_v55 = vcombine.low %v367_v43, %v371_v44  ;;  %v6084_v57 = vcombine.high %v375_v51, %v379_v52  ;;  %v6083_v1 = vcombine.low %v375_v51, %v379_v52  ;;  %v435_v51 = vld [vmem:[#allocation5 + $0x8e8] sm:$0xff] }
 0x139   :  { %2786 = vmatpush1.bf16.msra.mxu1 %v6019_v59  ;;  %v216_v59 = vld [vmem:[#allocation5 + $0x210] sm:$0xff] }
 0x13a   :  { %2787 = vmatprep.subr.bf16.mxu1 %v6028_v60  ;;  %v220_v60 = vld [vmem:[#allocation5 + $0x230] sm:$0xff] }
 0x13b   :  { %v5926_v6 = vcombine.high %v216_v59, %v220_v60 }
 0x13d   :  { %2788 = vmatpush1.bf16.msra.mxu1 %v6027_v2  ;;  %v5917_v2 = vcombine.low %v208_v48, %v212_v49  ;;  %v268_v48 = vld [vmem:[#allocation5 + $0x3b0] sm:$0xff] }
 0x13e   :  { %6250 = vmatmul.mubr.msk.bf16.vlgmr.msra.gmra.mrb[4].mxu0 %vm2568_vm0, %v6722_v47  ;;  %2789 = vmatprep.subr.bf16.mxu1 %v6036_v4  ;;  %v6076_v47 = vcombine.high %v367_v43, %v371_v44  ;;  %v224_v4 = vld [vmem:[#allocation5 + $0x250] sm:$0xff]  ;;  %v427_v43 = vld [vmem:[#allocation5 + $0x8a8] sm:$0xff] }
 0x13f   :  { %2901 = vmatpush1.bf16.msra.mxu0 %v5861_v3  ;;  %2932 = vmatprep.mubr.bf16.mxu0 %v7640_v58  ;;  %v6092_v3 = vcombine.high %v383_v63, %v387_v0  ;;  %v5934_v14 = vcombine.high %v224_v4, %v228_v5  ;;  %v443_v63 = vld [vmem:[#allocation5 + $0x928] sm:$0xff] }
 0x140   :  { %2902 = vmatprep.subr.bf16.mxu0 %v5870_v7  ;;  %v391_v7 = vld [vmem:[#allocation5 + $0x788] sm:$0xff] }
 0x141   :  { %2790 = vmatpush1.bf16.msra.mxu1 %v6035_v10  ;;  %v5925_v10 = vcombine.low %v216_v59, %v220_v60  ;;  %v6099_v18 = vcombine.low %v391_v7, %v395_v8  ;;  %v276_v59 = vld [vmem:[#allocation5 + $0x3f0] sm:$0xff] }
 0x142   :  { %2791 = vmatprep.subr.bf16.mxu1 %v6044_v12  ;;  %v232_v12 = vld [vmem:[#allocation5 + $0x290] sm:$0xff] }
 0x143   :  { %2903 = vmatpush1.bf16.msra.mxu0 %v5869_v11  ;;  %v6100_v11 = vcombine.high %v391_v7, %v395_v8  ;;  %v5942_v25 = vcombine.high %v232_v12, %v236_v13  ;;  %v451_v7 = vld [vmem:[#allocation5 + $0x968] sm:$0xff] }
 0x144   :  { %2904 = vmatprep.subr.bf16.mxu0 %v5878_v15  ;;  %v399_v15 = vld [vmem:[#allocation5 + $0x7c8] sm:$0xff] }
 0x145   :  { %2792 = vmatpush1.bf16.msra.mxu1 %v6043_v20  ;;  %v5933_v20 = vcombine.low %v224_v4, %v228_v5  ;;  %v6107_v53 = vcombine.low %v399_v15, %v403_v16  ;;  %v284_v4 = vld [vmem:[#allocation5 + $0x430] sm:$0xff] }
 0x146   :  { %2793 = vmatprep.subr.bf16.mxu1 %v6052_v23  ;;  %v240_v23 = vld [vmem:[#allocation5 + $0x2d0] sm:$0xff] }
 0x147   :  { %2905 = vmatpush1.bf16.msra.mxu0 %v5877_v22  ;;  %v6108_v22 = vcombine.high %v399_v15, %v403_v16  ;;  %v5950_v33 = vcombine.high %v240_v23, %v244_v24  ;;  %v459_v15 = vld [vmem:[#allocation5 + $0x9a8] sm:$0xff] }
 0x148   :  { %2906 = vmatprep.subr.bf16.mxu0 %v5886_v26  ;;  %v407_v26 = vld [vmem:[#allocation5 + $0x808] sm:$0xff] }
 0x149   :  { %2794 = vmatpush1.bf16.msra.mxu1 %v6051_v54  ;;  %v5941_v54 = vcombine.low %v232_v12, %v236_v13  ;;  %v6115_v36 = vcombine.low %v407_v26, %v411_v27  ;;  %v292_v12 = vld [vmem:[#allocation5 + $0x470] sm:$0xff] }
 0x14a   :  { %2795 = vmatprep.subr.bf16.mxu1 %v6060_v30  ;;  %v248_v30 = vld [vmem:[#allocation5 + $0x310] sm:$0xff] }
 0x14b   :  { %2907 = vmatpush1.bf16.msra.mxu0 %v5885_v29  ;;  %v6116_v29 = vcombine.high %v407_v26, %v411_v27  ;;  %v5958_v41 = vcombine.high %v248_v30, %v252_v31  ;;  %v467_v26 = vld [vmem:[#allocation5 + $0x9e8] sm:$0xff] }
 0x14c   :  { %2908 = vmatprep.subr.bf16.mxu0 %v5894_v34  ;;  %v415_v34 = vld [vmem:[#allocation5 + $0x848] sm:$0xff] }
 0x14d   :  { %2796 = vmatpush1.bf16.msra.mxu1 %v6059_v37  ;;  %v5949_v37 = vcombine.low %v240_v23, %v244_v24  ;;  %v6123_v44 = vcombine.low %v415_v34, %v419_v35  ;;  %v300_v23 = vld [vmem:[#allocation5 + $0x4b0] sm:$0xff] }
 0x14e   :  { %2797 = vmatprep.subr.bf16.mxu1 %v6068_v39  ;;  %v256_v39 = vld [vmem:[#allocation5 + $0x350] sm:$0xff] }
 0x14f   :  { %2909 = vmatpush1.bf16.msra.mxu0 %v5893_v38  ;;  %v6124_v38 = vcombine.high %v415_v34, %v419_v35  ;;  %v5966_v49 = vcombine.high %v256_v39, %v260_v40 }
 0x150   :  { %2910 = vmatprep.subr.bf16.mxu0 %v5902_v42  ;;  %v423_v42 = vld [vmem:[#allocation5 + $0x888] sm:$0xff] }
 0x151   :  { %2798 = vmatpush1.bf16.msra.mxu1 %v6067_v45  ;;  %v5957_v45 = vcombine.low %v248_v30, %v252_v31  ;;  %v6131_v52 = vcombine.low %v423_v42, %v427_v43  ;;  %v304_v31 = vld [vmem:[#allocation5 + $0x4d0] sm:$0xff] }
 0x152   :  { %2799 = vmatprep.subr.bf16.mxu1 %v6076_v47  ;;  %v264_v47 = vld [vmem:[#allocation5 + $0x390] sm:$0xff] }
 0x153   :  { %2911 = vmatpush1.bf16.msra.mxu0 %v5901_v46  ;;  %v6132_v46 = vcombine.high %v423_v42, %v427_v43  ;;  %v5974_v60 = vcombine.high %v264_v47, %v268_v48 }
 0x154   :  { %2912 = vmatprep.subr.bf16.mxu0 %v5910_v50  ;;  %v431_v50 = vld [vmem:[#allocation5 + $0x8c8] sm:$0xff] }
 0x155   :  { %2800 = vmatpush1.bf16.msra.mxu1 %v6075_v55  ;;  %v5965_v55 = vcombine.low %v256_v39, %v260_v40  ;;  %v6139_v0 = vcombine.low %v431_v50, %v435_v51  ;;  %v312_v39 = vld [vmem:[#allocation5 + $0x510] sm:$0xff] }
 0x156   :  { %2801 = vmatprep.subr.bf16.mxu1 %v6084_v57  ;;  %v272_v57 = vld [vmem:[#allocation5 + $0x3d0] sm:$0xff] }
 0x157   :  { %2913 = vmatpush1.bf16.msra.mxu0 %v5909_v56  ;;  %v6140_v56 = vcombine.high %v431_v50, %v435_v51  ;;  %v5982_v5 = vcombine.high %v272_v57, %v276_v59  ;;  %v316_v40 = vld [vmem:[#allocation5 + $0x530] sm:$0xff]  ;;  %v491_v50 = vld [vmem:[#allocation5 + $0xaa8] sm:$0xff] }
 0x158   :  { %2914 = vmatprep.subr.bf16.mxu0 %v5918_v62  ;;  %v439_v62 = vld [vmem:[#allocation5 + $0x908] sm:$0xff] }
 0x159   :  { %2802 = vmatpush1.bf16.msra.mxu1 %v6083_v1  ;;  %v5973_v1 = vcombine.low %v264_v47, %v268_v48  ;;  %v6147_v8 = vcombine.low %v439_v62, %v443_v63  ;;  %v324_v47 = vld [vmem:[#allocation5 + $0x570] sm:$0xff]  ;;  %v6022_v48 = vcombine.high %v312_v39, %v316_v40 }
 0x15a   :  { %2803 = vmatprep.subr.bf16.mxu1 %v6092_v3  ;;  %v280_v3 = vld [vmem:[#allocation5 + $0x410] sm:$0xff] }
 0x15b   :  { %2915 = vmatpush1.bf16.msra.mxu0 %v5917_v2  ;;  %v6148_v2 = vcombine.high %v439_v62, %v443_v63  ;;  %v5990_v13 = vcombine.high %v280_v3, %v284_v4  ;;  %v499_v62 = vld [vmem:[#allocation5 + $0xae8] sm:$0xff] }
 0x15c   :  { %2916 = vmatprep.subr.bf16.mxu0 %v5926_v6  ;;  %v447_v6 = vld [vmem:[#allocation5 + $0x948] sm:$0xff] }
 0x15d   :  { %2804 = vmatpush1.bf16.msra.mxu1 %v6091_v9  ;;  %v5981_v9 = vcombine.low %v272_v57, %v276_v59  ;;  %v6155_v16 = vcombine.low %v447_v6, %v451_v7  ;;  %v332_v57 = vld [vmem:[#allocation5 + $0x5b0] sm:$0xff] }
 0x15e   :  { %2805 = vmatprep.subr.bf16.mxu1 %v6100_v11  ;;  %v288_v11 = vld [vmem:[#allocation5 + $0x450] sm:$0xff] }
 0x15f   :  { %2917 = vmatpush1.bf16.msra.mxu0 %v5925_v10  ;;  %v6156_v10 = vcombine.high %v447_v6, %v451_v7  ;;  %v5998_v24 = vcombine.high %v288_v11, %v292_v12  ;;  %v340_v6 = vld [vmem:[#allocation5 + $0x5f0] sm:$0xff] }
 0x160   :  { %2918 = vmatprep.subr.bf16.mxu0 %v5934_v14  ;;  %v455_v14 = vld [vmem:[#allocation5 + $0x988] sm:$0xff] }
 0x161   :  { %2806 = vmatpush1.bf16.msra.mxu1 %v6099_v18  ;;  %v5989_v18 = vcombine.low %v280_v3, %v284_v4  ;;  %v6163_v27 = vcombine.low %v455_v14, %v459_v15  ;;  %v507_v3 = vld [vmem:[#allocation5 + $0xb28] sm:$0xff] }
 0x162   :  { %2807 = vmatprep.subr.bf16.mxu1 %v6108_v22  ;;  %v296_v22 = vld [vmem:[#allocation5 + $0x490] sm:$0xff] }
 0x163   :  { %2919 = vmatpush1.bf16.msra.mxu0 %v5933_v20  ;;  %v6164_v20 = vcombine.high %v455_v14, %v459_v15  ;;  %v6006_v34 = vcombine.high %v296_v22, %v300_v23  ;;  %v348_v14 = vld [vmem:[#allocation5 + $0x630] sm:$0xff] }
 0x164   :  { %2920 = vmatprep.subr.bf16.mxu0 %v5942_v25  ;;  %v463_v25 = vld [vmem:[#allocation5 + $0x9c8] sm:$0xff] }
 0x165   :  { %2808 = vmatpush1.bf16.msra.mxu1 %v6107_v53  ;;  %v471_v53 = vld [vmem:[#allocation5 + $0xa08] sm:$0xff]  ;;  %v6172_v30 = vcombine.high %v463_v25, %v467_v26  ;;  %v6171_v35 = vcombine.low %v463_v25, %v467_v26  ;;  %v356_v25 = vld [vmem:[#allocation5 + $0x670] sm:$0xff] }
 0x166   :  { %2818 = vmatprep.subr.bf16.mxu1 %v6116_v29  ;;  %v5997_v29 = vcombine.low %v288_v11, %v292_v12  ;;  %v511_v11 = vld [vmem:[#allocation5 + $0xb48] sm:$0xff] }
 0x167   :  { %2921 = vmatpush1.bf16.msra.mxu0 %v5941_v54  ;;  %v475_v54 = vld [vmem:[#allocation5 + $0xa28] sm:$0xff] }
 0x168   :  { %2922 = vmatprep.subr.bf16.mxu0 %v5950_v33  ;;  %2810 = vmatmul.mubr.bf16.vlgmr.msra.gmra.mrb[4].mxu1 %v7656_v21  ;;  %v308_v33 = vld [vmem:[#allocation5 + $0x4f0] sm:$0xff]  ;;  %v6179_v43 = vcombine.low %v471_v53, %v475_v54  ;;  %v515_v12 = vld [vmem:[#allocation5 + $0xb68] sm:$0xff] }
 0x169   :  { %2819 = vmatpush1.bf16.msra.mxu1 %v6115_v36  ;;  %2850 = vmatprep.mubr.bf16.mxu1 %v7660_v28  ;;  %v479_v36 = vld [vmem:[#allocation5 + $0xa48] sm:$0xff]  ;;  %v6014_v42 = vcombine.high %v304_v31, %v308_v33  ;;  %v6219_v26 = vcombine.low %v511_v11, %v515_v12 }
 0x16a   :  { %2820 = vmatprep.subr.bf16.mxu1 %v6124_v38  ;;  %v6180_v38 = vcombine.high %v471_v53, %v475_v54 }
 0x16b   :  { %2923 = vmatpush1.bf16.msra.mxu0 %v5949_v37  ;;  %v6005_v37 = vcombine.low %v296_v22, %v300_v23  ;;  %v519_v22 = vld [vmem:[#allocation5 + $0xb88] sm:$0xff] }
 0x16c   :  { %2924 = vmatprep.subr.bf16.mxu0 %v5958_v41  ;;  %v483_v41 = vld [vmem:[#allocation5 + $0xa68] sm:$0xff] }
 0x16d   :  { %2821 = vmatpush1.bf16.msra.mxu1 %v6123_v44  ;;  %v6013_v44 = vcombine.low %v304_v31, %v308_v33  ;;  %v6187_v51 = vcombine.low %v479_v36, %v483_v41  ;;  %v523_v23 = vld [vmem:[#allocation5 + $0xba8] sm:$0xff]  ;;  %v360_v31 = vld [vmem:[#allocation5 + $0x690] sm:$0xff] }
 0x16e   :  { %2822 = vmatprep.subr.bf16.mxu1 %v6132_v46  ;;  %v320_v46 = vld [vmem:[#allocation5 + $0x550] sm:$0xff]  ;;  %v6228_v53 = vcombine.high %v519_v22, %v523_v23 }
 0x16f   :  { %2925 = vmatpush1.bf16.msra.mxu0 %v5957_v45  ;;  %v6188_v45 = vcombine.high %v479_v36, %v483_v41  ;;  %v6030_v59 = vcombine.high %v320_v46, %v324_v47  ;;  %v364_v33 = vld [vmem:[#allocation5 + $0x6b0] sm:$0xff] }
 0x170   :  { %2926 = vmatprep.subr.bf16.mxu0 %v5966_v49  ;;  %v487_v49 = vld [vmem:[#allocation5 + $0xa88] sm:$0xff]  ;;  %v372_v41 = vld [vmem:[#allocation5 + $0x6f0] sm:$0xff] }
 0x171   :  { %2823 = vmatpush1.bf16.msra.mxu1 %v6131_v52  ;;  %v6021_v52 = vcombine.low %v312_v39, %v316_v40  ;;  %v6195_v63 = vcombine.low %v487_v49, %v491_v50  ;;  %v157_v39 = vld [vmem:[#allocation5 + $0x38] sm:$0xff]  ;;  %v368_v40 = vld [vmem:[#allocation5 + $0x6d0] sm:$0xff] }
 0x172   :  { %2824 = vmatprep.subr.bf16.mxu1 %v6140_v56  ;;  %v328_v56 = vld [vmem:[#allocation5 + $0x590] sm:$0xff] }
 0x173   :  { %2927 = vmatpush1.bf16.msra.mxu0 %v5965_v55  ;;  %v6196_v55 = vcombine.high %v487_v49, %v491_v50  ;;  %v6038_v4 = vcombine.high %v328_v56, %v332_v57  ;;  %v380_v49 = vld [vmem:[#allocation5 + $0x730] sm:$0xff] }
 0x174   :  { %2928 = vmatprep.subr.bf16.mxu0 %v5974_v60  ;;  %v495_v60 = vld [vmem:[#allocation5 + $0xac8] sm:$0xff] }
 0x175   :  { %2825 = vmatpush1.bf16.msra.mxu1 %v6139_v0  ;;  %v6029_v0 = vcombine.low %v320_v46, %v324_v47  ;;  %v6203_v7 = vcombine.low %v495_v60, %v499_v62  ;;  %v161_v46 = vld [vmem:[#allocation5 + $0x58] sm:$0xff] }
 0x176   :  { %2826 = vmatprep.subr.bf16.mxu1 %v6148_v2  ;;  %v503_v2 = vld [vmem:[#allocation5 + $0xb08] sm:$0xff]  ;;  %v165_v47 = vld [vmem:[#allocation5 + $0x78] sm:$0xff] }
 0x177   :  { %2929 = vmatpush1.bf16.msra.mxu0 %v5973_v1  ;;  %v6204_v1 = vcombine.high %v495_v60, %v499_v62  ;;  %v6211_v15 = vcombine.low %v503_v2, %v507_v3  ;;  %v388_v60 = vld [vmem:[#allocation5 + $0x770] sm:$0xff]  ;;  %v5871_v62 = vcombine.low %v161_v46, %v165_v47 }
 0x178   :  { %2930 = vmatprep.subr.bf16.mxu0 %v5982_v5  ;;  %v336_v5 = vld [vmem:[#allocation5 + $0x5d0] sm:$0xff] }
 0x179   :  { %2827 = vmatpush1.bf16.msra.mxu1 %v6147_v8  ;;  %v6037_v8 = vcombine.low %v328_v56, %v332_v57  ;;  %v169_v56 = vld [vmem:[#allocation5 + $0x98] sm:$0xff] }
 0x17a   :  { %2828 = vmatprep.subr.bf16.mxu1 %v6156_v10  ;;  %v6046_v10 = vcombine.high %v336_v5, %v340_v6  ;;  %v173_v57 = vld [vmem:[#allocation5 + $0xb8] sm:$0xff] }
 0x17b   :  { %2931 = vmatpush1.bf16.msra.mxu0 %v5981_v9  ;;  %v6212_v9 = vcombine.high %v503_v2, %v507_v3  ;;  %v177_v2 = vld [vmem:[#allocation5 + $0xd8] sm:$0xff] }
 0x17c   :  { %2941 = vmatprep.subr.bf16.mxu0 %v5990_v13  ;;  %v344_v13 = vld [vmem:[#allocation5 + $0x610] sm:$0xff]  ;;  %v181_v3 = vld [vmem:[#allocation5 + $0xf8] sm:$0xff] }
 0x17d   :  { %2829 = vmatpush1.bf16.msra.mxu1 %v6155_v16  ;;  %v6045_v16 = vcombine.low %v336_v5, %v340_v6  ;;  %v396_v5 = vld [vmem:[#allocation5 + $0x7b0] sm:$0xff]  ;;  %v5879_v6 = vcombine.low %v169_v56, %v173_v57 }
 0x17e   :  { %2933 = vmatmul.mubr.bf16.vlgmr.msra.gmra.mrb[8].mxu0 %v7650_v17  ;;  %2830 = vmatprep.subr.bf16.mxu1 %v6164_v20  ;;  %v6054_v20 = vcombine.high %v344_v13, %v348_v14 }
 0x17f   :  { %2942 = vmatpush1.bf16.msra.mxu0 %v5989_v18  ;;  %2973 = vmatprep.mubr.bf16.mxu0 %v7644_v61  ;;  %v6220_v18 = vcombine.high %v511_v11, %v515_v12  ;;  %v400_v11 = vld [vmem:[#allocation5 + $0x7d0] sm:$0xff] }
 0x180   :  { %2943 = vmatprep.subr.bf16.mxu0 %v5998_v24  ;;  %v352_v24 = vld [vmem:[#allocation5 + $0x650] sm:$0xff] }
 0x181   :  { %2831 = vmatpush1.bf16.msra.mxu1 %v6163_v27  ;;  %v6053_v27 = vcombine.low %v344_v13, %v348_v14  ;;  %v6062_v54 = vcombine.high %v352_v24, %v356_v25  ;;  %v404_v12 = vld [vmem:[#allocation5 + $0x7f0] sm:$0xff]  ;;  %v5887_v13 = vcombine.low %v177_v2, %v181_v3 }
 0x182   :  { %2832 = vmatprep.subr.bf16.mxu1 %v6172_v30  ;;  %v531_v30 = vld [vmem:[#allocation5 + $0xbe8] sm:$0xff] }
 0x183   :  { %2944 = vmatpush1.bf16.msra.mxu0 %v5997_v29  ;;  %v527_v29 = vld [vmem:[#allocation5 + $0xbc8] sm:$0xff] }
 0x184   :  { %2945 = vmatprep.subr.bf16.mxu0 %v6006_v34  ;;  %v6227_v34 = vcombine.low %v519_v22, %v523_v23  ;;  %v6236_v36 = vcombine.high %v527_v29, %v531_v30  ;;  %v408_v22 = vld [vmem:[#allocation5 + $0x810] sm:$0xff] }
 0x185   :  { %2833 = vmatpush1.bf16.msra.mxu1 %v6171_v35  ;;  %v6061_v35 = vcombine.low %v352_v24, %v356_v25  ;;  %v412_v23 = vld [vmem:[#allocation5 + $0x830] sm:$0xff]  ;;  %v6109_v25 = vcombine.low %v400_v11, %v404_v12 }
 0x186   :  { %2834 = vmatprep.subr.bf16.mxu1 %v6180_v38  ;;  %v153_v38 = vld [vmem:[#allocation5 + $0x18] sm:$0xff] }
 0x187   :  { %2946 = vmatpush1.bf16.msra.mxu0 %v6005_v37  ;;  %v6070_v37 = vcombine.high %v360_v31, %v364_v33  ;;  %v5863_v50 = vcombine.low %v153_v38, %v157_v39 }
 0x188   :  { %2947 = vmatprep.subr.bf16.mxu0 %v6014_v42  ;;  %v6235_v42 = vcombine.low %v527_v29, %v531_v30  ;;  %v416_v29 = vld [vmem:[#allocation5 + $0x850] sm:$0xff] }
 0x189   :  { %2835 = vmatpush1.bf16.msra.mxu1 %v6179_v43  ;;  %v6069_v43 = vcombine.low %v360_v31, %v364_v33  ;;  %v420_v30 = vld [vmem:[#allocation5 + $0x870] sm:$0xff]  ;;  %v6117_v33 = vcombine.low %v408_v22, %v412_v23 }
 0x18a   :  { %2836 = vmatprep.subr.bf16.mxu1 %v6188_v45  ;;  %v6078_v45 = vcombine.high %v368_v40, %v372_v41 }
 0x18b   :  { %2948 = vmatpush1.bf16.msra.mxu0 %v6013_v44  ;;  %v5864_v44 = vcombine.high %v153_v38, %v157_v39  ;;  %v213_v38 = vld [vmem:[#allocation5 + $0x1f8] sm:$0xff] }
 0x18c   :  { %2949 = vmatprep.subr.bf16.mxu0 %v6022_v48  ;;  %v376_v48 = vld [vmem:[#allocation5 + $0x710] sm:$0xff] }
 0x18d   :  { %2837 = vmatpush1.bf16.msra.mxu1 %v6187_v51  ;;  %v6077_v51 = vcombine.low %v368_v40, %v372_v41  ;;  %v424_v40 = vld [vmem:[#allocation5 + $0x890] sm:$0xff] }
 0x18e   :  { %2838 = vmatprep.subr.bf16.mxu1 %v6196_v55  ;;  %v6086_v55 = vcombine.high %v376_v48, %v380_v49  ;;  %v428_v41 = vld [vmem:[#allocation5 + $0x8b0] sm:$0xff] }
 0x18f   :  { %2950 = vmatpush1.bf16.msra.mxu0 %v6021_v52  ;;  %v5872_v52 = vcombine.high %v161_v46, %v165_v47  ;;  %v6134_v47 = vcombine.high %v424_v40, %v428_v41 }
 0x190   :  { %2951 = vmatprep.subr.bf16.mxu0 %v6030_v59  ;;  %v384_v59 = vld [vmem:[#allocation5 + $0x750] sm:$0xff] }
 0x191   :  { %2839 = vmatpush1.bf16.msra.mxu1 %v6195_v63  ;;  %v6085_v63 = vcombine.low %v376_v48, %v380_v49  ;;  %v217_v48 = vld [vmem:[#allocation5 + $0x218] sm:$0xff] }
 0x192   :  { %2840 = vmatprep.subr.bf16.mxu1 %v6204_v1  ;;  %v6094_v1 = vcombine.high %v384_v59, %v388_v60  ;;  %v221_v49 = vld [vmem:[#allocation5 + $0x238] sm:$0xff] }
 0x193   :  { %2952 = vmatpush1.bf16.msra.mxu0 %v6029_v0  ;;  %v5880_v0 = vcombine.high %v169_v56, %v173_v57  ;;  %v5928_v56 = vcombine.high %v217_v48, %v221_v49 }
 0x194   :  { %2953 = vmatprep.subr.bf16.mxu0 %v6038_v4  ;;  %v392_v4 = vld [vmem:[#allocation5 + $0x790] sm:$0xff] }
 0x195   :  { %2841 = vmatpush1.bf16.msra.mxu1 %v6203_v7  ;;  %v6093_v7 = vcombine.low %v384_v59, %v388_v60  ;;  %v6101_v14 = vcombine.low %v392_v4, %v396_v5  ;;  %v225_v59 = vld [vmem:[#allocation5 + $0x258] sm:$0xff] }
 0x196   :  { %2842 = vmatprep.subr.bf16.mxu1 %v6212_v9  ;;  %v6102_v9 = vcombine.high %v392_v4, %v396_v5  ;;  %v229_v60 = vld [vmem:[#allocation5 + $0x278] sm:$0xff] }
 0x197   :  { %2954 = vmatpush1.bf16.msra.mxu0 %v6037_v8  ;;  %v5888_v8 = vcombine.high %v177_v2, %v181_v3  ;;  %v5936_v2 = vcombine.high %v225_v59, %v229_v60  ;;  %v233_v4 = vld [vmem:[#allocation5 + $0x298] sm:$0xff] }
 0x198   :  { %2955 = vmatprep.subr.bf16.mxu0 %v6046_v10  ;;  %v185_v10 = vld [vmem:[#allocation5 + $0x118] sm:$0xff] }
 0x199   :  { %2843 = vmatpush1.bf16.msra.mxu1 %v6211_v15  ;;  %v237_v5 = vld [vmem:[#allocation5 + $0x2b8] sm:$0xff] }
 0x19a   :  { %2844 = vmatprep.subr.bf16.mxu1 %v6220_v18  ;;  %v193_v18 = vld [vmem:[#allocation5 + $0x158] sm:$0xff] }
 0x19b   :  { %2956 = vmatpush1.bf16.msra.mxu0 %v6045_v16  ;;  %v6110_v16 = vcombine.high %v400_v11, %v404_v12  ;;  %v241_v11 = vld [vmem:[#allocation5 + $0x2d8] sm:$0xff] }
 0x19c   :  { %2957 = vmatprep.subr.bf16.mxu0 %v6054_v20  ;;  %v197_v20 = vld [vmem:[#allocation5 + $0x178] sm:$0xff] }
 0x19d   :  { %2845 = vmatpush1.bf16.msra.mxu1 %v6219_v26  ;;  %v5904_v26 = vcombine.high %v193_v18, %v197_v20  ;;  %v5903_v31 = vcombine.low %v193_v18, %v197_v20  ;;  %v245_v12 = vld [vmem:[#allocation5 + $0x2f8] sm:$0xff] }
 0x19e   :  { %2846 = vmatprep.subr.bf16.mxu1 %v6228_v53  ;;  %v201_v53 = vld [vmem:[#allocation5 + $0x198] sm:$0xff]  ;;  %v5952_v18 = vcombine.high %v241_v11, %v245_v12 }
 0x19f   :  { %2958 = vmatpush1.bf16.msra.mxu0 %v6053_v27  ;;  %v6118_v27 = vcombine.high %v408_v22, %v412_v23  ;;  %v249_v22 = vld [vmem:[#allocation5 + $0x318] sm:$0xff] }
 0x1a0   :  { %2959 = vmatprep.subr.bf16.mxu0 %v6062_v54  ;;  %v205_v54 = vld [vmem:[#allocation5 + $0x1b8] sm:$0xff] }
 0x1a1   :  { %2847 = vmatpush1.bf16.msra.mxu1 %v6227_v34  ;;  %v5912_v34 = vcombine.high %v201_v53, %v205_v54  ;;  %v253_v23 = vld [vmem:[#allocation5 + $0x338] sm:$0xff] }
 0x1a2   :  { %2848 = vmatprep.subr.bf16.mxu1 %v6236_v36  ;;  %v6126_v36 = vcombine.high %v416_v29, %v420_v30 }
 0x1a3   :  { %2960 = vmatpush1.bf16.msra.mxu0 %v6061_v35 }
 0x1a4   :  { %2961 = vmatprep.subr.bf16.mxu0 %v6070_v37  ;;  %v209_v37 = vld [vmem:[#allocation5 + $0x1d8] sm:$0xff] }
 0x1a5   :  { %2849 = vmatpush1.bf16.msra.mxu1 %v6235_v42  ;;  %v5920_v46 = vcombine.high %v209_v37, %v213_v38 }
 0x1a6   :  { %3064 = vmatprep.subr.bf16.mxu1 %v5864_v44 }
 0x1a7   :  { %2962 = vmatpush1.bf16.msra.mxu0 %v6069_v43  ;;  %v5911_v43 = vcombine.low %v201_v53, %v205_v54  ;;  %v5960_v53 = vcombine.high %v249_v22, %v253_v23 }
 0x1a8   :  { %2963 = vmatprep.subr.bf16.mxu0 %v6078_v45  ;;  %2851 = vmatmul.mubr.bf16.vlgmr.msra.gmra.mrb[4].mxu1 %v7668_v32  ;;  %v6125_v45 = vcombine.low %v416_v29, %v420_v30  ;;  %v257_v29 = vld [vmem:[#allocation5 + $0x358] sm:$0xff] }
 0x1a9   :  { %3065 = vmatpush1.bf16.msra.mxu1 %v5863_v50  ;;  %3096 = vmatprep.mubr.bf16.mxu1 %v7640_v58  ;;  %v189_v58 = vld [vmem:[#allocation5 + $0x138] sm:$0xff]  ;;  %v432_v50 = vld [vmem:[#allocation5 + $0x8d0] sm:$0xff] }
 0x1aa   :  { %3066 = vmatprep.subr.bf16.mxu1 %v5872_v52  ;;  %v5896_v15 = vcombine.high %v185_v10, %v189_v58  ;;  %v5895_v24 = vcombine.low %v185_v10, %v189_v58  ;;  %v5919_v52 = vcombine.low %v209_v37, %v213_v38  ;;  %v5944_v10 = vcombine.high %v233_v4, %v237_v5  ;;  %v261_v30 = vld [vmem:[#allocation5 + $0x378] sm:$0xff] }
 0x1ab   :  { %2964 = vmatpush1.bf16.msra.mxu0 %v6077_v51  ;;  %v436_v51 = vld [vmem:[#allocation5 + $0x8f0] sm:$0xff]  ;;  %v5968_v37 = vcombine.high %v257_v29, %v261_v30 }
 0x1ac   :  { %2965 = vmatprep.subr.bf16.mxu0 %v6086_v55  ;;  %v6133_v55 = vcombine.low %v424_v40, %v428_v41  ;;  %v6142_v57 = vcombine.high %v432_v50, %v436_v51  ;;  %v265_v40 = vld [vmem:[#allocation5 + $0x398] sm:$0xff] }
 0x1ad   :  { %3067 = vmatpush1.bf16.msra.mxu1 %v5871_v62  ;;  %v440_v62 = vld [vmem:[#allocation5 + $0x910] sm:$0xff]  ;;  %v269_v41 = vld [vmem:[#allocation5 + $0x3b8] sm:$0xff] }
 0x1ae   :  { %3068 = vmatprep.subr.bf16.mxu1 %v5880_v0  ;;  %v5927_v0 = vcombine.low %v217_v48, %v221_v49  ;;  %v273_v48 = vld [vmem:[#allocation5 + $0x3d8] sm:$0xff] }
 0x1af   :  { %2966 = vmatpush1.bf16.msra.mxu0 %v6085_v63  ;;  %v444_v63 = vld [vmem:[#allocation5 + $0x930] sm:$0xff]  ;;  %v277_v49 = vld [vmem:[#allocation5 + $0x3f8] sm:$0xff] }
 0x1b0   :  { %2967 = vmatprep.subr.bf16.mxu0 %v6094_v1  ;;  %v6141_v1 = vcombine.low %v432_v50, %v436_v51  ;;  %v6150_v3 = vcombine.high %v440_v62, %v444_v63  ;;  %v488_v50 = vld [vmem:[#allocation5 + $0xa90] sm:$0xff] }
 0x1b1   :  { %3069 = vmatpush1.bf16.msra.mxu1 %v5879_v6  ;;  %v448_v6 = vld [vmem:[#allocation5 + $0x950] sm:$0xff] }
 0x1b2   :  { %3070 = vmatprep.subr.bf16.mxu1 %v5888_v8  ;;  %v5935_v8 = vcombine.low %v225_v59, %v229_v60  ;;  %v492_v51 = vld [vmem:[#allocation5 + $0xab0] sm:$0xff]  ;;  %v281_v59 = vld [vmem:[#allocation5 + $0x418] sm:$0xff] }
 0x1b3   :  { %2968 = vmatpush1.bf16.msra.mxu0 %v6093_v7  ;;  %v452_v7 = vld [vmem:[#allocation5 + $0x970] sm:$0xff]  ;;  %v285_v60 = vld [vmem:[#allocation5 + $0x438] sm:$0xff] }
 0x1b4   :  { %2969 = vmatprep.subr.bf16.mxu0 %v6102_v9  ;;  %v6149_v9 = vcombine.low %v440_v62, %v444_v63  ;;  %v6158_v58 = vcombine.high %v448_v6, %v452_v7  ;;  %v496_v62 = vld [vmem:[#allocation5 + $0xad0] sm:$0xff] }
 0x1b5   :  { %3071 = vmatpush1.bf16.msra.mxu1 %v5887_v13  ;;  %v456_v13 = vld [vmem:[#allocation5 + $0x990] sm:$0xff] }
 0x1b6   :  { %3072 = vmatprep.subr.bf16.mxu1 %v5896_v15  ;;  %v5943_v15 = vcombine.low %v233_v4, %v237_v5  ;;  %v500_v63 = vld [vmem:[#allocation5 + $0xaf0] sm:$0xff]  ;;  %v289_v4 = vld [vmem:[#allocation5 + $0x458] sm:$0xff] }
 0x1b7   :  { %2970 = vmatpush1.bf16.msra.mxu0 %v6101_v14  ;;  %v460_v14 = vld [vmem:[#allocation5 + $0x9b0] sm:$0xff]  ;;  %v293_v5 = vld [vmem:[#allocation5 + $0x478] sm:$0xff] }
 0x1b8   :  { %2971 = vmatprep.subr.bf16.mxu0 %v6110_v16  ;;  %v6157_v16 = vcombine.low %v448_v6, %v452_v7  ;;  %v6166_v20 = vcombine.high %v456_v13, %v460_v14  ;;  %v504_v6 = vld [vmem:[#allocation5 + $0xb10] sm:$0xff] }
 0x1b9   :  { %3073 = vmatpush1.bf16.msra.mxu1 %v5895_v24  ;;  %v464_v24 = vld [vmem:[#allocation5 + $0x9d0] sm:$0xff] }
 0x1ba   :  { %3074 = vmatprep.subr.bf16.mxu1 %v5904_v26  ;;  %v5951_v26 = vcombine.low %v241_v11, %v245_v12  ;;  %v508_v7 = vld [vmem:[#allocation5 + $0xb30] sm:$0xff]  ;;  %v297_v11 = vld [vmem:[#allocation5 + $0x498] sm:$0xff] }
 0x1bb   :  { %2972 = vmatpush1.bf16.msra.mxu0 %v6109_v25  ;;  %v7684_v35 = vpop.f32.mrb[0].mxu1  ;;  %v468_v25 = vld [vmem:[#allocation5 + $0x9f0] sm:$0xff]  ;;  %v301_v12 = vld [vmem:[#allocation5 + $0x4b8] sm:$0xff] }
 0x1bc   :  { %2982 = vmatprep.subr.bf16.mxu0 %v6118_v27  ;;  %v7686_v39 = vpop.f32.mrb[1].mxu1  ;;  %v6165_v27 = vcombine.low %v456_v13, %v460_v14  ;;  %v6174_v54 = vcombine.high %v464_v24, %v468_v25  ;;  %v512_v13 = vld [vmem:[#allocation5 + $0xb50] sm:$0xff] }
 0x1bd   :  { %v2610_v42 = vpop.f32.mrb[2].mxu1  ;;  %3075 = vmatpush1.bf16.msra.mxu1 %v5903_v31  ;;  %v472_v31 = vld [vmem:[#allocation5 + $0xa10] sm:$0xff] }
 0x1be   :  { %2974 = vmatmul.mubr.bf16.vlgmr.msra.gmra.mrb[8].mxu0 %v7656_v21  ;;  %v2611_v44 = vpop.f32.mrb[3].mxu1  ;;  %3076 = vmatprep.subr.bf16.mxu1 %v5912_v34  ;;  %v5959_v34 = vcombine.low %v249_v22, %v253_v23  ;;  %v480_v42 = vld [vmem:[#allocation5 + $0xa50] sm:$0xff]  ;;  %v305_v22 = vld [vmem:[#allocation5 + $0x4d8] sm:$0xff] }
 0x1bf   :  { %2983 = vmatpush1.bf16.msra.mxu0 %v6117_v33  ;;  %3014 = vmatprep.mubr.bf16.mxu0 %v7660_v28  ;;  %v476_v33 = vld [vmem:[#allocation5 + $0xa30] sm:$0xff]  ;;  %v5967_v44 = vcombine.low %v257_v29, %v261_v30  ;;  %v309_v23 = vld [vmem:[#allocation5 + $0x4f8] sm:$0xff] }
 0x1c0   :  { %2984 = vmatprep.subr.bf16.mxu0 %v6126_v36  ;;  %v6173_v36 = vcombine.low %v464_v24, %v468_v25  ;;  %v6182_v38 = vcombine.high %v472_v31, %v476_v33  ;;  %v516_v14 = vld [vmem:[#allocation5 + $0xb70] sm:$0xff] }
 0x1c1   :  { %3077 = vmatpush1.bf16.msra.mxu1 %v5911_v43  ;;  %v484_v43 = vld [vmem:[#allocation5 + $0xa70] sm:$0xff] }
 0x1c2   :  { %3078 = vmatprep.subr.bf16.mxu1 %v5920_v46  ;;  %v5976_v46 = vcombine.high %v265_v40, %v269_v41  ;;  %v520_v24 = vld [vmem:[#allocation5 + $0xb90] sm:$0xff] }
 0x1c3   :  { %2985 = vmatpush1.bf16.msra.mxu0 %v6125_v45  ;;  %v6181_v45 = vcombine.low %v472_v31, %v476_v33  ;;  %v524_v25 = vld [vmem:[#allocation5 + $0xbb0] sm:$0xff]  ;;  %v6015_v31 = vcombine.low %v305_v22, %v309_v23 }
 0x1c4   :  { %2986 = vmatprep.subr.bf16.mxu0 %v6134_v47  ;;  %v6190_v47 = vcombine.high %v480_v42, %v484_v43  ;;  %v528_v29 = vld [vmem:[#allocation5 + $0xbd0] sm:$0xff]  ;;  %v6229_v33 = vcombine.low %v520_v24, %v524_v25 }
 0x1c5   :  { %3079 = vmatpush1.bf16.msra.mxu1 %v5919_v52  ;;  %v5975_v52 = vcombine.low %v265_v40, %v269_v41  ;;  %v532_v30 = vld [vmem:[#allocation5 + $0xbf0] sm:$0xff] }
 0x1c6   :  { %3080 = vmatprep.subr.bf16.mxu1 %v5928_v56  ;;  %v5984_v56 = vcombine.high %v273_v48, %v277_v49  ;;  %v536_v40 = vld [vmem:[#allocation5 + $0xc10] sm:$0xff] }
 0x1c7   :  { %2987 = vmatpush1.bf16.msra.mxu0 %v6133_v55  ;;  %v6189_v55 = vcombine.low %v480_v42, %v484_v43  ;;  %v540_v41 = vld [vmem:[#allocation5 + $0xc30] sm:$0xff]  ;;  %v6237_v43 = vcombine.low %v528_v29, %v532_v30 }
 0x1c8   :  { %2988 = vmatprep.subr.bf16.mxu0 %v6142_v57  ;;  %v6198_v57 = vcombine.high %v488_v50, %v492_v51 }
 0x1c9   :  { %3081 = vmatpush1.bf16.msra.mxu1 %v5927_v0  ;;  %v5983_v0 = vcombine.low %v273_v48, %v277_v49  ;;  %v6246_v48 = vcombine.high %v536_v40, %v540_v41  ;;  %v537_v49 = vld [vmem:[#allocation5 + $0xc18] sm:$0xff] }
 0x1ca   :  { %3082 = vmatprep.subr.bf16.mxu1 %v5936_v2  ;;  %v5992_v2 = vcombine.high %v281_v59, %v285_v60 }
 0x1cb   :  { %2989 = vmatpush1.bf16.msra.mxu0 %v6141_v1  ;;  %v6197_v1 = vcombine.low %v488_v50, %v492_v51  ;;  %v541_v50 = vld [vmem:[#allocation5 + $0xc38] sm:$0xff] }
 0x1cc   :  { %2990 = vmatprep.subr.bf16.mxu0 %v6150_v3  ;;  %v6206_v3 = vcombine.high %v496_v62, %v500_v63 }
 0x1cd   :  { %3083 = vmatpush1.bf16.msra.mxu1 %v5935_v8  ;;  %v5991_v8 = vcombine.low %v281_v59, %v285_v60  ;;  %v341_v59 = vld [vmem:[#allocation5 + $0x5f8] sm:$0xff]  ;;  %v6248_v60 = vcombine.high %v537_v49, %v541_v50 }
 0x1ce   :  { %3084 = vmatprep.subr.bf16.mxu1 %v5944_v10  ;;  %v6000_v10 = vcombine.high %v289_v4, %v293_v5 }
 0x1cf   :  { %2991 = vmatpush1.bf16.msra.mxu0 %v6149_v9  ;;  %v6205_v9 = vcombine.low %v496_v62, %v500_v63 }
 0x1d0   :  { %2992 = vmatprep.subr.bf16.mxu0 %v6158_v58  ;;  %v6214_v58 = vcombine.high %v504_v6, %v508_v7 }
 0x1d1   :  { %3085 = vmatpush1.bf16.msra.mxu1 %v5943_v15  ;;  %v5999_v15 = vcombine.low %v289_v4, %v293_v5 }
 0x1d2   :  { %3086 = vmatprep.subr.bf16.mxu1 %v5952_v18  ;;  %v6008_v18 = vcombine.high %v297_v11, %v301_v12 }
 0x1d3   :  { %2993 = vmatpush1.bf16.msra.mxu0 %v6157_v16  ;;  %v6213_v16 = vcombine.low %v504_v6, %v508_v7 }
 0x1d4   :  { %2994 = vmatprep.subr.bf16.mxu0 %v6166_v20  ;;  %v6222_v20 = vcombine.high %v512_v13, %v516_v14 }
 0x1d5   :  { %3087 = vmatpush1.bf16.msra.mxu1 %v5951_v26  ;;  %v6007_v26 = vcombine.low %v297_v11, %v301_v12  ;;  %v6247_v11 = vcombine.low %v537_v49, %v541_v50  ;;  %v6729_v49 = vld [vmem:[#allocation8 + $0x40] ss:$16 sps:$4 sm:$0xff]  }
 0x1d6   :  { %3088 = vmatprep.subr.bf16.mxu1 %v5960_v53  ;;  %v6230_v53 = vcombine.high %v520_v24, %v524_v25 }
 0x1d7   :  { %2995 = vmatpush1.bf16.msra.mxu0 %v6165_v27  ;;  %v6016_v27 = vcombine.high %v305_v22, %v309_v23  ;;  %v7223_v23 = vld [vmem:[#allocation2 + $0x18] ss:$0 sps:$4 sm:$0xff]  }
 0x1d8   :  { %2996 = vmatprep.subr.bf16.mxu0 %v6174_v54  ;;  %v313_v54 = vld [vmem:[#allocation5 + $0x518] sm:$0xff] }
 0x1d9   :  { %3089 = vmatpush1.bf16.msra.mxu1 %v5959_v34 }
 0x1da   :  { %3090 = vmatprep.subr.bf16.mxu1 %v5968_v37  ;;  %v321_v37 = vld [vmem:[#allocation5 + $0x558] sm:$0xff] }
 0x1db   :  { %2997 = vmatpush1.bf16.msra.mxu0 %v6173_v36  ;;  %v6238_v36 = vcombine.high %v528_v29, %v532_v30  ;;  %v6723_v29 = vld [vmem:[#allocation8] ss:$16 sps:$4 sm:$0xff]  }
 0x1dc   :  { %2998 = vmatprep.subr.bf16.mxu0 %v6182_v38  ;;  %v325_v38 = vld [vmem:[#allocation5 + $0x578] sm:$0xff] }
 0x1dd   :  { %3091 = vmatpush1.bf16.msra.mxu1 %v5967_v44  ;;  %v6032_v44 = vcombine.high %v321_v37, %v325_v38  ;;  %v6031_v51 = vcombine.low %v321_v37, %v325_v38  ;;  %v381_v37 = vld [vmem:[#allocation5 + $0x738] sm:$0xff] }
 0x1de   :  { %3092 = vmatprep.subr.bf16.mxu1 %v5976_v46  ;;  %v329_v46 = vld [vmem:[#allocation5 + $0x598] sm:$0xff] }
 0x1df   :  { %2999 = vmatpush1.bf16.msra.mxu0 %v6181_v45  ;;  %v544_v45 = vlaneseq }
 0x1e0   :  { %3000 = vmatprep.subr.bf16.mxu0 %v6190_v47  ;;  %v333_v47 = vld [vmem:[#allocation5 + $0x5b8] sm:$0xff] }
 0x1e1   :  { %3093 = vmatpush1.bf16.msra.mxu1 %v5975_v52  ;;  %v6040_v52 = vcombine.high %v329_v46, %v333_v47  ;;  %v6039_v62 = vcombine.low %v329_v46, %v333_v47  ;;  %v389_v46 = vld [vmem:[#allocation5 + $0x778] sm:$0xff] }
 0x1e2   :  { %3094 = vmatprep.subr.bf16.mxu1 %v5984_v56  ;;  %v7692_v56 = vshrl.u32 %v544_v45, 7  ;;  %v385_v45 = vld [vmem:[#allocation5 + $0x758] sm:$0xff] }
 0x1e3   :  { %3001 = vmatpush1.bf16.msra.mxu0 %v6189_v55  ;;  %v6245_v55 = vcombine.low %v536_v40, %v540_v41  ;;  %v6726_v41 = vld [vmem:[#allocation8 + $0x20] ss:$16 sps:$4 sm:$0xff]   ;;  %v6096_v50 = vcombine.high %v385_v45, %v389_v46 }
 0x1e4   :  { %3002 = vmatprep.subr.bf16.mxu0 %v6198_v57  ;;  %v337_v57 = vld [vmem:[#allocation5 + $0x5d8] sm:$0xff]  ;;  %v7702_v4 = vsub.s32 1, %v7692_v56 }
 0x1e5   :  { %3095 = vmatpush1.bf16.msra.mxu1 %v5983_v0  ;;  %v6048_v63 = vcombine.high %v337_v57, %v341_v59  ;;  %v7696_v0 = vsub.s32 0, %v7692_v56  ;;  %v6047_v5 = vcombine.low %v337_v57, %v341_v59  ;;  %v6095_v57 = vcombine.low %v385_v45, %v389_v46  ;;  %v6732_v59 = vld [vmem:[#allocation8 + $0x60] ss:$16 sps:$4 sm:$0xff]  }
 0x1e6   :  { %3105 = vmatprep.subr.bf16.mxu1 %v5992_v2  ;;  %v349_v2 = vld [vmem:[#allocation5 + $0x638] sm:$0xff] }
 0x1e7   :  { %3003 = vmatpush1.bf16.msra.mxu0 %v6197_v1  ;;  %v345_v1 = vld [vmem:[#allocation5 + $0x618] sm:$0xff] }
 0x1e8   :  { %3004 = vmatprep.subr.bf16.mxu0 %v6206_v3  ;;  %3097 = vmatmul.mubr.bf16.vlgmr.msra.gmra.mrb[8].mxu1 %v7650_v17  ;;  %v6221_v17 = vcombine.low %v512_v13, %v516_v14  ;;  %v7699_v3 = vld [vmem:[#allocation7] sm:$0xff]  ;;  %v6056_v6 = vcombine.high %v345_v1, %v349_v2  ;;  %v6725_v14 = vld [vmem:[#allocation8 + $0x4] ss:$16 sps:$4 sm:$0xff]  }
 0x1e9   :  { %3106 = vmatpush1.bf16.msra.mxu1 %v5991_v8  ;;  %3137 = vmatprep.mubr.bf16.mxu1 %v7644_v61  ;;  %v317_v61 = vld [vmem:[#allocation5 + $0x538] sm:$0xff]  ;;  %v547_v7 = vrot.slane %v7699_v3, %v7696_v0 }
 0x1ea   :  { %3107 = vmatprep.subr.bf16.mxu1 %v6000_v10  ;;  %v6024_v34 = vcombine.high %v313_v54, %v317_v61  ;;  %v6023_v42 = vcombine.low %v313_v54, %v317_v61  ;;  %v353_v8 = vld [vmem:[#allocation5 + $0x658] sm:$0xff]  ;;  %v551_v10 = vrot.slane %v7699_v3, %v7702_v4 }
 0x1eb   :  { %3005 = vmatpush1.bf16.msra.mxu0 %v6205_v9  ;;  %v357_v9 = vld [vmem:[#allocation5 + $0x678] sm:$0xff]  ;;  %v2607_v13 = vadd.f32 %v7684_v35, %v547_v7 }
 0x1ec   :  { %3006 = vmatprep.subr.bf16.mxu0 %v6214_v58  ;;  %v6055_v58 = vcombine.low %v345_v1, %v349_v2  ;;  %v6064_v12 = vcombine.high %v353_v8, %v357_v9  ;;  %v6063_v25 = vcombine.low %v353_v8, %v357_v9  ;;  %v373_v54 = vld [vmem:[#allocation5 + $0x6f8] sm:$0xff] }
 0x1ed   :  { %3108 = vmatpush1.bf16.msra.mxu1 %v5999_v15  ;;  %v361_v15 = vld [vmem:[#allocation5 + $0x698] sm:$0xff] }
 0x1ee   :  { %3109 = vmatprep.subr.bf16.mxu1 %v6008_v18  ;;  %v2609_v18 = vadd.f32 %v7686_v39, %v551_v10  ;;  %v405_v1 = vld [vmem:[#allocation5 + $0x7f8] sm:$0xff] }
 0x1ef   :  { %3007 = vmatpush1.bf16.msra.mxu0 %v6213_v16  ;;  %v365_v16 = vld [vmem:[#allocation5 + $0x6b8] sm:$0xff] }
 0x1f0   :  { %3008 = vmatprep.subr.bf16.mxu0 %v6222_v20  ;;  %v6071_v61 = vcombine.low %v361_v15, %v365_v16  ;;  %v6740_v7 = vld [vmem:[#allocation8 + $0xa4] ss:$16 sps:$4 sm:$0xff]  }
 0x1f1   :  { %3110 = vmatpush1.bf16.msra.mxu1 %v6007_v26  ;;  %v409_v8 = vld [vmem:[#allocation5 + $0x818] sm:$0xff] }
 0x1f2   :  { %3111 = vmatprep.subr.bf16.mxu1 %v6016_v27  ;;  %v6072_v27 = vcombine.high %v361_v15, %v365_v16  ;;  %v413_v9 = vld [vmem:[#allocation5 + $0x838] sm:$0xff] }
 0x1f3   :  { %3009 = vmatpush1.bf16.msra.mxu0 %v6221_v17  ;;  %v6119_v15 = vcombine.low %v409_v8, %v413_v9  ;;  %v6741_v16 = vld [vmem:[#allocation8 + $0xc0] ss:$16 sps:$4 sm:$0xff]  }
 0x1f4   :  { %3010 = vmatprep.subr.bf16.mxu0 %v6230_v53  ;;  %v369_v53 = vld [vmem:[#allocation5 + $0x6d8] sm:$0xff] }
 0x1f5   :  { %3112 = vmatpush1.bf16.msra.mxu1 %v6015_v31  ;;  %v457_v45 = vld [vmem:[#allocation5 + $0x998] sm:$0xff] }
 0x1f6   :  { %3113 = vmatprep.subr.bf16.mxu1 %v6024_v34  ;;  %v6080_v34 = vcombine.high %v369_v53, %v373_v54  ;;  %v461_v46 = vld [vmem:[#allocation5 + $0x9b8] sm:$0xff] }
 0x1f7   :  { %3011 = vmatpush1.bf16.msra.mxu0 %v6229_v33  ;;  %v6728_v33 = vld [vmem:[#allocation8 + $0x24] ss:$16 sps:$4 sm:$0xff]  }
 0x1f8   :  { %3012 = vmatprep.subr.bf16.mxu0 %v6238_v36  ;;  %v377_v36 = vld [vmem:[#allocation5 + $0x718] sm:$0xff] }
 0x1f9   :  { %3114 = vmatpush1.bf16.msra.mxu1 %v6023_v42  ;;  %v6088_v42 = vcombine.high %v377_v36, %v381_v37 }
 0x1fa   :  { %3115 = vmatprep.subr.bf16.mxu1 %v6032_v44  ;;  %v6731_v44 = vld [vmem:[#allocation8 + $0x44] ss:$16 sps:$4 sm:$0xff]  }
 0x1fb   :  { %3013 = vmatpush1.bf16.msra.mxu0 %v6237_v43 }
 0x1fc   :  { %3023 = vmatprep.subr.bf16.mxu0 %v6246_v48  ;;  %v6087_v48 = vcombine.low %v377_v36, %v381_v37  ;;  %v6755_v36 = vld [vmem:[#allocation8 + $0x144] ss:$16 sps:$4 sm:$0xff]  }
 0x1fd   :  { %3116 = vmatpush1.bf16.msra.mxu1 %v6031_v51  ;;  %v6734_v51 = vld [vmem:[#allocation8 + $0x64] ss:$16 sps:$4 sm:$0xff]  }
 0x1fe   :  { %3015 = vmatmul.mubr.bf16.vlgmr.msra.gmra.mrb[8].mxu0 %v7668_v32  ;;  %3117 = vmatprep.subr.bf16.mxu1 %v6040_v52  ;;  %v393_v52 = vld [vmem:[#allocation5 + $0x798] sm:$0xff] }
 0x1ff   :  { %3024 = vmatpush1.bf16.msra.mxu0 %v6245_v55  ;;  %3055 = vmatprep.mubr.bf16.mxu0 %v7474_v19  ;;  %v397_v55 = vld [vmem:[#allocation5 + $0x7b8] sm:$0xff] }
 0x200   :  { %3187 = vmatprep.subr.bf16.mxu0 %v6248_v60  ;;  %v6104_v60 = vcombine.high %v393_v52, %v397_v55  ;;  %v6103_v2 = vcombine.low %v393_v52, %v397_v55  ;;  %v449_v37 = vld [vmem:[#allocation5 + $0x958] sm:$0xff]  ;;  %v6167_v55 = vcombine.low %v457_v45, %v461_v46 }
 0x201   :  { %3118 = vmatpush1.bf16.msra.mxu1 %v6039_v62  ;;  %v6737_v62 = vld [vmem:[#allocation8 + $0x84] ss:$16 sps:$4 sm:$0xff]  }
 0x202   :  { %3119 = vmatprep.subr.bf16.mxu1 %v6048_v63  ;;  %v401_v63 = vld [vmem:[#allocation5 + $0x7d8] sm:$0xff] }
 0x203   :  { %v6111_v10 = vcombine.low %v401_v63, %v405_v1  ;;  %v469_v52 = vld [vmem:[#allocation5 + $0x9f8] sm:$0xff] }
 0x205   :  { %3120 = vmatpush1.bf16.msra.mxu1 %v6047_v5  ;;  %v6735_v5 = vld [vmem:[#allocation8 + $0x80] ss:$16 sps:$4 sm:$0xff]  }
 0x206   :  { %3121 = vmatprep.subr.bf16.mxu1 %v6056_v6  ;;  %v6112_v6 = vcombine.high %v401_v63, %v405_v1  ;;  %v477_v63 = vld [vmem:[#allocation5 + $0xa38] sm:$0xff] }
 0x209   :  { %v2729_v20 = vpop.f32.mrb[0].mxu0  ;;  %3122 = vmatpush1.bf16.msra.mxu1 %v6055_v58  ;;  %v6738_v58 = vld [vmem:[#allocation8 + $0xa0] ss:$16 sps:$4 sm:$0xff]  }
 0x20a   :  { %v7710_v22 = vadd.f32 %v2729_v20, %v2607_v13  ;;  %6251 = vmatmul.mubr.msk.bf16.vlgmr.msra.gmra.mrb[8].mxu0 %vm2568_vm0, %v7223_v23  ;;  %v2731_v24 = vpop.f32.mrb[1].mxu0  ;;  %3123 = vmatprep.subr.bf16.mxu1 %v6064_v12  ;;  %v6743_v12 = vld [vmem:[#allocation8 + $0xc4] ss:$16 sps:$4 sm:$0xff]  }
 0x20b   :  { %v6616_v26 = vadd.f32 %v2731_v24, %v2609_v18  ;;  %v2733_v17 = vpop.f32.mrb[2].mxu0  ;;  %3188 = vmatpush1.bf16.msra.mxu0 %v6247_v11  ;;  %3219 = vmatprep.mubr.bf16.mxu0 %v7474_v19  ;;  %v6079_v19 = vcombine.low %v369_v53, %v373_v54  ;;  %v6120_v11 = vcombine.high %v409_v8, %v413_v9  ;;  %v417_v13 = vld [vmem:[#allocation5 + $0x858] sm:$0xff] }
 0x20c   :  { %v2734_v35 = vpop.f32.mrb[3].mxu0  ;;  %4818 = vmatprep.subr.bf16.mxu0 %v6725_v14  ;;  %v421_v14 = vld [vmem:[#allocation5 + $0x878] sm:$0xff]  ;;  %vm3228_vm2 = vcmp.gt.f32.partialorder %v7710_v22, 0.0 }
 0x20d   :  { %vm3229_vm1 = vcmp.gt.f32.partialorder %v6616_v26, 0.0  ;;  %v3237_v39 = vmul.f32 0.2, %v6616_v26  ;;  %3124 = vmatpush1.bf16.msra.mxu1 %v6063_v25  ;;  %v6128_v18 = vcombine.high %v417_v13, %v421_v14  ;;  %v6746_v20 = vld [vmem:[#allocation8 + $0xe4] ss:$16 sps:$4 sm:$0xff]   ;;  %v6127_v25 = vcombine.low %v417_v13, %v421_v14 }
 0x20e   :  { %3125 = vmatprep.subr.bf16.mxu1 %v6072_v27  ;;  %v429_v24 = vld [vmem:[#allocation5 + $0x8b8] sm:$0xff]  ;;  %v3236_v14 = vmul.f32 0.2, %v7710_v22 }
 0x20f   :  { %v3245_v30 = vsel %vm3229_vm1, %v6616_v26, %v3237_v39  ;;  %v6744_v26 = vld [vmem:[#allocation8 + $0xe0] ss:$16 sps:$4 sm:$0xff]   ;;  %v6749_v27 = vld [vmem:[#allocation8 + $0x104] ss:$16 sps:$4 sm:$0xff]  }
 0x210   :  { %v7714_v31 = vpack.c.bf16 %v3245_v30, %v3245_v30  ;;  %v433_v35 = vld [vmem:[#allocation5 + $0x8d8] sm:$0xff] }
 0x211   :  { %v7716_v38 = vpop.f32.mrb[4].mxu0  ;;  %3126 = vmatpush1.bf16.msra.mxu1 %v6071_v61  ;;  %v437_v39 = vld [vmem:[#allocation5 + $0x8f8] sm:$0xff] }
 0x212   :  { %6252 = vmatmul.mubr.msk.bf16.vlgmr.msra.gmra.mrb[12].mxu0 %vm2568_vm0, %v7223_v23  ;;  %v7719_v40 = vpop.f32.mrb[5].mxu0  ;;  %3127 = vmatprep.subr.bf16.mxu1 %v6080_v34  ;;  %v425_v23 = vld [vmem:[#allocation5 + $0x898] sm:$0xff]  ;;  %v6144_v61 = vcombine.high %v433_v35, %v437_v39 }
 0x213   :  { %4819 = vmatpush1.bf16.msra.mxu0 %v6723_v29  ;;  %4850 = vmatprep.mubr.bf16.mxu0 %v7714_v31  ;;  %v2897_v43 = vpop.f32.mrb[6].mxu0  ;;  %v6136_v17 = vcombine.high %v425_v23, %v429_v24  ;;  %v6135_v53 = vcombine.low %v425_v23, %v429_v24  ;;  %v6747_v54 = vld [vmem:[#allocation8 + $0x100] ss:$16 sps:$4 sm:$0xff]  }
 0x214   :  { %4820 = vmatprep.subr.bf16.mxu0 %v6728_v33  ;;  %v2898_v47 = vpop.f32.mrb[7].mxu0  ;;  %v441_v29 = vld [vmem:[#allocation5 + $0x918] sm:$0xff] }
 0x215   :  { %3128 = vmatpush1.bf16.msra.mxu1 %v6079_v19  ;;  %v445_v30 = vld [vmem:[#allocation5 + $0x938] sm:$0xff] }
 0x216   :  { %3129 = vmatprep.subr.bf16.mxu1 %v6088_v42  ;;  %v6750_v33 = vld [vmem:[#allocation8 + $0x120] ss:$16 sps:$4 sm:$0xff]   ;;  %v6152_v34 = vcombine.high %v441_v29, %v445_v30 }
 0x217   :  { %4821 = vmatpush1.bf16.msra.mxu0 %v6726_v41  ;;  %v453_v19 = vld [vmem:[#allocation5 + $0x978] sm:$0xff]  ;;  %v6151_v41 = vcombine.low %v441_v29, %v445_v30 }
 0x218   :  { %4822 = vmatprep.subr.bf16.mxu0 %v6731_v44  ;;  %v6753_v42 = vld [vmem:[#allocation8 + $0x140] ss:$16 sps:$4 sm:$0xff]   ;;  %v6160_v43 = vcombine.high %v449_v37, %v453_v19  ;;  %v6758_v44 = vld [vmem:[#allocation8 + $0x164] ss:$16 sps:$4 sm:$0xff]   ;;  %v6159_v47 = vcombine.low %v449_v37, %v453_v19 }
 0x219   :  { %3130 = vmatpush1.bf16.msra.mxu1 %v6087_v48  ;;  %v6756_v48 = vld [vmem:[#allocation8 + $0x160] ss:$16 sps:$4 sm:$0xff]   ;;  %v6779_v29 = vld [vmem:[#allocation8 + $0x244] ss:$16 sps:$4 sm:$0xff]  }
 0x21a   :  { %3131 = vmatprep.subr.bf16.mxu1 %v6096_v50  ;;  %v6761_v50 = vld [vmem:[#allocation8 + $0x184] ss:$16 sps:$4 sm:$0xff]  }
 0x21b   :  { %4823 = vmatpush1.bf16.msra.mxu0 %v6729_v49  ;;  %v6168_v49 = vcombine.high %v457_v45, %v461_v46  ;;  %v485_v8 = vld [vmem:[#allocation5 + $0xa78] sm:$0xff] }
 0x21c   :  { %4824 = vmatprep.subr.bf16.mxu0 %v6734_v51  ;;  %v465_v51 = vld [vmem:[#allocation5 + $0x9d8] sm:$0xff] }
 0x21d   :  { %3132 = vmatpush1.bf16.msra.mxu1 %v6095_v57  ;;  %v6759_v57 = vld [vmem:[#allocation8 + $0x180] ss:$16 sps:$4 sm:$0xff]   ;;  %v6175_v1 = vcombine.low %v465_v51, %v469_v52  ;;  %v6782_v37 = vld [vmem:[#allocation8 + $0x264] ss:$16 sps:$4 sm:$0xff]  }
 0x21e   :  { %3133 = vmatprep.subr.bf16.mxu1 %v6104_v60  ;;  %v6764_v60 = vld [vmem:[#allocation8 + $0x1a4] ss:$16 sps:$4 sm:$0xff]  }
 0x21f   :  { %4825 = vmatpush1.bf16.msra.mxu0 %v6732_v59  ;;  %v6176_v59 = vcombine.high %v465_v51, %v469_v52  ;;  %v493_v13 = vld [vmem:[#allocation5 + $0xab8] sm:$0xff] }
 0x220   :  { %4826 = vmatprep.subr.bf16.mxu0 %v6737_v62  ;;  %v473_v62 = vld [vmem:[#allocation5 + $0xa18] sm:$0xff] }
 0x221   :  { %3134 = vmatpush1.bf16.msra.mxu1 %v6103_v2  ;;  %v6762_v2 = vld [vmem:[#allocation8 + $0x1a0] ss:$16 sps:$4 sm:$0xff]   ;;  %v6183_v9 = vcombine.low %v473_v62, %v477_v63  ;;  %v6785_v45 = vld [vmem:[#allocation8 + $0x284] ss:$16 sps:$4 sm:$0xff]  }
 0x222   :  { %3135 = vmatprep.subr.bf16.mxu1 %v6112_v6  ;;  %v6767_v6 = vld [vmem:[#allocation8 + $0x1c4] ss:$16 sps:$4 sm:$0xff]  }
 0x223   :  { %4827 = vmatpush1.bf16.msra.mxu0 %v6735_v5  ;;  %v6184_v5 = vcombine.high %v473_v62, %v477_v63  ;;  %v497_v23 = vld [vmem:[#allocation5 + $0xad8] sm:$0xff]  ;;  %v6800_v63 = vld [vmem:[#allocation8 + $0x2c] ss:$16 sps:$4 sm:$0xff]  }
 0x224   :  { %4828 = vmatprep.subr.bf16.mxu0 %v6740_v7  ;;  %v481_v7 = vld [vmem:[#allocation5 + $0xa58] sm:$0xff] }
 0x225   :  { %3136 = vmatpush1.bf16.msra.mxu1 %v6111_v10  ;;  %v6765_v10 = vld [vmem:[#allocation8 + $0x1c0] ss:$16 sps:$4 sm:$0xff]   ;;  %v6788_v51 = vld [vmem:[#allocation8 + $0x2a4] ss:$16 sps:$4 sm:$0xff]  }
 0x226   :  { %3146 = vmatprep.subr.bf16.mxu1 %v6120_v11  ;;  %v6770_v11 = vld [vmem:[#allocation8 + $0x1e4] ss:$16 sps:$4 sm:$0xff]   ;;  %v6789_v62 = vld [vmem:[#allocation8 + $0x2c0] ss:$16 sps:$4 sm:$0xff]  }
 0x227   :  { %4829 = vmatpush1.bf16.msra.mxu0 %v6738_v58  ;;  %v6192_v58 = vcombine.high %v481_v7, %v485_v8  ;;  %v501_v24 = vld [vmem:[#allocation5 + $0xaf8] sm:$0xff] }
 0x228   :  { %4830 = vmatprep.subr.bf16.mxu0 %v6743_v12  ;;  %3138 = vmatmul.mubr.bf16.vlgmr.msra.gmra.mrb[8].mxu1 %v7656_v21  ;;  %v6752_v21 = vld [vmem:[#allocation8 + $0x124] ss:$16 sps:$4 sm:$0xff]  }
 0x229   :  { %3147 = vmatpush1.bf16.msra.mxu1 %v6119_v15  ;;  %3178 = vmatprep.mubr.bf16.mxu1 %v7660_v28  ;;  %v6143_v28 = vcombine.low %v433_v35, %v437_v39  ;;  %v489_v12 = vld [vmem:[#allocation5 + $0xa98] sm:$0xff]  ;;  %v6191_v15 = vcombine.low %v481_v7, %v485_v8  ;;  %v6804_v8 = vld [vmem:[#allocation8 + $0x48] ss:$16 sps:$4 sm:$0xff]  }
 0x22a   :  { %3148 = vmatprep.subr.bf16.mxu1 %v6128_v18  ;;  %v6200_v18 = vcombine.high %v489_v12, %v493_v13  ;;  %v6776_v39 = vld [vmem:[#allocation8 + $0x224] ss:$16 sps:$4 sm:$0xff]  }
 0x22b   :  { %4831 = vmatpush1.bf16.msra.mxu0 %v6741_v16  ;;  %v6768_v16 = vld [vmem:[#allocation8 + $0x1e0] ss:$16 sps:$4 sm:$0xff]   ;;  %v6803_v7 = vld [vmem:[#allocation8 + $0x304] ss:$16 sps:$4 sm:$0xff]  }
 0x22c   :  { %4832 = vmatprep.subr.bf16.mxu0 %v6746_v20  ;;  %v6773_v20 = vld [vmem:[#allocation8 + $0x204] ss:$16 sps:$4 sm:$0xff]  }
 0x22d   :  { %3149 = vmatpush1.bf16.msra.mxu1 %v6127_v25  ;;  %v3244_v25 = vsel %vm3228_vm2, %v7710_v22, %v3236_v14  ;;  %v513_v30 = vld [vmem:[#allocation5 + $0xb58] sm:$0xff]  ;;  %v6816_v14 = vld [vmem:[#allocation8 + $0x88] ss:$16 sps:$4 sm:$0xff]  }
 0x22e   :  { %3150 = vmatprep.subr.bf16.mxu1 %v6136_v17  ;;  %v6771_v17 = vld [vmem:[#allocation8 + $0x200] ss:$16 sps:$4 sm:$0xff]   ;;  %v7727_v35 = vpack.c.bf16 %v3244_v25, %v3244_v25  ;;  %v6822_v25 = vld [vmem:[#allocation8 + $0xa8] ss:$16 sps:$4 sm:$0xff]  }
 0x22f   :  { %4833 = vmatpush1.bf16.msra.mxu0 %v6744_v26  ;;  %v6199_v26 = vcombine.low %v489_v12, %v493_v13  ;;  %v521_v19 = vld [vmem:[#allocation5 + $0xb98] sm:$0xff]  ;;  %v554_v13 = vsub.s32 2, %v7692_v56 }
 0x230   :  { %4834 = vmatprep.subr.bf16.mxu0 %v6749_v27  ;;  %v6208_v27 = vcombine.high %v497_v23, %v501_v24  ;;  %v529_v46 = vld [vmem:[#allocation5 + $0xbd8] sm:$0xff] }
 0x231   :  { %3151 = vmatpush1.bf16.msra.mxu1 %v6135_v53  ;;  %v505_v53 = vld [vmem:[#allocation5 + $0xb18] sm:$0xff] }
 0x232   :  { %3152 = vmatprep.subr.bf16.mxu1 %v6144_v61  ;;  %v6207_v61 = vcombine.low %v497_v23, %v501_v24  ;;  %v6815_v12 = vld [vmem:[#allocation8 + $0x344] ss:$16 sps:$4 sm:$0xff]   ;;  %v555_v23 = vrot.slane %v7699_v3, %v554_v13 }
 0x233   :  { %4835 = vmatpush1.bf16.msra.mxu0 %v6747_v54  ;;  %v509_v54 = vld [vmem:[#allocation5 + $0xb38] sm:$0xff] }
 0x234   :  { %4836 = vmatprep.subr.bf16.mxu0 %v6752_v21  ;;  %v6774_v21 = vld [vmem:[#allocation8 + $0x220] ss:$16 sps:$4 sm:$0xff]   ;;  %v6216_v22 = vcombine.high %v505_v53, %v509_v54 }
 0x235   :  { %3153 = vmatpush1.bf16.msra.mxu1 %v6143_v28  ;;  %v517_v28 = vld [vmem:[#allocation5 + $0xb78] sm:$0xff] }
 0x236   :  { %3154 = vmatprep.subr.bf16.mxu1 %v6152_v34  ;;  %v6777_v34 = vld [vmem:[#allocation8 + $0x240] ss:$16 sps:$4 sm:$0xff]  }
 0x237   :  { %4837 = vmatpush1.bf16.msra.mxu0 %v6750_v33  ;;  %v6215_v33 = vcombine.low %v505_v53, %v509_v54 }
 0x238   :  { %4838 = vmatprep.subr.bf16.mxu0 %v6755_v36  ;;  %v6224_v36 = vcombine.high %v513_v30, %v517_v28 }
 0x239   :  { %3155 = vmatpush1.bf16.msra.mxu1 %v6151_v41  ;;  %v525_v41 = vld [vmem:[#allocation5 + $0xbb8] sm:$0xff] }
 0x23a   :  { %3156 = vmatprep.subr.bf16.mxu1 %v6160_v43  ;;  %v6780_v43 = vld [vmem:[#allocation8 + $0x260] ss:$16 sps:$4 sm:$0xff]  }
 0x23b   :  { %4839 = vmatpush1.bf16.msra.mxu0 %v6753_v42  ;;  %v6223_v42 = vcombine.low %v513_v30, %v517_v28  ;;  %v6825_v28 = vld [vmem:[#allocation8 + $0x380] ss:$16 sps:$4 sm:$0xff]  }
 0x23c   :  { %4840 = vmatprep.subr.bf16.mxu0 %v6758_v44  ;;  %v6232_v44 = vcombine.high %v521_v19, %v525_v41 }
 0x23d   :  { %3157 = vmatpush1.bf16.msra.mxu1 %v6159_v47  ;;  %v533_v47 = vld [vmem:[#allocation5 + $0xbf8] sm:$0xff] }
 0x23e   :  { %3158 = vmatprep.subr.bf16.mxu1 %v6168_v49  ;;  %v6783_v49 = vld [vmem:[#allocation8 + $0x280] ss:$16 sps:$4 sm:$0xff]   ;;  %v6239_v52 = vcombine.low %v529_v46, %v533_v47 }
 0x23f   :  { %4841 = vmatpush1.bf16.msra.mxu0 %v6756_v48  ;;  %v6231_v48 = vcombine.low %v521_v19, %v525_v41  ;;  %v6831_v19 = vld [vmem:[#allocation8 + $0x3a0] ss:$16 sps:$4 sm:$0xff]   ;;  %v6839_v41 = vld [vmem:[#allocation8 + $0x3c4] ss:$16 sps:$4 sm:$0xff]  }
 0x240   :  { %4842 = vmatprep.subr.bf16.mxu0 %v6761_v50  ;;  %v6240_v50 = vcombine.high %v529_v46, %v533_v47  ;;  %v6845_v46 = vld [vmem:[#allocation8 + $0x3e4] ss:$16 sps:$4 sm:$0xff]  }
 0x241   :  { %3159 = vmatpush1.bf16.msra.mxu1 %v6167_v55  ;;  %v6786_v55 = vld [vmem:[#allocation8 + $0x2a0] ss:$16 sps:$4 sm:$0xff]  }
 0x242   :  { %3160 = vmatprep.subr.bf16.mxu1 %v6176_v59  ;;  %v6791_v59 = vld [vmem:[#allocation8 + $0x2c4] ss:$16 sps:$4 sm:$0xff]  }
 0x243   :  { %4843 = vmatpush1.bf16.msra.mxu0 %v6759_v57  ;;  %v6794_v57 = vld [vmem:[#allocation8 + $0xc] ss:$16 sps:$4 sm:$0xff]  }
 0x244   :  { %4844 = vmatprep.subr.bf16.mxu0 %v6764_v60  ;;  %v6792_v60 = vld [vmem:[#allocation8 + $0x8] ss:$16 sps:$4 sm:$0xff]  }
 0x245   :  { %3161 = vmatpush1.bf16.msra.mxu1 %v6175_v1  ;;  %v6797_v1 = vld [vmem:[#allocation8 + $0x2e4] ss:$16 sps:$4 sm:$0xff]  }
 0x246   :  { %3162 = vmatprep.subr.bf16.mxu1 %v6184_v5  ;;  %v6795_v5 = vld [vmem:[#allocation8 + $0x2e0] ss:$16 sps:$4 sm:$0xff]  }
 0x247   :  { %4845 = vmatpush1.bf16.msra.mxu0 %v6762_v2  ;;  %v6798_v2 = vld [vmem:[#allocation8 + $0x28] ss:$16 sps:$4 sm:$0xff]  }
 0x248   :  { %4846 = vmatprep.subr.bf16.mxu0 %v6767_v6  ;;  %v6806_v6 = vld [vmem:[#allocation8 + $0x4c] ss:$16 sps:$4 sm:$0xff]  }
 0x249   :  { %3163 = vmatpush1.bf16.msra.mxu1 %v6183_v9  ;;  %v6801_v9 = vld [vmem:[#allocation8 + $0x300] ss:$16 sps:$4 sm:$0xff]  }
 0x24a   :  { %3164 = vmatprep.subr.bf16.mxu1 %v6192_v58  ;;  %v6809_v58 = vld [vmem:[#allocation8 + $0x324] ss:$16 sps:$4 sm:$0xff]  }
 0x24b   :  { %4847 = vmatpush1.bf16.msra.mxu0 %v6765_v10  ;;  %v6812_v10 = vld [vmem:[#allocation8 + $0x6c] ss:$16 sps:$4 sm:$0xff]  }
 0x24c   :  { %4848 = vmatprep.subr.bf16.mxu0 %v6770_v11  ;;  %v6807_v11 = vld [vmem:[#allocation8 + $0x320] ss:$16 sps:$4 sm:$0xff]  }
 0x24d   :  { %3165 = vmatpush1.bf16.msra.mxu1 %v6191_v15  ;;  %v558_v15 = vsub.s32 3, %v7692_v56 }
 0x24e   :  { %3166 = vmatprep.subr.bf16.mxu1 %v6200_v18  ;;  %v6824_v18 = vld [vmem:[#allocation8 + $0xac] ss:$16 sps:$4 sm:$0xff]  }
 0x24f   :  { %4849 = vmatpush1.bf16.msra.mxu0 %v6768_v16  ;;  %v6813_v16 = vld [vmem:[#allocation8 + $0x340] ss:$16 sps:$4 sm:$0xff]   ;;  %v559_v24 = vrot.slane %v7699_v3, %v558_v15  ;;  %v6836_v3 = vld [vmem:[#allocation8 + $0xec] ss:$16 sps:$4 sm:$0xff]  }
 0x250   :  { %4859 = vmatprep.subr.bf16.mxu0 %v6773_v20  ;;  %v6821_v20 = vld [vmem:[#allocation8 + $0x364] ss:$16 sps:$4 sm:$0xff]  }
 0x251   :  { %3167 = vmatpush1.bf16.msra.mxu1 %v6199_v26  ;;  %v6819_v26 = vld [vmem:[#allocation8 + $0x360] ss:$16 sps:$4 sm:$0xff]  }
 0x252   :  { %4851 = vmatmul.mubr.bf16.vlgmr.msra.gmra.mrb[16].mxu0 %v7727_v35  ;;  %3168 = vmatprep.subr.bf16.mxu1 %v6208_v27 }
 0x253   :  { %4860 = vmatpush1.bf16.msra.mxu0 %v6771_v17  ;;  %v6830_v17 = vld [vmem:[#allocation8 + $0xcc] ss:$16 sps:$4 sm:$0xff]  }
 0x254   :  { %4861 = vmatprep.subr.bf16.mxu0 %v6776_v39  ;;  %v6827_v39 = vld [vmem:[#allocation8 + $0x384] ss:$16 sps:$4 sm:$0xff]  }
 0x255   :  { %3169 = vmatpush1.bf16.msra.mxu1 %v6207_v61 }
 0x256   :  { %3170 = vmatprep.subr.bf16.mxu1 %v6216_v22  ;;  %v6828_v22 = vld [vmem:[#allocation8 + $0xc8] ss:$16 sps:$4 sm:$0xff]  }
 0x257   :  { %4862 = vmatpush1.bf16.msra.mxu0 %v6774_v21 }
 0x258   :  { %4863 = vmatprep.subr.bf16.mxu0 %v6779_v29 }
 0x259   :  { %3171 = vmatpush1.bf16.msra.mxu1 %v6215_v33 }
 0x25a   :  { %3172 = vmatprep.subr.bf16.mxu1 %v6224_v36 }
 0x25b   :  { %4864 = vmatpush1.bf16.msra.mxu0 %v6777_v34  ;;  %v6833_v34 = vld [vmem:[#allocation8 + $0x3a4] ss:$16 sps:$4 sm:$0xff]  }
 0x25c   :  { %4865 = vmatprep.subr.bf16.mxu0 %v6782_v37  ;;  %v6834_v37 = vld [vmem:[#allocation8 + $0xe8] ss:$16 sps:$4 sm:$0xff]  }
 0x25d   :  { %3173 = vmatpush1.bf16.msra.mxu1 %v6223_v42 }
 0x25e   :  { %3174 = vmatprep.subr.bf16.mxu1 %v6232_v44  ;;  %v6840_v44 = vld [vmem:[#allocation8 + $0x108] ss:$16 sps:$4 sm:$0xff]  }
 0x25f   :  { %4866 = vmatpush1.bf16.msra.mxu0 %v6780_v43 }
 0x260   :  { %4867 = vmatprep.subr.bf16.mxu0 %v6785_v45  ;;  %v6837_v45 = vld [vmem:[#allocation8 + $0x3c0] ss:$16 sps:$4 sm:$0xff]  }
 0x261   :  { %3175 = vmatpush1.bf16.msra.mxu1 %v6231_v48  ;;  %v6846_v48 = vld [vmem:[#allocation8 + $0x128] ss:$16 sps:$4 sm:$0xff]  }
 0x262   :  { %3176 = vmatprep.subr.bf16.mxu1 %v6240_v50  ;;  %v6851_v50 = vld [vmem:[#allocation8 + $0x14c] ss:$16 sps:$4 sm:$0xff]  }
 0x263   :  { %4868 = vmatpush1.bf16.msra.mxu0 %v6783_v49  ;;  %v6843_v49 = vld [vmem:[#allocation8 + $0x3e0] ss:$16 sps:$4 sm:$0xff]  }
 0x264   :  { %4869 = vmatprep.subr.bf16.mxu0 %v6788_v51  ;;  %v6866_v51 = vld [vmem:[#allocation8 + $0x404] ss:$16 sps:$4 sm:$0xff]  }
 0x265   :  { %3177 = vmatpush1.bf16.msra.mxu1 %v6239_v52 }
 0x266   :  { %4982 = vmatprep.subr.bf16.mxu1 %v6794_v57  ;;  %v6854_v57 = vld [vmem:[#allocation8 + $0x16c] ss:$16 sps:$4 sm:$0xff]  }
 0x267   :  { %4870 = vmatpush1.bf16.msra.mxu0 %v6786_v55  ;;  %v6849_v55 = vld [vmem:[#allocation8 + $0x148] ss:$16 sps:$4 sm:$0xff]  }
 0x268   :  { %4871 = vmatprep.subr.bf16.mxu0 %v6791_v59  ;;  %3179 = vmatmul.mubr.bf16.vlgmr.msra.gmra.mrb[8].mxu1 %v7668_v32  ;;  %v6810_v32 = vld [vmem:[#allocation8 + $0x68] ss:$16 sps:$4 sm:$0xff]   ;;  %v6864_v59 = vld [vmem:[#allocation8 + $0x400] ss:$16 sps:$4 sm:$0xff]  }
 0x269   :  { %4983 = vmatpush1.bf16.msra.mxu1 %v6792_v60  ;;  %5014 = vmatprep.mubr.bf16.mxu1 %v7714_v31  ;;  %v6818_v31 = vld [vmem:[#allocation8 + $0x8c] ss:$16 sps:$4 sm:$0xff]  }
 0x26a   :  { %4984 = vmatprep.subr.bf16.mxu1 %v6800_v63  ;;  %v6852_v63 = vld [vmem:[#allocation8 + $0x168] ss:$16 sps:$4 sm:$0xff]  }
 0x26b   :  { %4872 = vmatpush1.bf16.msra.mxu0 %v6789_v62  ;;  %v6872_v62 = vld [vmem:[#allocation8 + $0x424] ss:$16 sps:$4 sm:$0xff]  }
 0x26c   :  { %4873 = vmatprep.subr.bf16.mxu0 %v6797_v1  ;;  %v6857_v1 = vld [vmem:[#allocation8 + $0x18c] ss:$16 sps:$4 sm:$0xff]  }
 0x26d   :  { %4985 = vmatpush1.bf16.msra.mxu1 %v6798_v2  ;;  %v6870_v2 = vld [vmem:[#allocation8 + $0x420] ss:$16 sps:$4 sm:$0xff]  }
 0x26e   :  { %4986 = vmatprep.subr.bf16.mxu1 %v6806_v6  ;;  %v6855_v6 = vld [vmem:[#allocation8 + $0x188] ss:$16 sps:$4 sm:$0xff]  }
 0x26f   :  { %4874 = vmatpush1.bf16.msra.mxu0 %v6795_v5  ;;  %v6878_v5 = vld [vmem:[#allocation8 + $0x444] ss:$16 sps:$4 sm:$0xff]  }
 0x270   :  { %4875 = vmatprep.subr.bf16.mxu0 %v6803_v7  ;;  %v6860_v7 = vld [vmem:[#allocation8 + $0x1ac] ss:$16 sps:$4 sm:$0xff]  }
 0x271   :  { %4987 = vmatpush1.bf16.msra.mxu1 %v6804_v8  ;;  %v6876_v8 = vld [vmem:[#allocation8 + $0x440] ss:$16 sps:$4 sm:$0xff]  }
 0x272   :  { %4988 = vmatprep.subr.bf16.mxu1 %v6812_v10  ;;  %v6858_v10 = vld [vmem:[#allocation8 + $0x1a8] ss:$16 sps:$4 sm:$0xff]  }
 0x273   :  { %4876 = vmatpush1.bf16.msra.mxu0 %v6801_v9  ;;  %v6884_v9 = vld [vmem:[#allocation8 + $0x464] ss:$16 sps:$4 sm:$0xff]  }
 0x274   :  { %4877 = vmatprep.subr.bf16.mxu0 %v6809_v58  ;;  %v6863_v58 = vld [vmem:[#allocation8 + $0x1cc] ss:$16 sps:$4 sm:$0xff]  }
 0x275   :  { %4989 = vmatpush1.bf16.msra.mxu1 %v6810_v32  ;;  %v6882_v32 = vld [vmem:[#allocation8 + $0x460] ss:$16 sps:$4 sm:$0xff]  }
 0x276   :  { %4990 = vmatprep.subr.bf16.mxu1 %v6818_v31  ;;  %v6861_v31 = vld [vmem:[#allocation8 + $0x1c8] ss:$16 sps:$4 sm:$0xff]  }
 0x277   :  { %4878 = vmatpush1.bf16.msra.mxu0 %v6807_v11  ;;  %v6890_v11 = vld [vmem:[#allocation8 + $0x484] ss:$16 sps:$4 sm:$0xff]  }
 0x278   :  { %4879 = vmatprep.subr.bf16.mxu0 %v6815_v12  ;;  %v6869_v12 = vld [vmem:[#allocation8 + $0x1ec] ss:$16 sps:$4 sm:$0xff]  }
 0x279   :  { %4991 = vmatpush1.bf16.msra.mxu1 %v6816_v14  ;;  %v6888_v14 = vld [vmem:[#allocation8 + $0x480] ss:$16 sps:$4 sm:$0xff]  }
 0x27a   :  { %4992 = vmatprep.subr.bf16.mxu1 %v6824_v18  ;;  %v6867_v18 = vld [vmem:[#allocation8 + $0x1e8] ss:$16 sps:$4 sm:$0xff]  }
 0x27b   :  { %4880 = vmatpush1.bf16.msra.mxu0 %v6813_v16  ;;  %v2852_v27 = vpop.f32.mrb[4].mxu1  ;;  %v6896_v16 = vld [vmem:[#allocation8 + $0x4a4] ss:$16 sps:$4 sm:$0xff]  }
 0x27c   :  { %4881 = vmatprep.subr.bf16.mxu0 %v6821_v20  ;;  %v6617_v53 = vadd.f32 %v2852_v27, %v555_v23  ;;  %v2854_v54 = vpop.f32.mrb[5].mxu1  ;;  %v6875_v20 = vld [vmem:[#allocation8 + $0x20c] ss:$16 sps:$4 sm:$0xff]   ;;  %v6894_v23 = vld [vmem:[#allocation8 + $0x4a0] ss:$16 sps:$4 sm:$0xff]  }
 0x27d   :  { %v6619_v61 = vadd.f32 %v2854_v54, %v559_v24  ;;  %v2856_v21 = vpop.f32.mrb[6].mxu1  ;;  %4993 = vmatpush1.bf16.msra.mxu1 %v6822_v25  ;;  %v6902_v24 = vld [vmem:[#allocation8 + $0x4c4] ss:$16 sps:$4 sm:$0xff]   ;;  %v6873_v25 = vld [vmem:[#allocation8 + $0x208] ss:$16 sps:$4 sm:$0xff]  }
 0x27e   :  { %v6618_v29 = vadd.f32 %v6617_v53, %v7716_v38  ;;  %v2857_v30 = vpop.f32.mrb[7].mxu1  ;;  %4994 = vmatprep.subr.bf16.mxu1 %v6830_v17  ;;  %v6842_v38 = vld [vmem:[#allocation8 + $0x10c] ss:$16 sps:$4 sm:$0xff]   ;;  %v6900_v17 = vld [vmem:[#allocation8 + $0x4c0] ss:$16 sps:$4 sm:$0xff]  }
 0x27f   :  { %4882 = vmatpush1.bf16.msra.mxu0 %v6819_v26  ;;  %v6620_v33 = vadd.f32 %v6619_v61, %v7719_v40  ;;  %v6848_v40 = vld [vmem:[#allocation8 + $0x12c] ss:$16 sps:$4 sm:$0xff]   ;;  %v6908_v27 = vld [vmem:[#allocation8 + $0x4e4] ss:$16 sps:$4 sm:$0xff]   ;;  %v6906_v54 = vld [vmem:[#allocation8 + $0x4e0] ss:$16 sps:$4 sm:$0xff]  }
 0x280   :  { %4883 = vmatprep.subr.bf16.mxu0 %v6827_v39  ;;  %v3238_v47 = vmul.f32 0.2, %v6618_v29  ;;  %vm3230_vm4 = vcmp.gt.f32.partialorder %v6618_v29, 0.0  ;;  %v6881_v26 = vld [vmem:[#allocation8 + $0x22c] ss:$16 sps:$4 sm:$0xff]  }
 0x281   :  { %v3239_v36 = vmul.f32 0.2, %v6620_v33  ;;  %4995 = vmatpush1.bf16.msra.mxu1 %v6828_v22  ;;  %vm3231_vm3 = vcmp.gt.f32.partialorder %v6620_v33, 0.0  ;;  %v6879_v39 = vld [vmem:[#allocation8 + $0x228] ss:$16 sps:$4 sm:$0xff]  }
 0x282   :  { %4996 = vmatprep.subr.bf16.mxu1 %v6836_v3  ;;  %v3246_v52 = vsel %vm3230_vm4, %v6618_v29, %v3238_v47  ;;  %v6887_v53 = vld [vmem:[#allocation8 + $0x24c] ss:$16 sps:$4 sm:$0xff]   ;;  %v6914_v61 = vld [vmem:[#allocation8 + $0x504] ss:$16 sps:$4 sm:$0xff]   ;;  %v6885_v21 = vld [vmem:[#allocation8 + $0x248] ss:$16 sps:$4 sm:$0xff]  }
 0x283   :  { %4884 = vmatpush1.bf16.msra.mxu0 %v6825_v28  ;;  %v3247_v42 = vsel %vm3231_vm3, %v6620_v33, %v3239_v36  ;;  %v7745_v60 = vpack.c.bf16 %v3246_v52, %v3246_v52  ;;  %v6893_v22 = vld [vmem:[#allocation8 + $0x26c] ss:$16 sps:$4 sm:$0xff]   ;;  %v6912_v29 = vld [vmem:[#allocation8 + $0x500] ss:$16 sps:$4 sm:$0xff]   ;;  %v6920_v30 = vld [vmem:[#allocation8 + $0x524] ss:$16 sps:$4 sm:$0xff]  }
 0x284   :  { %4885 = vmatprep.subr.bf16.mxu0 %v6833_v34  ;;  %v7742_v43 = vpack.c.bf16 %v3247_v42, %v3247_v42  ;;  %v6899_v28 = vld [vmem:[#allocation8 + $0x28c] ss:$16 sps:$4 sm:$0xff]   ;;  %v6918_v3 = vld [vmem:[#allocation8 + $0x520] ss:$16 sps:$4 sm:$0xff]   ;;  %v6926_v33 = vld [vmem:[#allocation8 + $0x544] ss:$16 sps:$4 sm:$0xff]  }
 0x285   :  { %4997 = vmatpush1.bf16.msra.mxu1 %v6834_v37  ;;  %v6897_v34 = vld [vmem:[#allocation8 + $0x288] ss:$16 sps:$4 sm:$0xff]   ;;  %v6905_v36 = vld [vmem:[#allocation8 + $0x2ac] ss:$16 sps:$4 sm:$0xff]   ;;  %v6924_v37 = vld [vmem:[#allocation8 + $0x540] ss:$16 sps:$4 sm:$0xff]  }
 0x286   :  { %4891 = vmatprep.mubr.bf16.mxu0 %v7742_v43  ;;  %4998 = vmatprep.subr.bf16.mxu1 %v6842_v38  ;;  %v6911_v42 = vld [vmem:[#allocation8 + $0x2cc] ss:$16 sps:$4 sm:$0xff]   ;;  %v6930_v38 = vld [vmem:[#allocation8 + $0x560] ss:$16 sps:$4 sm:$0xff]   ;;  %v6915_v47 = vld [vmem:[#allocation8 + $0x2e8] ss:$16 sps:$4 sm:$0xff]  }
 0x287   :  { %4886 = vmatpush1.bf16.msra.mxu0 %v6831_v19  ;;  %v6932_v19 = vld [vmem:[#allocation8 + $0x564] ss:$16 sps:$4 sm:$0xff]   ;;  %v6929_v52 = vld [vmem:[#allocation8 + $0x32c] ss:$16 sps:$4 sm:$0xff]  }
 0x288   :  { %4887 = vmatprep.subr.bf16.mxu0 %v6839_v41  ;;  %v6903_v41 = vld [vmem:[#allocation8 + $0x2a8] ss:$16 sps:$4 sm:$0xff]  }
 0x289   :  { %4999 = vmatpush1.bf16.msra.mxu1 %v6840_v44  ;;  %v6909_v44 = vld [vmem:[#allocation8 + $0x2c8] ss:$16 sps:$4 sm:$0xff]  }
 0x28a   :  { %5000 = vmatprep.subr.bf16.mxu1 %v6848_v40  ;;  %v6936_v40 = vld [vmem:[#allocation8 + $0x580] ss:$16 sps:$4 sm:$0xff]  }
 0x28b   :  { %4888 = vmatpush1.bf16.msra.mxu0 %v6837_v45  ;;  %v6917_v45 = vld [vmem:[#allocation8 + $0x2ec] ss:$16 sps:$4 sm:$0xff]  }
 0x28c   :  { %4889 = vmatprep.subr.bf16.mxu0 %v6845_v46  ;;  %v6944_v46 = vld [vmem:[#allocation8 + $0x5a4] ss:$16 sps:$4 sm:$0xff]  }
 0x28d   :  { %5001 = vmatpush1.bf16.msra.mxu1 %v6846_v48  ;;  %v6923_v48 = vld [vmem:[#allocation8 + $0x30c] ss:$16 sps:$4 sm:$0xff]  }
 0x28e   :  { %5002 = vmatprep.subr.bf16.mxu1 %v6851_v50  ;;  %v6950_v50 = vld [vmem:[#allocation8 + $0x5c4] ss:$16 sps:$4 sm:$0xff]  }
 0x28f   :  { %4890 = vmatpush1.bf16.msra.mxu0 %v6843_v49  ;;  %v6942_v49 = vld [vmem:[#allocation8 + $0x5a0] ss:$16 sps:$4 sm:$0xff]  }
 0x290   :  { %4900 = vmatprep.subr.bf16.mxu0 %v6866_v51  ;;  %v6921_v51 = vld [vmem:[#allocation8 + $0x308] ss:$16 sps:$4 sm:$0xff]  }
 0x291   :  { %5003 = vmatpush1.bf16.msra.mxu1 %v6849_v55  ;;  %v6948_v55 = vld [vmem:[#allocation8 + $0x5c0] ss:$16 sps:$4 sm:$0xff]  }
 0x292   :  { %4892 = vmatmul.mubr.bf16.vlgmr.msra.gmra.mrb[16].mxu0 %v7745_v60  ;;  %5004 = vmatprep.subr.bf16.mxu1 %v6854_v57  ;;  %v6956_v57 = vld [vmem:[#allocation8 + $0x5e4] ss:$16 sps:$4 sm:$0xff]  }
 0x293   :  { %4901 = vmatpush1.bf16.msra.mxu0 %v6864_v59  ;;  %v6927_v59 = vld [vmem:[#allocation8 + $0x328] ss:$16 sps:$4 sm:$0xff]  }
 0x294   :  { %4902 = vmatprep.subr.bf16.mxu0 %v6872_v62  ;;  %v6935_v62 = vld [vmem:[#allocation8 + $0x34c] ss:$16 sps:$4 sm:$0xff]  }
 0x295   :  { %5005 = vmatpush1.bf16.msra.mxu1 %v6852_v63  ;;  %v6954_v63 = vld [vmem:[#allocation8 + $0x5e0] ss:$16 sps:$4 sm:$0xff]  }
 0x296   :  { %5006 = vmatprep.subr.bf16.mxu1 %v6857_v1  ;;  %v6989_v1 = vld [vmem:[#allocation8 + $0x604] ss:$16 sps:$4 sm:$0xff]  }
 0x297   :  { %4903 = vmatpush1.bf16.msra.mxu0 %v6870_v2  ;;  %v6933_v2 = vld [vmem:[#allocation8 + $0x348] ss:$16 sps:$4 sm:$0xff]  }
 0x298   :  { %4904 = vmatprep.subr.bf16.mxu0 %v6878_v5  ;;  %v6941_v5 = vld [vmem:[#allocation8 + $0x36c] ss:$16 sps:$4 sm:$0xff]  }
 0x299   :  { %5007 = vmatpush1.bf16.msra.mxu1 %v6855_v6  ;;  %v6939_v6 = vld [vmem:[#allocation8 + $0x368] ss:$16 sps:$4 sm:$0xff]  }
 0x29a   :  { %5008 = vmatprep.subr.bf16.mxu1 %v6860_v7  ;;  %v6947_v7 = vld [vmem:[#allocation8 + $0x38c] ss:$16 sps:$4 sm:$0xff]  }
 0x29b   :  { %4905 = vmatpush1.bf16.msra.mxu0 %v6876_v8  ;;  %v6945_v8 = vld [vmem:[#allocation8 + $0x388] ss:$16 sps:$4 sm:$0xff]  }
 0x29c   :  { %4906 = vmatprep.subr.bf16.mxu0 %v6884_v9  ;;  %v562_v9 = vsub.s32 4, %v7692_v56 }
 0x29d   :  { %5009 = vmatpush1.bf16.msra.mxu1 %v6858_v10  ;;  %v566_v10 = vsub.s32 5, %v7692_v56 }
 0x29e   :  { %5010 = vmatprep.subr.bf16.mxu1 %v6863_v58  ;;  %v6953_v58 = vld [vmem:[#allocation8 + $0x3ac] ss:$16 sps:$4 sm:$0xff]  }
 0x29f   :  { %4907 = vmatpush1.bf16.msra.mxu0 %v6882_v32  ;;  %v7752_v32 = vld [vmem:[#allocation7] sm:$0xff] }
 0x2a0   :  { %4908 = vmatprep.subr.bf16.mxu0 %v6890_v11  ;;  %v563_v11 = vrot.slane %v7752_v32, %v562_v9  ;;  %v6992_v9 = vld [vmem:[#allocation8 + $0x50c] ss:$16 sps:$4 sm:$0xff]  }
 0x2a1   :  { %5011 = vmatpush1.bf16.msra.mxu1 %v6861_v31  ;;  %v6951_v31 = vld [vmem:[#allocation8 + $0x3a8] ss:$16 sps:$4 sm:$0xff]  }
 0x2a2   :  { %5012 = vmatprep.subr.bf16.mxu1 %v6869_v12  ;;  %v567_v12 = vrot.slane %v7752_v32, %v566_v10  ;;  %v7035_v10 = vld [vmem:[#allocation8 + $0x700] ss:$16 sps:$4 sm:$0xff]  }
 0x2a3   :  { %4909 = vmatpush1.bf16.msra.mxu0 %v6888_v14  ;;  %v6959_v14 = vld [vmem:[#allocation8 + $0x3cc] ss:$16 sps:$4 sm:$0xff]  }
 0x2a4   :  { %4910 = vmatprep.subr.bf16.mxu0 %v6896_v16 }
 0x2a5   :  { %5013 = vmatpush1.bf16.msra.mxu1 %v6867_v18 }
 0x2a6   :  { %5023 = vmatprep.subr.bf16.mxu1 %v6875_v20 }
 0x2a7   :  { %4911 = vmatpush1.bf16.msra.mxu0 %v6894_v23  ;;  %v6957_v23 = vld [vmem:[#allocation8 + $0x3c8] ss:$16 sps:$4 sm:$0xff]  }
 0x2a8   :  { %4912 = vmatprep.subr.bf16.mxu0 %v6902_v24  ;;  %5015 = vmatmul.mubr.bf16.vlgmr.msra.gmra.mrb[12].mxu1 %v7727_v35  ;;  %v6891_v35 = vld [vmem:[#allocation8 + $0x268] ss:$16 sps:$4 sm:$0xff]  }
 0x2a9   :  { %5024 = vmatpush1.bf16.msra.mxu1 %v6873_v25  ;;  %5055 = vmatprep.mubr.bf16.mxu1 %v7742_v43  ;;  %v6938_v43 = vld [vmem:[#allocation8 + $0x584] ss:$16 sps:$4 sm:$0xff]  }
 0x2aa   :  { %5025 = vmatprep.subr.bf16.mxu1 %v6881_v26  ;;  %v6962_v26 = vld [vmem:[#allocation8 + $0x3ec] ss:$16 sps:$4 sm:$0xff]  }
 0x2ab   :  { %4913 = vmatpush1.bf16.msra.mxu0 %v6900_v17 }
 0x2ac   :  { %4914 = vmatprep.subr.bf16.mxu0 %v6908_v27 }
 0x2ad   :  { %5026 = vmatpush1.bf16.msra.mxu1 %v6879_v39 }
 0x2ae   :  { %5027 = vmatprep.subr.bf16.mxu1 %v6887_v53 }
 0x2af   :  { %4915 = vmatpush1.bf16.msra.mxu0 %v6906_v54  ;;  %v6960_v54 = vld [vmem:[#allocation8 + $0x3e8] ss:$16 sps:$4 sm:$0xff]  }
 0x2b0   :  { %4916 = vmatprep.subr.bf16.mxu0 %v6914_v61 }
 0x2b1   :  { %5028 = vmatpush1.bf16.msra.mxu1 %v6885_v21  ;;  %v6965_v21 = vld [vmem:[#allocation8 + $0x40c] ss:$16 sps:$4 sm:$0xff]  }
 0x2b2   :  { %5029 = vmatprep.subr.bf16.mxu1 %v6893_v22 }
 0x2b3   :  { %4917 = vmatpush1.bf16.msra.mxu0 %v6912_v29  ;;  %v6987_v29 = vld [vmem:[#allocation8 + $0x600] ss:$16 sps:$4 sm:$0xff]  }
 0x2b4   :  { %4918 = vmatprep.subr.bf16.mxu0 %v6920_v30 }
 0x2b5   :  { %5030 = vmatpush1.bf16.msra.mxu1 %v6891_v35  ;;  %v6995_v35 = vld [vmem:[#allocation8 + $0x624] ss:$16 sps:$4 sm:$0xff]  }
 0x2b6   :  { %5031 = vmatprep.subr.bf16.mxu1 %v6899_v28 }
 0x2b7   :  { %4919 = vmatpush1.bf16.msra.mxu0 %v6918_v3  ;;  %v6963_v3 = vld [vmem:[#allocation8 + $0x408] ss:$16 sps:$4 sm:$0xff]  }
 0x2b8   :  { %4920 = vmatprep.subr.bf16.mxu0 %v6926_v33 }
 0x2b9   :  { %5032 = vmatpush1.bf16.msra.mxu1 %v6897_v34  ;;  %v6968_v34 = vld [vmem:[#allocation8 + $0x42c] ss:$16 sps:$4 sm:$0xff]  }
 0x2ba   :  { %5033 = vmatprep.subr.bf16.mxu1 %v6905_v36 }
 0x2bb   :  { %4921 = vmatpush1.bf16.msra.mxu0 %v6924_v37  ;;  %v6993_v37 = vld [vmem:[#allocation8 + $0x620] ss:$16 sps:$4 sm:$0xff]  }
 0x2bc   :  { %4922 = vmatprep.subr.bf16.mxu0 %v6932_v19 }
 0x2bd   :  { %5034 = vmatpush1.bf16.msra.mxu1 %v6903_v41  ;;  %v7001_v41 = vld [vmem:[#allocation8 + $0x644] ss:$16 sps:$4 sm:$0xff]  }
 0x2be   :  { %5035 = vmatprep.subr.bf16.mxu1 %v6911_v42  ;;  %v6966_v42 = vld [vmem:[#allocation8 + $0x428] ss:$16 sps:$4 sm:$0xff]  }
 0x2bf   :  { %4923 = vmatpush1.bf16.msra.mxu0 %v6930_v38  ;;  %v6971_v38 = vld [vmem:[#allocation8 + $0x44c] ss:$16 sps:$4 sm:$0xff]  }
 0x2c0   :  { %4924 = vmatprep.subr.bf16.mxu0 %v6938_v43  ;;  %v6999_v43 = vld [vmem:[#allocation8 + $0x640] ss:$16 sps:$4 sm:$0xff]  }
 0x2c1   :  { %5036 = vmatpush1.bf16.msra.mxu1 %v6909_v44  ;;  %v7007_v44 = vld [vmem:[#allocation8 + $0x664] ss:$16 sps:$4 sm:$0xff]  }
 0x2c2   :  { %5037 = vmatprep.subr.bf16.mxu1 %v6917_v45  ;;  %v6969_v45 = vld [vmem:[#allocation8 + $0x448] ss:$16 sps:$4 sm:$0xff]  }
 0x2c3   :  { %4925 = vmatpush1.bf16.msra.mxu0 %v6936_v40  ;;  %v6974_v40 = vld [vmem:[#allocation8 + $0x46c] ss:$16 sps:$4 sm:$0xff]  }
 0x2c4   :  { %4926 = vmatprep.subr.bf16.mxu0 %v6944_v46  ;;  %v7005_v46 = vld [vmem:[#allocation8 + $0x660] ss:$16 sps:$4 sm:$0xff]  }
 0x2c5   :  { %5038 = vmatpush1.bf16.msra.mxu1 %v6915_v47  ;;  %v7013_v47 = vld [vmem:[#allocation8 + $0x684] ss:$16 sps:$4 sm:$0xff]  }
 0x2c6   :  { %5039 = vmatprep.subr.bf16.mxu1 %v6923_v48  ;;  %v6977_v48 = vld [vmem:[#allocation8 + $0x48c] ss:$16 sps:$4 sm:$0xff]  }
 0x2c7   :  { %4927 = vmatpush1.bf16.msra.mxu0 %v6942_v49  ;;  %v7011_v49 = vld [vmem:[#allocation8 + $0x680] ss:$16 sps:$4 sm:$0xff]  }
 0x2c8   :  { %4928 = vmatprep.subr.bf16.mxu0 %v6950_v50  ;;  %v7019_v50 = vld [vmem:[#allocation8 + $0x6a4] ss:$16 sps:$4 sm:$0xff]  }
 0x2c9   :  { %5040 = vmatpush1.bf16.msra.mxu1 %v6921_v51  ;;  %v6975_v51 = vld [vmem:[#allocation8 + $0x488] ss:$16 sps:$4 sm:$0xff]  }
 0x2ca   :  { %5041 = vmatprep.subr.bf16.mxu1 %v6929_v52  ;;  %v6980_v52 = vld [vmem:[#allocation8 + $0x4ac] ss:$16 sps:$4 sm:$0xff]  }
 0x2cb   :  { %4929 = vmatpush1.bf16.msra.mxu0 %v6948_v55  ;;  %v7017_v55 = vld [vmem:[#allocation8 + $0x6a0] ss:$16 sps:$4 sm:$0xff]  }
 0x2cc   :  { %4930 = vmatprep.subr.bf16.mxu0 %v6956_v57  ;;  %v7025_v57 = vld [vmem:[#allocation8 + $0x6c4] ss:$16 sps:$4 sm:$0xff]  }
 0x2cd   :  { %5042 = vmatpush1.bf16.msra.mxu1 %v6927_v59  ;;  %v6978_v59 = vld [vmem:[#allocation8 + $0x4a8] ss:$16 sps:$4 sm:$0xff]  }
 0x2ce   :  { %5043 = vmatprep.subr.bf16.mxu1 %v6935_v62  ;;  %v6983_v62 = vld [vmem:[#allocation8 + $0x4cc] ss:$16 sps:$4 sm:$0xff]  }
 0x2cf   :  { %4931 = vmatpush1.bf16.msra.mxu0 %v6954_v63  ;;  %v7023_v63 = vld [vmem:[#allocation8 + $0x6c0] ss:$16 sps:$4 sm:$0xff]  }
 0x2d0   :  { %4941 = vmatprep.subr.bf16.mxu0 %v6989_v1  ;;  %v7031_v1 = vld [vmem:[#allocation8 + $0x6e4] ss:$16 sps:$4 sm:$0xff]  }
 0x2d1   :  { %5044 = vmatpush1.bf16.msra.mxu1 %v6933_v2  ;;  %v6981_v2 = vld [vmem:[#allocation8 + $0x4c8] ss:$16 sps:$4 sm:$0xff]  }
 0x2d2   :  { %5045 = vmatprep.subr.bf16.mxu1 %v6941_v5  ;;  %v6986_v5 = vld [vmem:[#allocation8 + $0x4ec] ss:$16 sps:$4 sm:$0xff]  }
 0x2d5   :  { %5046 = vmatpush1.bf16.msra.mxu1 %v6939_v6  ;;  %v7029_v6 = vld [vmem:[#allocation8 + $0x6e0] ss:$16 sps:$4 sm:$0xff]  }
 0x2d6   :  { %5047 = vmatprep.subr.bf16.mxu1 %v6947_v7  ;;  %v7037_v7 = vld [vmem:[#allocation8 + $0x704] ss:$16 sps:$4 sm:$0xff]  }
 0x2d9   :  { %5048 = vmatpush1.bf16.msra.mxu1 %v6945_v8  ;;  %v6984_v8 = vld [vmem:[#allocation8 + $0x4e8] ss:$16 sps:$4 sm:$0xff]  }
 0x2da   :  { %5049 = vmatprep.subr.bf16.mxu1 %v6953_v58  ;;  %v7043_v58 = vld [vmem:[#allocation8 + $0x724] ss:$16 sps:$4 sm:$0xff]  }
 0x2dd   :  { %v3057_v16 = vpop.f32.mrb[8].mxu0  ;;  %5050 = vmatpush1.bf16.msra.mxu1 %v6951_v31  ;;  %v6998_v31 = vld [vmem:[#allocation8 + $0x52c] ss:$16 sps:$4 sm:$0xff]  }
 0x2de   :  { %v6621_v18 = vadd.f32 %v3057_v16, %v563_v11  ;;  %v3059_v20 = vpop.f32.mrb[9].mxu0  ;;  %5051 = vmatprep.subr.bf16.mxu1 %v6959_v14  ;;  %v6990_v11 = vld [vmem:[#allocation8 + $0x508] ss:$16 sps:$4 sm:$0xff]   ;;  %v7049_v14 = vld [vmem:[#allocation8 + $0x744] ss:$16 sps:$4 sm:$0xff]  }
 0x2df   :  { %v6622_v24 = vadd.f32 %v3059_v20, %v567_v12  ;;  %v3061_v25 = vpop.f32.mrb[10].mxu0  ;;  %v7041_v12 = vld [vmem:[#allocation8 + $0x720] ss:$16 sps:$4 sm:$0xff]   ;;  %v6996_v16 = vld [vmem:[#allocation8 + $0x528] ss:$16 sps:$4 sm:$0xff]  }
 0x2e0   :  { %vm3232_vm5 = vcmp.gt.f32.partialorder %v6621_v18, 0.0  ;;  %v3240_v17 = vmul.f32 0.2, %v6621_v18  ;;  %v3062_v27 = vpop.f32.mrb[11].mxu0  ;;  %v7047_v20 = vld [vmem:[#allocation8 + $0x740] ss:$16 sps:$4 sm:$0xff]  }
 0x2e1   :  { %vm3233_vm6 = vcmp.gt.f32.partialorder %v6622_v24, 0.0  ;;  %v3241_v39 = vmul.f32 0.2, %v6622_v24  ;;  %5052 = vmatpush1.bf16.msra.mxu1 %v6957_v23  ;;  %v7055_v23 = vld [vmem:[#allocation8 + $0x764] ss:$16 sps:$4 sm:$0xff]  }
 0x2e2   :  { %v3248_v53 = vsel %vm3232_vm5, %v6621_v18, %v3240_v17  ;;  %5053 = vmatprep.subr.bf16.mxu1 %v6962_v26  ;;  %v7004_v18 = vld [vmem:[#allocation8 + $0x54c] ss:$16 sps:$4 sm:$0xff]   ;;  %v7053_v26 = vld [vmem:[#allocation8 + $0x760] ss:$16 sps:$4 sm:$0xff]   ;;  %v7061_v17 = vld [vmem:[#allocation8 + $0x784] ss:$16 sps:$4 sm:$0xff]  }
 0x2e3   :  { %v3249_v61 = vsel %vm3233_vm6, %v6622_v24, %v3241_v39  ;;  %v7756_v30 = vpack.c.bf16 %v3248_v53, %v3248_v53  ;;  %v7002_v24 = vld [vmem:[#allocation8 + $0x548] ss:$16 sps:$4 sm:$0xff]   ;;  %v7010_v25 = vld [vmem:[#allocation8 + $0x56c] ss:$16 sps:$4 sm:$0xff]   ;;  %v7059_v53 = vld [vmem:[#allocation8 + $0x780] ss:$16 sps:$4 sm:$0xff]  }
 0x2e4   :  { %v3257_v22 = vpack.c.bf16 %v3249_v61, %v3249_v61  ;;  %v7008_v27 = vld [vmem:[#allocation8 + $0x568] ss:$16 sps:$4 sm:$0xff]   ;;  %v7016_v39 = vld [vmem:[#allocation8 + $0x58c] ss:$16 sps:$4 sm:$0xff]  }
 0x2e5   :  { %v7758_v28 = vpop.f32.mrb[12].mxu0  ;;  %5054 = vmatpush1.bf16.msra.mxu1 %v6960_v54  ;;  %v7067_v54 = vld [vmem:[#allocation8 + $0x7a4] ss:$16 sps:$4 sm:$0xff]   ;;  %v7014_v61 = vld [vmem:[#allocation8 + $0x588] ss:$16 sps:$4 sm:$0xff]  }
 0x2e6   :  { %4932 = vmatprep.mubr.bf16.mxu0 %v3257_v22  ;;  %v7760_v33 = vpop.f32.mrb[13].mxu0  ;;  %5064 = vmatprep.subr.bf16.mxu1 %v6965_v21  ;;  %v7022_v21 = vld [vmem:[#allocation8 + $0x5ac] ss:$16 sps:$4 sm:$0xff]  }
 0x2e7   :  { %4933 = vmatmul.mubr.bf16.vlgmr.msra.gmra.mrb[16].mxu0 %v7756_v30  ;;  %v3225_v36 = vpop.f32.mrb[14].mxu0 }
 0x2e8   :  { %4942 = vmatpush1.bf16.msra.mxu0 %v6987_v29  ;;  %v3226_v19 = vpop.f32.mrb[15].mxu0  ;;  %5056 = vmatmul.mubr.bf16.vlgmr.msra.gmra.mrb[12].mxu1 %v7745_v60  ;;  %v6972_v60 = vld [vmem:[#allocation8 + $0x468] ss:$16 sps:$4 sm:$0xff]   ;;  %v7073_v29 = vld [vmem:[#allocation8 + $0x7c4] ss:$16 sps:$4 sm:$0xff]  }
 0x2e9   :  { %4943 = vmatprep.subr.bf16.mxu0 %v6995_v35  ;;  %5065 = vmatpush1.bf16.msra.mxu1 %v6963_v3  ;;  %v7020_v35 = vld [vmem:[#allocation8 + $0x5a8] ss:$16 sps:$4 sm:$0xff]   ;;  %v7028_v3 = vld [vmem:[#allocation8 + $0x5cc] ss:$16 sps:$4 sm:$0xff]   ;;  %v7079_v36 = vld [vmem:[#allocation8 + $0x7e4] ss:$16 sps:$4 sm:$0xff]  }
 0x2ea   :  { %5096 = vmatprep.mubr.bf16.mxu1 %v3257_v22  ;;  %5066 = vmatprep.subr.bf16.mxu1 %v6968_v34  ;;  %v7065_v22 = vld [vmem:[#allocation8 + $0x7a0] ss:$16 sps:$4 sm:$0xff]   ;;  %v7034_v19 = vld [vmem:[#allocation8 + $0x5ec] ss:$16 sps:$4 sm:$0xff]  }
 0x2eb   :  { %v7071_v34 = vld [vmem:[#allocation8 + $0x7c0] ss:$16 sps:$4 sm:$0xff]  }
 0x2ec   :  { %4944 = vmatpush1.bf16.msra.mxu0 %v6993_v37  ;;  %v7026_v37 = vld [vmem:[#allocation8 + $0x5c8] ss:$16 sps:$4 sm:$0xff]  }
 0x2ed   :  { %4945 = vmatprep.subr.bf16.mxu0 %v7001_v41  ;;  %5067 = vmatpush1.bf16.msra.mxu1 %v6966_v42  ;;  %v7077_v41 = vld [vmem:[#allocation8 + $0x7e0] ss:$16 sps:$4 sm:$0xff]  }
 0x2ee   :  { %5068 = vmatprep.subr.bf16.mxu1 %v6971_v38  ;;  %v7109_v42 = vld [vmem:[#allocation11 + $0x4] ss:$8 sps:$4 sm:$0xff]  }
 0x2ef   :  { %v7032_v38 = vld [vmem:[#allocation8 + $0x5e8] ss:$16 sps:$4 sm:$0xff]  }
 0x2f0   :  { %4946 = vmatpush1.bf16.msra.mxu0 %v6999_v43  ;;  %v7040_v43 = vld [vmem:[#allocation8 + $0x60c] ss:$16 sps:$4 sm:$0xff]  }
 0x2f1   :  { %4947 = vmatprep.subr.bf16.mxu0 %v7007_v44  ;;  %5069 = vmatpush1.bf16.msra.mxu1 %v6969_v45  ;;  %v7038_v44 = vld [vmem:[#allocation8 + $0x608] ss:$16 sps:$4 sm:$0xff]   ;;  %v7046_v45 = vld [vmem:[#allocation8 + $0x62c] ss:$16 sps:$4 sm:$0xff]  }
 0x2f2   :  { %5070 = vmatprep.subr.bf16.mxu1 %v6974_v40  ;;  %v7044_v40 = vld [vmem:[#allocation8 + $0x628] ss:$16 sps:$4 sm:$0xff]  }
 0x2f4   :  { %4948 = vmatpush1.bf16.msra.mxu0 %v7005_v46  ;;  %v7052_v46 = vld [vmem:[#allocation8 + $0x64c] ss:$16 sps:$4 sm:$0xff]  }
 0x2f5   :  { %4949 = vmatprep.subr.bf16.mxu0 %v7013_v47  ;;  %5071 = vmatpush1.bf16.msra.mxu1 %v6972_v60  ;;  %v7050_v47 = vld [vmem:[#allocation8 + $0x648] ss:$16 sps:$4 sm:$0xff]   ;;  %v7058_v60 = vld [vmem:[#allocation8 + $0x66c] ss:$16 sps:$4 sm:$0xff]  }
 0x2f6   :  { %5072 = vmatprep.subr.bf16.mxu1 %v6977_v48  ;;  %v7056_v48 = vld [vmem:[#allocation8 + $0x668] ss:$16 sps:$4 sm:$0xff]  }
 0x2f8   :  { %4950 = vmatpush1.bf16.msra.mxu0 %v7011_v49  ;;  %v7064_v49 = vld [vmem:[#allocation8 + $0x68c] ss:$16 sps:$4 sm:$0xff]  }
 0x2f9   :  { %4951 = vmatprep.subr.bf16.mxu0 %v7019_v50  ;;  %5073 = vmatpush1.bf16.msra.mxu1 %v6975_v51  ;;  %v570_v50 = vsub.s32 6, %v7692_v56  ;;  %v7062_v51 = vld [vmem:[#allocation8 + $0x688] ss:$16 sps:$4 sm:$0xff]  }
 0x2fa   :  { %5074 = vmatprep.subr.bf16.mxu1 %v6980_v52  ;;  %v574_v52 = vsub.s32 7, %v7692_v56  ;;  %v7215_v56 = vld [vmem:[#allocation14 + $0x70] sm:$0xff]  }
 0x2fc   :  { %4952 = vmatpush1.bf16.msra.mxu0 %v7017_v55  ;;  %v571_v55 = vrot.slane %v7752_v32, %v570_v50  ;;  %v7134_v50 = vld [vmem:[#allocation11 + $0x90] ss:$8 sps:$4 sm:$0xff]  }
 0x2fd   :  { %4953 = vmatprep.subr.bf16.mxu0 %v7025_v57  ;;  %5075 = vmatpush1.bf16.msra.mxu1 %v6978_v59  ;;  %v575_v57 = vrot.slane %v7752_v32, %v574_v52  ;;  %v7068_v59 = vld [vmem:[#allocation8 + $0x6a8] ss:$16 sps:$4 sm:$0xff]   ;;  %v7137_v52 = vld [vmem:[#allocation11 + $0xa0] ss:$8 sps:$4 sm:$0xff]  }
 0x2fe   :  { %5076 = vmatprep.subr.bf16.mxu1 %v6983_v62  ;;  %v7076_v62 = vld [vmem:[#allocation8 + $0x6cc] ss:$16 sps:$4 sm:$0xff]  }
 0x300   :  { %4954 = vmatpush1.bf16.msra.mxu0 %v7023_v63 }
 0x301   :  { %4955 = vmatprep.subr.bf16.mxu0 %v7031_v1  ;;  %5077 = vmatpush1.bf16.msra.mxu1 %v6981_v2 }
 0x302   :  { %5078 = vmatprep.subr.bf16.mxu1 %v6986_v5 }
 0x304   :  { %4956 = vmatpush1.bf16.msra.mxu0 %v7029_v6 }
 0x305   :  { %4957 = vmatprep.subr.bf16.mxu0 %v7037_v7  ;;  %5079 = vmatpush1.bf16.msra.mxu1 %v6984_v8  ;;  %v7074_v7 = vld [vmem:[#allocation8 + $0x6c8] ss:$16 sps:$4 sm:$0xff]  }
 0x306   :  { %5080 = vmatprep.subr.bf16.mxu1 %v6992_v9 }
 0x308   :  { %4958 = vmatpush1.bf16.msra.mxu0 %v7035_v10  ;;  %v7082_v10 = vld [vmem:[#allocation8 + $0x6ec] ss:$16 sps:$4 sm:$0xff]  }
 0x309   :  { %4959 = vmatprep.subr.bf16.mxu0 %v7043_v58  ;;  %5081 = vmatpush1.bf16.msra.mxu1 %v6990_v11 }
 0x30a   :  { %5082 = vmatprep.subr.bf16.mxu1 %v6998_v31  ;;  %v7080_v31 = vld [vmem:[#allocation8 + $0x6e8] ss:$16 sps:$4 sm:$0xff]  }
 0x30c   :  { %4960 = vmatpush1.bf16.msra.mxu0 %v7041_v12 }
 0x30d   :  { %4961 = vmatprep.subr.bf16.mxu0 %v7049_v14  ;;  %5083 = vmatpush1.bf16.msra.mxu1 %v6996_v16  ;;  %v7085_v16 = vld [vmem:[#allocation8 + $0x70c] ss:$16 sps:$4 sm:$0xff]  }
 0x30e   :  { %5084 = vmatprep.subr.bf16.mxu1 %v7004_v18 }
 0x310   :  { %4962 = vmatpush1.bf16.msra.mxu0 %v7047_v20  ;;  %v7107_v20 = vld [vmem:[#allocation11] ss:$8 sps:$4 sm:$0xff]  }
 0x311   :  { %4963 = vmatprep.subr.bf16.mxu0 %v7055_v23  ;;  %5085 = vmatpush1.bf16.msra.mxu1 %v7002_v24  ;;  %v7112_v24 = vld [vmem:[#allocation11 + $0x14] ss:$8 sps:$4 sm:$0xff]  }
 0x312   :  { %5086 = vmatprep.subr.bf16.mxu1 %v7010_v25  ;;  %v7110_v25 = vld [vmem:[#allocation11 + $0x10] ss:$8 sps:$4 sm:$0xff]  }
 0x314   :  { %4964 = vmatpush1.bf16.msra.mxu0 %v7053_v26  ;;  %v7086_v26 = vld [vmem:[#allocation8 + $0x728] ss:$16 sps:$4 sm:$0xff]  }
 0x315   :  { %4965 = vmatprep.subr.bf16.mxu0 %v7061_v17  ;;  %5087 = vmatpush1.bf16.msra.mxu1 %v7008_v27  ;;  %v7115_v17 = vld [vmem:[#allocation11 + $0x24] ss:$8 sps:$4 sm:$0xff]   ;;  %v7091_v27 = vld [vmem:[#allocation8 + $0x74c] ss:$16 sps:$4 sm:$0xff]  }
 0x316   :  { %5088 = vmatprep.subr.bf16.mxu1 %v7016_v39  ;;  %v7113_v39 = vld [vmem:[#allocation11 + $0x20] ss:$8 sps:$4 sm:$0xff]  }
 0x318   :  { %4966 = vmatpush1.bf16.msra.mxu0 %v7059_v53  ;;  %v7089_v53 = vld [vmem:[#allocation8 + $0x748] ss:$16 sps:$4 sm:$0xff]  }
 0x319   :  { %4967 = vmatprep.subr.bf16.mxu0 %v7067_v54  ;;  %5089 = vmatpush1.bf16.msra.mxu1 %v7014_v61  ;;  %v7118_v54 = vld [vmem:[#allocation11 + $0x34] ss:$8 sps:$4 sm:$0xff]   ;;  %v7094_v61 = vld [vmem:[#allocation8 + $0x76c] ss:$16 sps:$4 sm:$0xff]  }
 0x31a   :  { %5090 = vmatprep.subr.bf16.mxu1 %v7022_v21  ;;  %v7116_v21 = vld [vmem:[#allocation11 + $0x30] ss:$8 sps:$4 sm:$0xff]  }
 0x31c   :  { %4968 = vmatpush1.bf16.msra.mxu0 %v7065_v22  ;;  %v7092_v22 = vld [vmem:[#allocation8 + $0x768] ss:$16 sps:$4 sm:$0xff]  }
 0x31d   :  { %4969 = vmatprep.subr.bf16.mxu0 %v7073_v29  ;;  %5091 = vmatpush1.bf16.msra.mxu1 %v7020_v35  ;;  %v7121_v29 = vld [vmem:[#allocation11 + $0x44] ss:$8 sps:$4 sm:$0xff]   ;;  %v7097_v35 = vld [vmem:[#allocation8 + $0x78c] ss:$16 sps:$4 sm:$0xff]  }
 0x31e   :  { %5092 = vmatprep.subr.bf16.mxu1 %v7028_v3  ;;  %v7119_v3 = vld [vmem:[#allocation11 + $0x40] ss:$8 sps:$4 sm:$0xff]  }
 0x320   :  { %4970 = vmatpush1.bf16.msra.mxu0 %v7071_v34  ;;  %v7095_v34 = vld [vmem:[#allocation8 + $0x788] ss:$16 sps:$4 sm:$0xff]  }
 0x321   :  { %4971 = vmatprep.subr.bf16.mxu0 %v7079_v36  ;;  %5093 = vmatpush1.bf16.msra.mxu1 %v7026_v37  ;;  %v7124_v36 = vld [vmem:[#allocation11 + $0x54] ss:$8 sps:$4 sm:$0xff]   ;;  %v7100_v37 = vld [vmem:[#allocation8 + $0x7ac] ss:$16 sps:$4 sm:$0xff]  }
 0x322   :  { %5094 = vmatprep.subr.bf16.mxu1 %v7034_v19  ;;  %v7122_v19 = vld [vmem:[#allocation11 + $0x50] ss:$8 sps:$4 sm:$0xff]  }
 0x324   :  { %4972 = vmatpush1.bf16.msra.mxu0 %v7077_v41  ;;  %v7098_v41 = vld [vmem:[#allocation8 + $0x7a8] ss:$16 sps:$4 sm:$0xff]  }
 0x325   :  { %5558 = vmatprep.subr.bf16.mxu0 %v7109_v42  ;;  %5095 = vmatpush1.bf16.msra.mxu1 %v7032_v38  ;;  %v7127_v42 = vld [vmem:[#allocation11 + $0x64] ss:$8 sps:$4 sm:$0xff]   ;;  %v7103_v38 = vld [vmem:[#allocation8 + $0x7cc] ss:$16 sps:$4 sm:$0xff]  }
 0x326   :  { %5105 = vmatprep.subr.bf16.mxu1 %v7040_v43  ;;  %v7125_v43 = vld [vmem:[#allocation11 + $0x60] ss:$8 sps:$4 sm:$0xff]  }
 0x328   :  { %5097 = vmatmul.mubr.bf16.vlgmr.msra.gmra.mrb[12].mxu1 %v7756_v30  ;;  %v7070_v30 = vld [vmem:[#allocation8 + $0x6ac] ss:$16 sps:$4 sm:$0xff]  }
 0x329   :  { %5106 = vmatpush1.bf16.msra.mxu1 %v7038_v44  ;;  %v7101_v44 = vld [vmem:[#allocation8 + $0x7c8] ss:$16 sps:$4 sm:$0xff]  }
 0x32a   :  { %5107 = vmatprep.subr.bf16.mxu1 %v7046_v45  ;;  %v7130_v45 = vld [vmem:[#allocation11 + $0x74] ss:$8 sps:$4 sm:$0xff]  }
 0x32d   :  { %5108 = vmatpush1.bf16.msra.mxu1 %v7044_v40  ;;  %v7106_v40 = vld [vmem:[#allocation8 + $0x7ec] ss:$16 sps:$4 sm:$0xff]  }
 0x32e   :  { %5109 = vmatprep.subr.bf16.mxu1 %v7052_v46  ;;  %v7128_v46 = vld [vmem:[#allocation11 + $0x70] ss:$8 sps:$4 sm:$0xff]  }
 0x331   :  { %5110 = vmatpush1.bf16.msra.mxu1 %v7050_v47  ;;  %v7104_v47 = vld [vmem:[#allocation8 + $0x7e8] ss:$16 sps:$4 sm:$0xff]  }
 0x332   :  { %5111 = vmatprep.subr.bf16.mxu1 %v7058_v60  ;;  %v7133_v60 = vld [vmem:[#allocation11 + $0x84] ss:$8 sps:$4 sm:$0xff]  }
 0x335   :  { %5112 = vmatpush1.bf16.msra.mxu1 %v7056_v48  ;;  %v7131_v48 = vld [vmem:[#allocation11 + $0x80] ss:$8 sps:$4 sm:$0xff]  }
 0x336   :  { %5113 = vmatprep.subr.bf16.mxu1 %v7064_v49  ;;  %v7136_v49 = vld [vmem:[#allocation11 + $0x94] ss:$8 sps:$4 sm:$0xff]  }
 0x339   :  { %5114 = vmatpush1.bf16.msra.mxu1 %v7062_v51  ;;  %v7139_v51 = vld [vmem:[#allocation11 + $0xa4] ss:$8 sps:$4 sm:$0xff]  }
 0x33a   :  { %5115 = vmatprep.subr.bf16.mxu1 %v7070_v30  ;;  %v7142_v30 = vld [vmem:[#allocation11 + $0xb4] ss:$8 sps:$4 sm:$0xff]  }
 0x33b   :  { %v3180_v63 = vpop.f32.mrb[8].mxu1 }
 0x33c   :  { %v6623_v1 = vadd.f32 %v3180_v63, %v571_v55  ;;  %v3182_v2 = vpop.f32.mrb[9].mxu1  ;;  %v7140_v55 = vld [vmem:[#allocation11 + $0xb0] ss:$8 sps:$4 sm:$0xff]  }
 0x33d   :  { %v6625_v5 = vadd.f32 %v3182_v2, %v575_v57  ;;  %v3184_v6 = vpop.f32.mrb[10].mxu1  ;;  %5116 = vmatpush1.bf16.msra.mxu1 %v7068_v59  ;;  %v7145_v57 = vld [vmem:[#allocation11 + $0xc4] ss:$8 sps:$4 sm:$0xff]   ;;  %v7143_v59 = vld [vmem:[#allocation11 + $0xc0] ss:$8 sps:$4 sm:$0xff]  }
 0x33e   :  { %v6624_v8 = vadd.f32 %v6623_v1, %v7758_v28  ;;  %v3185_v9 = vpop.f32.mrb[11].mxu1  ;;  %5117 = vmatprep.subr.bf16.mxu1 %v7076_v62  ;;  %v7083_v28 = vld [vmem:[#allocation8 + $0x708] ss:$16 sps:$4 sm:$0xff]   ;;  %v7146_v63 = vld [vmem:[#allocation11 + $0xd0] ss:$8 sps:$4 sm:$0xff]  }
 0x33f   :  { %v6626_v58 = vadd.f32 %v6625_v5, %v7760_v33  ;;  %v7088_v33 = vld [vmem:[#allocation8 + $0x72c] ss:$16 sps:$4 sm:$0xff]   ;;  %v7148_v62 = vld [vmem:[#allocation11 + $0xd4] ss:$8 sps:$4 sm:$0xff]   ;;  %v7151_v1 = vld [vmem:[#allocation11 + $0xe4] ss:$8 sps:$4 sm:$0xff]  }
 0x340   :  { %vm3234_vm7 = vcmp.gt.f32.partialorder %v6624_v8, 0.0  ;;  %v3242_v11 = vmul.f32 0.2, %v6624_v8  ;;  %v7149_v2 = vld [vmem:[#allocation11 + $0xe0] ss:$8 sps:$4 sm:$0xff]  }
 0x341   :  { %v3243_v32 = vmul.f32 0.2, %v6626_v58  ;;  %5118 = vmatpush1.bf16.msra.mxu1 %v7074_v7  ;;  %vm3235_vm8 = vcmp.gt.f32.partialorder %v6626_v58, 0.0  ;;  %v7152_v5 = vld [vmem:[#allocation11 + $0xf0] ss:$8 sps:$4 sm:$0xff]   ;;  %v7204_v9 = vld [vmem:[#allocation14] sm:$0xff]  }
 0x342   :  { %v3250_v12 = vsel %vm3234_vm7, %v6624_v8, %v3242_v11  ;;  %5119 = vmatprep.subr.bf16.mxu1 %v7082_v10  ;;  %v7154_v6 = vld [vmem:[#allocation11 + $0xf4] ss:$8 sps:$4 sm:$0xff]   ;;  %v7157_v7 = vld [vmem:[#allocation11 + $0x104] ss:$8 sps:$4 sm:$0xff]  }
 0x343   :  { %v3251_v14 = vsel %vm3235_vm8, %v6626_v58, %v3243_v32  ;;  %v7771_v23 = vpack.c.bf16 %v3250_v12, %v3250_v12  ;;  %v7203_v8 = vld [vmem:[#allocation14 + $0x40] sm:$0xff]   ;;  %v7205_v10 = vld [vmem:[#allocation14 + $0x48] sm:$0xff]   ;;  %v7207_v11 = vld [vmem:[#allocation14 + $0x50] sm:$0xff]  }
 0x344   :  { %v3259_v18 = vpack.c.bf16 %v3251_v14, %v3251_v14  ;;  %v7206_v58 = vld [vmem:[#allocation14 + $0x8] sm:$0xff]   ;;  %v7208_v32 = vld [vmem:[#allocation14 + $0x10] sm:$0xff]   ;;  %v7210_v12 = vld [vmem:[#allocation14 + $0x18] sm:$0xff]  }
 0x345   :  { %5120 = vmatpush1.bf16.msra.mxu1 %v7080_v31  ;;  %v7209_v31 = vld [vmem:[#allocation14 + $0x58] sm:$0xff]   ;;  %v7211_v14 = vld [vmem:[#allocation14 + $0x60] sm:$0xff]  }
 0x346   :  { %4973 = vmatprep.mubr.bf16.mxu0 %v3259_v18  ;;  %5137 = vmatprep.mubr.bf16.mxu1 %v3259_v18  ;;  %v7213_v18 = vld [vmem:[#allocation14 + $0x68] sm:$0xff]  }
 0x347   :  { %4974 = vmatmul.mubr.bf16.vlgmr.msra.gmra.mrb[16].mxu0 %v7771_v23  ;;  %5121 = vmatprep.subr.bf16.mxu1 %v7085_v16  ;;  %v7212_v16 = vld [vmem:[#allocation14 + $0x20] sm:$0xff]  }
 0x348   :  { %5559 = vmatpush1.bf16.msra.mxu0 %v7107_v20  ;;  %v7214_v20 = vld [vmem:[#allocation14 + $0x28] sm:$0xff]  }
 0x349   :  { %5122 = vmatpush1.bf16.msra.mxu1 %v7083_v28  ;;  %5560 = vmatprep.subr.bf16.mxu0 %v7112_v24 }
 0x34a   :  { %5123 = vmatprep.subr.bf16.mxu1 %v7088_v33 }
 0x34c   :  { %5561 = vmatpush1.bf16.msra.mxu0 %v7110_v25 }
 0x34d   :  { %5124 = vmatpush1.bf16.msra.mxu1 %v7086_v26  ;;  %5562 = vmatprep.subr.bf16.mxu0 %v7115_v17 }
 0x34e   :  { %5125 = vmatprep.subr.bf16.mxu1 %v7091_v27 }
 0x350   :  { %5563 = vmatpush1.bf16.msra.mxu0 %v7113_v39 }
 0x351   :  { %5126 = vmatpush1.bf16.msra.mxu1 %v7089_v53  ;;  %5564 = vmatprep.subr.bf16.mxu0 %v7118_v54 }
 0x352   :  { %5127 = vmatprep.subr.bf16.mxu1 %v7094_v61 }
 0x354   :  { %5565 = vmatpush1.bf16.msra.mxu0 %v7116_v21 }
 0x355   :  { %5128 = vmatpush1.bf16.msra.mxu1 %v7092_v22  ;;  %5566 = vmatprep.subr.bf16.mxu0 %v7121_v29  ;;  %v7155_v29 = vld [vmem:[#allocation11 + $0x100] ss:$8 sps:$4 sm:$0xff]  }
 0x356   :  { %5129 = vmatprep.subr.bf16.mxu1 %v7097_v35 }
 0x358   :  { %5567 = vmatpush1.bf16.msra.mxu0 %v7119_v3  ;;  %v7160_v3 = vld [vmem:[#allocation11 + $0x114] ss:$8 sps:$4 sm:$0xff]  }
 0x359   :  { %5130 = vmatpush1.bf16.msra.mxu1 %v7095_v34  ;;  %5568 = vmatprep.subr.bf16.mxu0 %v7124_v36  ;;  %v7158_v34 = vld [vmem:[#allocation11 + $0x110] ss:$8 sps:$4 sm:$0xff]   ;;  %v7163_v36 = vld [vmem:[#allocation11 + $0x124] ss:$8 sps:$4 sm:$0xff]  }
 0x35a   :  { %5131 = vmatprep.subr.bf16.mxu1 %v7100_v37  ;;  %v7161_v37 = vld [vmem:[#allocation11 + $0x120] ss:$8 sps:$4 sm:$0xff]  }
 0x35c   :  { %5569 = vmatpush1.bf16.msra.mxu0 %v7122_v19  ;;  %v7166_v19 = vld [vmem:[#allocation11 + $0x134] ss:$8 sps:$4 sm:$0xff]  }
 0x35d   :  { %5132 = vmatpush1.bf16.msra.mxu1 %v7098_v41  ;;  %5570 = vmatprep.subr.bf16.mxu0 %v7127_v42  ;;  %v7164_v41 = vld [vmem:[#allocation11 + $0x130] ss:$8 sps:$4 sm:$0xff]   ;;  %v7169_v42 = vld [vmem:[#allocation11 + $0x144] ss:$8 sps:$4 sm:$0xff]  }
 0x35e   :  { %5133 = vmatprep.subr.bf16.mxu1 %v7103_v38  ;;  %v7167_v38 = vld [vmem:[#allocation11 + $0x140] ss:$8 sps:$4 sm:$0xff]  }
 0x360   :  { %5571 = vmatpush1.bf16.msra.mxu0 %v7125_v43  ;;  %v7172_v43 = vld [vmem:[#allocation11 + $0x154] ss:$8 sps:$4 sm:$0xff]  }
 0x361   :  { %5134 = vmatpush1.bf16.msra.mxu1 %v7101_v44  ;;  %5572 = vmatprep.subr.bf16.mxu0 %v7130_v45  ;;  %v7170_v44 = vld [vmem:[#allocation11 + $0x150] ss:$8 sps:$4 sm:$0xff]   ;;  %v7175_v45 = vld [vmem:[#allocation11 + $0x164] ss:$8 sps:$4 sm:$0xff]  }
 0x362   :  { %5135 = vmatprep.subr.bf16.mxu1 %v7106_v40  ;;  %v7173_v40 = vld [vmem:[#allocation11 + $0x160] ss:$8 sps:$4 sm:$0xff]  }
 0x364   :  { %5573 = vmatpush1.bf16.msra.mxu0 %v7128_v46 }
 0x365   :  { %5136 = vmatpush1.bf16.msra.mxu1 %v7104_v47  ;;  %5574 = vmatprep.subr.bf16.mxu0 %v7133_v60  ;;  %v7178_v47 = vld [vmem:[#allocation11 + $0x174] ss:$8 sps:$4 sm:$0xff]  }
 0x366   :  { %6591 = vmatprep.subr.bf16.mxu1 %v7203_v8  ;;  %v7191_v8 = vld [vmem:[#allocation11 + $0x1c0] ss:$8 sps:$4 sm:$0xff]  }
 0x368   :  { %5138 = vmatmul.mubr.bf16.vlgmr.msra.gmra.mrb[12].mxu1 %v7771_v23  ;;  %5575 = vmatpush1.bf16.msra.mxu0 %v7131_v48  ;;  %v7775_v23 = vld [vmem:[#allocation10] sm:$0xf] }
 0x369   :  { %5576 = vmatprep.subr.bf16.mxu0 %v7136_v49  ;;  %6592 = vmatpush3.bf16.msra.mxu1 %v7204_v9  ;;  %v3521_v28 = vrot.slane %v7775_v23, %v7696_v0  ;;  %v3525_v24 = vrot.slane %v7775_v23, %v7702_v4  ;;  %v3533_v46 = vrot.slane %v7775_v23, %v558_v15  ;;  %v7182_v15 = vld [vmem:[#allocation11 + $0x190] ss:$8 sps:$4 sm:$0xff]   ;;  %v7196_v9 = vld [vmem:[#allocation11 + $0x1d4] ss:$8 sps:$4 sm:$0xff]  }
 0x36a   :  { %6593 = vmatprep.subr.bf16.mxu1 %v7205_v10  ;;  %v3529_v10 = vrot.slane %v7775_v23, %v554_v13  ;;  %v7216_v13 = vld [vmem:[#allocation14 + $0x30] sm:$0xff]   ;;  %v7217_v23 = vld [vmem:[#allocation14 + $0x78] sm:$0xff]  }
 0x36c   :  { %5577 = vmatpush1.bf16.msra.mxu0 %v7134_v50 }
 0x36d   :  { %5578 = vmatprep.subr.bf16.mxu0 %v7139_v51  ;;  %6594 = vmatpush3.bf16.msra.mxu1 %v7206_v58  ;;  %v7176_v51 = vld [vmem:[#allocation11 + $0x170] ss:$8 sps:$4 sm:$0xff]  }
 0x36e   :  { %6595 = vmatprep.subr.bf16.mxu1 %v7207_v11  ;;  %v7194_v58 = vld [vmem:[#allocation11 + $0x1d0] ss:$8 sps:$4 sm:$0xff]   ;;  %v7199_v11 = vld [vmem:[#allocation11 + $0x1e4] ss:$8 sps:$4 sm:$0xff]  }
 0x370   :  { %5579 = vmatpush1.bf16.msra.mxu0 %v7137_v52 }
 0x371   :  { %5580 = vmatprep.subr.bf16.mxu0 %v7142_v30  ;;  %6596 = vmatpush3.bf16.msra.mxu1 %v7208_v32  ;;  %v7181_v30 = vld [vmem:[#allocation11 + $0x184] ss:$8 sps:$4 sm:$0xff]  }
 0x372   :  { %6597 = vmatprep.subr.bf16.mxu1 %v7209_v31  ;;  %v7197_v31 = vld [vmem:[#allocation11 + $0x1e0] ss:$8 sps:$4 sm:$0xff]  }
 0x374   :  { %5581 = vmatpush1.bf16.msra.mxu0 %v7140_v55 }
 0x375   :  { %5582 = vmatprep.subr.bf16.mxu0 %v7145_v57  ;;  %6598 = vmatpush3.bf16.msra.mxu1 %v7210_v12  ;;  %v7179_v57 = vld [vmem:[#allocation11 + $0x180] ss:$8 sps:$4 sm:$0xff]   ;;  %v7202_v12 = vld [vmem:[#allocation11 + $0x1f4] ss:$8 sps:$4 sm:$0xff]  }
 0x376   :  { %6599 = vmatprep.subr.bf16.mxu1 %v7211_v14 }
 0x378   :  { %5583 = vmatpush1.bf16.msra.mxu0 %v7143_v59 }
 0x379   :  { %5584 = vmatprep.subr.bf16.mxu0 %v7148_v62  ;;  %6600 = vmatpush3.bf16.msra.mxu1 %v7212_v16  ;;  %v7200_v16 = vld [vmem:[#allocation11 + $0x1f0] ss:$8 sps:$4 sm:$0xff]  }
 0x37a   :  { %6601 = vmatprep.subr.bf16.mxu1 %v7213_v18 }
 0x37c   :  { %5585 = vmatpush1.bf16.msra.mxu0 %v7146_v63  ;;  %v7184_v63 = vld [vmem:[#allocation11 + $0x194] ss:$8 sps:$4 sm:$0xff]  }
 0x37d   :  { %5586 = vmatprep.subr.bf16.mxu0 %v7151_v1  ;;  %6602 = vmatpush3.bf16.msra.mxu1 %v7214_v20  ;;  %v7187_v1 = vld [vmem:[#allocation11 + $0x1a4] ss:$8 sps:$4 sm:$0xff]  }
 0x37e   :  { %6603 = vmatprep.subr.bf16.mxu1 %v7215_v56 }
 0x380   :  { %5587 = vmatpush1.bf16.msra.mxu0 %v7149_v2  ;;  %v7185_v2 = vld [vmem:[#allocation11 + $0x1a0] ss:$8 sps:$4 sm:$0xff]  }
 0x381   :  { %5588 = vmatprep.subr.bf16.mxu0 %v7154_v6  ;;  %v7188_v6 = vld [vmem:[#allocation11 + $0x1b0] ss:$8 sps:$4 sm:$0xff]   ;;  %6604 = vmatpush3.bf16.msra.mxu1 %v7216_v13 }
 0x382   :  { %6605 = vmatprep.subr.bf16.mxu1 %v7217_v23 }
 0x384   :  { %5589 = vmatpush1.bf16.msra.mxu0 %v7152_v5  ;;  %v7190_v5 = vld [vmem:[#allocation11 + $0x1b4] ss:$8 sps:$4 sm:$0xff]  }
 0x385   :  { %5599 = vmatprep.subr.bf16.mxu0 %v7157_v7  ;;  %v7193_v7 = vld [vmem:[#allocation11 + $0x1c4] ss:$8 sps:$4 sm:$0xff]  }
 0x41a   :  { %v4975_v33 = vpop.f32.mrb[16].mxu0 }
 0x41b   :  { %v6627_v25 = vadd.f32 %v4975_v33, %v3521_v28  ;;  %v4977_v26 = vpop.f32.mrb[17].mxu0  ;;  %v7218_v28 = vld [vmem:[#allocation14 + $0x38] sm:$0xff]  }
 0x41c   :  { %v6628_v17 = vadd.f32 %v4977_v26, %v3525_v24  ;;  %v4979_v27 = vpop.f32.mrb[18].mxu0  ;;  %6606 = vmatpush3.bf16.msra.mxu1 %v7218_v28  ;;  %v5226_v24 = vld [vmem:[#allocation13] sm:$0x3] }
 0x41d   :  { %vm5146_vm9 = vcmp.gt.f32.partialorder %v6627_v25, 0.0  ;;  %v5150_v39 = vmul.f32 0.2, %v6627_v25  ;;  %v4980_v53 = vpop.f32.mrb[19].mxu0  ;;  %v5231_v33 = vrot.slane %v5226_v24, %v7696_v0  ;;  %v6573_v0 = vld [vmem:[#allocation16] ss:$0 sm:$0xff] }
 0x41e   :  { %vm5147_vm10 = vcmp.gt.f32.partialorder %v6628_v17, 0.0  ;;  %v5151_v54 = vmul.f32 0.2, %v6628_v17 }
 0x41f   :  { %v5154_v61 = vsel %vm5146_vm9, %v6627_v25, %v5150_v39  ;;  %v5235_v25 = vrot.slane %v5226_v24, %v7702_v4 }
 0x420   :  { %v5155_v21 = vsel %vm5147_vm10, %v6628_v17, %v5151_v54  ;;  %v5158_v35 = vpack.c.bf16 %v5154_v61, %v5154_v61 }
 0x421   :  { %v5159_v22 = vpack.c.bf16 %v5155_v21, %v5155_v21 }
 0x423   :  { %5590 = vmatprep.mubr.bf16.mxu0 %v5159_v22 }
 0x424   :  { %5591 = vmatmul.mubr.bf16.vlgmr.msra.gmra.mrb[20].mxu0 %v5158_v35 }
 0x425   :  { %5600 = vmatpush1.bf16.msra.mxu0 %v7155_v29 }
 0x426   :  { %5601 = vmatprep.subr.bf16.mxu0 %v7160_v3 }
 0x429   :  { %5602 = vmatpush1.bf16.msra.mxu0 %v7158_v34 }
 0x42a   :  { %5603 = vmatprep.subr.bf16.mxu0 %v7163_v36 }
 0x42d   :  { %5604 = vmatpush1.bf16.msra.mxu0 %v7161_v37 }
 0x42e   :  { %5605 = vmatprep.subr.bf16.mxu0 %v7166_v19 }
 0x431   :  { %5606 = vmatpush1.bf16.msra.mxu0 %v7164_v41 }
 0x432   :  { %5607 = vmatprep.subr.bf16.mxu0 %v7169_v42 }
 0x435   :  { %5608 = vmatpush1.bf16.msra.mxu0 %v7167_v38 }
 0x436   :  { %5609 = vmatprep.subr.bf16.mxu0 %v7172_v43 }
 0x439   :  { %5610 = vmatpush1.bf16.msra.mxu0 %v7170_v44 }
 0x43a   :  { %5611 = vmatprep.subr.bf16.mxu0 %v7175_v45 }
 0x43b   :  { %v5139_v60 = vpop.f32.mrb[12].mxu1 }
 0x43c   :  { %v5141_v48 = vpop.f32.mrb[13].mxu1  ;;  %v6629_v32 = vadd.f32 %v5139_v60, %v3529_v10 }
 0x43d   :  { %v6630_v49 = vadd.f32 %v5141_v48, %v3533_v46  ;;  %5612 = vmatpush1.bf16.msra.mxu0 %v7173_v40  ;;  %v5143_v50 = vpop.f32.mrb[14].mxu1 }
 0x43e   :  { %v5144_v52 = vpop.f32.mrb[15].mxu1  ;;  %5613 = vmatprep.subr.bf16.mxu0 %v7178_v47  ;;  %v5152_v14 = vmul.f32 0.2, %v6629_v32  ;;  %vm5148_vm12 = vcmp.gt.f32.partialorder %v6629_v32, 0.0 }
 0x43f   :  { %vm5149_vm11 = vcmp.gt.f32.partialorder %v6630_v49, 0.0  ;;  %v5153_v55 = vmul.f32 0.2, %v6630_v49 }
 0x440   :  { %v5156_v18 = vsel %vm5148_vm12, %v6629_v32, %v5152_v14 }
 0x441   :  { %5614 = vmatpush1.bf16.msra.mxu0 %v7176_v51  ;;  %v5157_v59 = vsel %vm5149_vm11, %v6630_v49, %v5153_v55  ;;  %v5160_v20 = vpack.c.bf16 %v5156_v18, %v5156_v18 }
 0x442   :  { %5615 = vmatprep.subr.bf16.mxu0 %v7181_v30  ;;  %v5161_v62 = vpack.c.bf16 %v5157_v59, %v5157_v59 }
 0x444   :  { %5631 = vmatprep.mubr.bf16.mxu0 %v5161_v62 }
 0x445   :  { %5616 = vmatpush1.bf16.msra.mxu0 %v7179_v57 }
 0x446   :  { %5617 = vmatprep.subr.bf16.mxu0 %v7184_v63 }
 0x449   :  { %5618 = vmatpush1.bf16.msra.mxu0 %v7182_v15 }
 0x44a   :  { %5619 = vmatprep.subr.bf16.mxu0 %v7187_v1 }
 0x44d   :  { %5620 = vmatpush1.bf16.msra.mxu0 %v7185_v2 }
 0x44e   :  { %5621 = vmatprep.subr.bf16.mxu0 %v7190_v5 }
 0x451   :  { %5622 = vmatpush1.bf16.msra.mxu0 %v7188_v6 }
 0x452   :  { %5623 = vmatprep.subr.bf16.mxu0 %v7193_v7 }
 0x455   :  { %5624 = vmatpush1.bf16.msra.mxu0 %v7191_v8 }
 0x456   :  { %5625 = vmatprep.subr.bf16.mxu0 %v7196_v9 }
 0x459   :  { %5626 = vmatpush1.bf16.msra.mxu0 %v7194_v58 }
 0x45a   :  { %5627 = vmatprep.subr.bf16.mxu0 %v7199_v11 }
 0x45d   :  { %5628 = vmatpush1.bf16.msra.mxu0 %v7197_v31 }
 0x45e   :  { %5629 = vmatprep.subr.bf16.mxu0 %v7202_v12 }
 0x461   :  { %5630 = vmatpush1.bf16.msra.mxu0 %v7200_v16 }
 0x464   :  { %5632 = vmatmul.mubr.bf16.vlgmr.msra.gmra.mrb[20].mxu0 %v5160_v20 }
 0x537   :  { %v5633_v26 = vpop.f32.mrb[20].mxu0 }
 0x538   :  { %v6631_v17 = vadd.f32 %v5633_v26, %v5231_v33  ;;  %v5635_v27 = vpop.f32.mrb[21].mxu0 }
 0x539   :  { %v6632_v39 = vadd.f32 %v5635_v27, %v5235_v25  ;;  %v5637_v53 = vpop.f32.mrb[22].mxu0 }
 0x53a   :  { %vm5640_vm13 = vcmp.gt.f32.partialorder %v6631_v17, 0.0  ;;  %v5642_v54 = vmul.f32 0.2, %v6631_v17  ;;  %v5638_v61 = vpop.f32.mrb[23].mxu0 }
 0x53b   :  { %vm5641_vm14 = vcmp.gt.f32.partialorder %v6632_v39, 0.0  ;;  %v5643_v21 = vmul.f32 0.2, %v6632_v39 }
 0x53c   :  { %v5644_v22 = vsel %vm5640_vm13, %v6631_v17, %v5642_v54 }
 0x53d   :  { %v5645_v29 = vsel %vm5641_vm14, %v6632_v39, %v5643_v21  ;;  %v5646_v3 = vpack.c.bf16 %v5644_v22, %v5644_v22 }
 0x53e   :  { %v5647_v35 = vpack.c.bf16 %v5645_v29, %v5645_v29 }
 0x540   :  { %5815 = vmatprep.mubr.bf16.mxu1 %v5647_v35 }
 0x541   :  { %5816 = vmatmul.mubr.bf16.vlgmr.msra.gmra.mrb[16].mxu1 %v5646_v3 }
 0x614   :  { %v6607_v34 = vpop.f32.mrb[16].mxu1 }
 0x615   :  { %v6608_v36 = vpop.f32.mrb[17].mxu1 }
 0x616   :  { %v6609_v4 = vadd.f32 %v6608_v36, %v6607_v34  ;;  %v6610_v37 = vpop.f32.mrb[18].mxu1 }
 0x617   :  { %v6611_v19 = vpop.f32.mrb[19].mxu1 }
 0x618   :  { %v5818_v41 = vadd.f32 %v6609_v4, %v6573_v0 }
 0x61a   :  { %v6590_v42 = vmul.f32 -1.442695, %v5818_v41 }
 0x61c   :  { %7219 = vpow2.f32 %v6590_v42 }
 0x626   :  { %v7220_v38 = vpop.eup %7219 }
 0x627   :  { %v5826_v43 = vadd.f32 1.0, %v7220_v38 }
 0x629   :  { %7221 = vrcp.f32 %v5826_v43 }
 0x633   :  { %v7222_v44 = vpop.eup %7221 }
 0x634   :  { %v5829_v45 = vpack.c.bf16 %v7222_v44, %v7222_v44 }
 0x636   :  { %5830 = vst [vmem:[#allocation17] sm:$0xf] %v5829_v45 }
 0x637   :  { %7434 = shalt.err (!%p7431_p6)
}
 0x638   :  { %s7435_s22 = scalar_lea.hbm %s7810_s9, 64 }
 0x639   :  { %p7436_p7 = scmp.ne.s32.totalorder %s7810_s9, %s7435_s22  ;;  %p7439_p8 = scmp.lt.u32.totalorder %s7435_s22, %s7810_s9 }
 0x63b   :  { %p7441_p9 = pnand %p7439_p8, %p7436_p7 }
 0x63d   :  { %7444 = shalt.err (!%p7441_p9)
}
 0x63e   :  { %5840 = dma.vmem_to_hbm [thread:$0]  %s5838_s24, 64, %s7810_s9, [#allocation4]  }
 0x63f   :  { %7455 = dma.done.wait [#allocation4], 64  }
 0x640   :  { %7456 = vsyncadd [#allocation4], 4294967232 }
 0x641   :  { %5844 = vsyncpa [#allocation3], 1 }
 0x642   :  { %5845 = vsyncpa [#allocation6], 1 }
 0x643   :  { %5846 = vsyncpa [#allocation9], 1 }
 0x644   :  { %5847 = vsyncpa [#allocation12], 1 }
 0x645   :  { %5848 = vsyncpa [#allocation15], 1 }
 0x646   :  { %5849 = vsyncpa [#allocation4], 1 }

</bundles_post_ra>
